<compile_context>
chip_gen: v5e
topology: v5e:2x2
jax: 0.10.0
libtpu: 0.0.40
codegen_flags: <defaults>
</compile_context>

<pallas_src>
import jax
import jax.numpy as jnp
from jax import lax
from jax.experimental import pallas as pl
from jax.experimental.pallas import tpu as pltpu

# ----------------------- small stand-in configuration ------------------------
B = 2                 # batch
C_IN = 4              # image channels
H_IMG = W_IMG = 16    # image spatial size
VISION_DIM = 64       # stands in for 2048
D_MODEL = 32          # stands in for 768
N_HEAD = 4
D_HEAD = D_MODEL // N_HEAD
T_TXT = 8             # caption length
VOCAB = 128
N_LAYER = 2
D_MLP = 4 * D_MODEL
MAX_POS = 32
LN_EPS = 1e-5
IGNORE_INDEX = -100
NEG_INF = -1e9


# ------------------------------ fused Pallas kernel ---------------------------
def _vlm_forward_kernel(
    x_ref, ids_ref, tgt_ref, kb_ref,
    vis_w_ref, vis_b_ref, proj_w_ref, proj_b_ref,
    wte_ref, wpe_ref,
    ln1_g_ref, ln1_b_ref, w_qkv_ref, b_qkv_ref, w_o_ref, b_o_ref,
    ln2_g_ref, ln2_b_ref, w_fc_ref, b_fc_ref, w_pr_ref, b_pr_ref,
    ln_f_g_ref, ln_f_b_ref,
    lsum_ref, cnt_ref):
    f32, bf16 = jnp.float32, jnp.bfloat16
    Sp = ids_ref.shape[2]                       # padded sequence length (16)
    V, Dm = wte_ref.shape                       # [VOCAB, D_MODEL]
    dh = Dm // N_HEAD
    scale = 1.0 / (dh ** 0.5)

    def mm(x, w):
        # [S, K] x [K, N] -> [S, N]; bf16 into the MXU, f32 accumulation.
        return jnp.dot(x.astype(bf16), w.astype(bf16), preferred_element_type=f32)

    def layer_norm(x, g, b):                    # g, b: [1, D]
        mu = jnp.mean(x, axis=-1, keepdims=True)
        var = jnp.mean(jnp.square(x - mu), axis=-1, keepdims=True)
        return (x - mu) * lax.rsqrt(var + LN_EPS) * g + b

    # ----- vision encoder (no_grad in reference; forward-only) fused with projection --
    xv = x_ref[0]                                               # [HW, C] bf16
    feat = mm(xv, vis_w_ref[...]) + vis_b_ref[...]              # 1x1 conv -> [HW, VIS]
    feat = jnp.maximum(feat, 0.0)                               # ReLU
    pooled = jnp.mean(feat, axis=0, keepdims=True)              # global avg pool [1, VIS]
    img_emb = mm(pooled, proj_w_ref[...]) + proj_b_ref[...]     # [1, D]

    # ----- token embeddings: one-hot matmul (id == -1 / padding -> all-zero row) -----
    # TODO(synk): switch to a scalar-prefetch row gather once VOCAB is GPT-2-sized.
    ids = ids_ref[0, 0]                                         # [Sp] int32
    onehot = (ids[:, None] ==
              lax.broadcasted_iota(jnp.int32, (Sp, V), 1)).astype(bf16)
    tok_emb = jnp.dot(onehot, wte_ref[...], preferred_element_type=f32)   # [Sp, D]

    pos = lax.broadcasted_iota(jnp.int32, (Sp, 1), 0)
    h = tok_emb + jnp.where(pos == 0, img_emb, 0.0) + wpe_ref[0:Sp, :]    # [Sp, D]

    # ----- combined causal + key-padding additive bias (built once per forward) -----
    row = lax.broadcasted_iota(jnp.int32, (Sp, Sp), 0)
    col = lax.broadcasted_iota(jnp.int32, (Sp, Sp), 1)
    kb = kb_ref[0, 0]                                           # [Sp] f32
    att_bias = jnp.where(col <= row, kb[None, :], NEG_INF)      # [Sp, Sp]

    # ----- GPT-2-style pre-LN transformer blocks, fully fused -----
    for l in range(N_LAYER):
        hn = layer_norm(h, ln1_g_ref[l], ln1_b_ref[l])
        # lane-aligned QKV: three full-width matmuls (no lane slicing at 32/64 offsets)
        q = mm(hn, w_qkv_ref[l, 0]) + b_qkv_ref[l, 0]           # [Sp, D]
        k = mm(hn, w_qkv_ref[l, 1]) + b_qkv_ref[l, 1]
        v = mm(hn, w_qkv_ref[l, 2]) + b_qkv_ref[l, 2]

        # all heads in one batched score / softmax / value pass
        qh = q.astype(bf16).reshape(Sp, N_HEAD, dh).transpose(1, 0, 2)   # [H, Sp, dh]
        kh = k.astype(bf16).reshape(Sp, N_HEAD, dh).transpose(1, 0, 2)
        vh = v.astype(bf16).reshape(Sp, N_HEAD, dh).transpose(1, 0, 2)
        s = jnp.einsum("hqd,hkd->hqk", qh, kh,
                       preferred_element_type=f32) * scale + att_bias[None]
        m = jnp.max(s, axis=-1, keepdims=True)
        e = jnp.exp(s - m)
        p = e * pl.reciprocal(jnp.sum(e, axis=-1, keepdims=True), approx=True)
        o = jnp.einsum("hqk,hkd->hqd", p.astype(bf16), vh,
                       preferred_element_type=f32)              # [H, Sp, dh]
        o = o.astype(bf16).transpose(1, 0, 2).reshape(Sp, Dm)   # lane-dense [Sp, D]
        h = h + mm(o, w_o_ref[l]) + b_o_ref[l]                  # single output proj

        hn2 = layer_norm(h, ln2_g_ref[l], ln2_b_ref[l])
        fc = jax.nn.gelu(mm(hn2, w_fc_ref[l]) + b_fc_ref[l],
                         approximate=True)                      # GPT-2 "gelu_new"
        h = h + mm(fc, w_pr_ref[l]) + b_pr_ref[l]

    hf = layer_norm(h, ln_f_g_ref[...], ln_f_b_ref[...])

    # ----- tied LM head (no explicit transpose of wte) + shifted CE, fused -----
    logits = jnp.einsum("sd,vd->sv", hf.astype(bf16), wte_ref[...],
                        preferred_element_type=f32)             # [Sp, V]
    targets = tgt_ref[0, 0]                                     # [Sp] int32 (shifted)
    mx = jnp.max(logits, axis=-1, keepdims=True)
    lse = jnp.log(jnp.sum(jnp.exp(logits - mx), axis=-1, keepdims=True)) + mx
    hit = lax.broadcasted_iota(jnp.int32, (Sp, V), 1) == targets[:, None]
    tgt_logit = jnp.sum(jnp.where(hit, logits, 0.0), axis=-1, keepdims=True)
    valid = targets[:, None] != IGNORE_INDEX
    loss_sum = jnp.sum(jnp.where(valid, lse - tgt_logit, 0.0))
    cnt = jnp.sum(valid.astype(f32))
    lsum_ref[0] = jnp.broadcast_to(loss_sum, (8, 128))
    cnt_ref[0] = jnp.broadcast_to(cnt, (8, 128))


# --------------------------------- parameters --------------------------------
def init_params(key):
    keys = jax.random.split(key, 4 + N_LAYER)
    bf16 = jnp.bfloat16

    def w(k, shape, scale=0.02):
        return scale * jax.random.normal(k, shape, jnp.float32)

    params = {
        "vis_w": w(keys[0], (C_IN, VISION_DIM)).astype(bf16),
        "vis_b": jnp.zeros((1, VISION_DIM), jnp.float32),
        "proj_w": w(keys[1], (VISION_DIM, D_MODEL)).astype(bf16),  # Linear(2048->768)
        "proj_b": jnp.zeros((1, D_MODEL), jnp.float32),
        "wte": w(keys[2], (VOCAB, D_MODEL)).astype(bf16),
        "wpe": w(keys[3], (MAX_POS, D_MODEL), 0.01),               # additive, keep f32
        "ln_f_g": jnp.ones((1, D_MODEL), jnp.float32),
        "ln_f_b": jnp.zeros((1, D_MODEL), jnp.float32),
    }
    w_qkv, w_o, w_fc, w_pr = [], [], [], []
    for i in range(N_LAYER):
        lk = jax.random.split(keys[4 + i], 4)
        w_qkv.append(w(lk[0], (3, D_MODEL, D_MODEL)))
        w_o.append(w(lk[1], (D_MODEL, D_MODEL)))
        w_fc.append(w(lk[2], (D_MODEL, D_MLP)))
        w_pr.append(w(lk[3], (D_MLP, D_MODEL)))
    params.update({
        "ln1_g": jnp.ones((N_LAYER, 1, D_MODEL), jnp.float32),
        "ln1_b": jnp.zeros((N_LAYER, 1, D_MODEL), jnp.float32),
        "w_qkv": jnp.stack(w_qkv).astype(bf16),                  # [L, 3, D, D]
        "b_qkv": jnp.zeros((N_LAYER, 3, 1, D_MODEL), jnp.float32),
        "w_o": jnp.stack(w_o).astype(bf16),
        "b_o": jnp.zeros((N_LAYER, 1, D_MODEL), jnp.float32),
        "ln2_g": jnp.ones((N_LAYER, 1, D_MODEL), jnp.float32),
        "ln2_b": jnp.zeros((N_LAYER, 1, D_MODEL), jnp.float32),
        "w_fc": jnp.stack(w_fc).astype(bf16),
        "b_fc": jnp.zeros((N_LAYER, 1, D_MLP), jnp.float32),
        "w_pr": jnp.stack(w_pr).astype(bf16),
        "b_pr": jnp.zeros((N_LAYER, 1, D_MODEL), jnp.float32),
    })
    return params


# --------------------------------- forward -----------------------------------
def vision_language_forward(params, image_nchw, caption_ids, attention_mask=None):
    b, c, hi, wi = image_nchw.shape
    t = caption_ids.shape[1]
    seq = t + 1                                      # +1 image-prefix token
    seq_pad = ((seq + 15) // 16) * 16                # full sublane tiles
    assert seq_pad <= MAX_POS
    pad_n = seq_pad - seq

    # NCHW -> pixels-as-rows, channels-last, bf16; vision encoder is under
    # torch.no_grad in the reference (forward-only here, stop_gradient is inert).
    x = jnp.transpose(image_nchw, (0, 2, 3, 1)).reshape(b, hi * wi, c)
    x = lax.stop_gradient(x).astype(jnp.bfloat16)

    caption_ids = caption_ids.astype(jnp.int32)
    # ids with the image-prefix slot and padding as -1 (never matches a vocab id)
    padded_ids = jnp.concatenate(
        [jnp.full((b, 1), -1, jnp.int32), caption_ids,
         jnp.full((b, pad_n), -1, jnp.int32)], axis=1)[:, None, :]        # [B,1,Sp]

    # shifted labels: logits at position j predict labels[j+1]
    # labels = [-100 prefix, caption, -100 padding]  ->  targets = [caption, -100...]
    targets = jnp.concatenate(
        [caption_ids, jnp.full((b, seq_pad - t), IGNORE_INDEX, jnp.int32)],
        axis=1)[:, None, :]                                               # [B,1,Sp]

    # key-padding additive bias (0 keep / -1e9 drop), prefix always kept, padding dropped
    if attention_mask is not None:
        prefix = jnp.ones((b, 1), attention_mask.dtype)
        updated = jnp.concatenate([prefix, attention_mask], axis=1).astype(jnp.float32)
        key_bias = (1.0 - updated) * NEG_INF
    else:
        key_bias = jnp.zeros((b, seq), jnp.float32)
    key_bias = jnp.concatenate(
        [key_bias, jnp.full((b, pad_n), NEG_INF, jnp.float32)], axis=1)[:, None, :]

    weight_names = ("vis_w", "vis_b", "proj_w", "proj_b", "wte", "wpe",
                    "ln1_g", "ln1_b", "w_qkv", "b_qkv", "w_o", "b_o",
                    "ln2_g", "ln2_b", "w_fc", "b_fc", "w_pr", "b_pr",
                    "ln_f_g", "ln_f_b")
    weights = [params[n] for n in weight_names]

    def full_spec(arr):   # whole weight resident, constant block index (fetched once)
        zeros = (0,) * arr.ndim
        return pl.BlockSpec(arr.shape, lambda bi, _z=zeros: _z)

    x_spec = pl.BlockSpec((1, hi * wi, c), lambda bi: (bi, 0, 0))
    seq_spec = pl.BlockSpec((1, 1, seq_pad), lambda bi: (bi, 0, 0))
    out_spec = pl.BlockSpec((1, 8, 128), lambda bi: (bi, 0, 0))

    lsum, cnt = pl.pallas_call(
        _vlm_forward_kernel,
        out_shape=(jax.ShapeDtypeStruct((b, 8, 128), jnp.float32),
                   jax.ShapeDtypeStruct((b, 8, 128), jnp.float32)),
        grid_spec=pltpu.PrefetchScalarGridSpec(
            num_scalar_prefetch=0,
            grid=(b,),
            in_specs=[x_spec, seq_spec, seq_spec, seq_spec]
                     + [full_spec(w) for w in weights],
            out_specs=[out_spec, out_spec]),
        compiler_params=pltpu.CompilerParams(dimension_semantics=("parallel",)),
    )(x, padded_ids, targets, key_bias, *weights)

    total = jnp.sum(lsum[:, 0, 0])
    count = jnp.sum(cnt[:, 0, 0])
    return total / jnp.maximum(count, 1.0)


# ----------------------------------- main -------------------------------------
if __name__ == "__main__":
    key = jax.random.PRNGKey(0)
    k_img, k_ids, k_param = jax.random.split(key, 3)

    image_tensor = jax.random.normal(k_img, (B, C_IN, H_IMG, W_IMG), jnp.float32)
    caption_ids = jax.random.randint(k_ids, (B, T_TXT), 0, VOCAB, dtype=jnp.int32)
    params = init_params(k_param)

    loss = jax.jit(vision_language_forward)(params, image_tensor, caption_ids)
    loss = jax.block_until_ready(loss)
    assert loss.shape == () and bool(jnp.isfinite(loss))
    print("KERNEL_OK")
</pallas_src>

<mosaic_0001>
module attributes {stable_mosaic.version = 11 : i64} {
  func.func @_vlm_forward_kernel(%arg0: i32, %arg1: memref<1x256x4xbf16, #tpu.memory_space<vmem>>, %arg2: memref<1x1x16xi32, #tpu.memory_space<vmem>>, %arg3: memref<1x1x16xi32, #tpu.memory_space<vmem>>, %arg4: memref<1x1x16xf32, #tpu.memory_space<vmem>>, %arg5: memref<4x64xbf16, #tpu.memory_space<vmem>>, %arg6: memref<1x64xf32, #tpu.memory_space<vmem>>, %arg7: memref<64x32xbf16, #tpu.memory_space<vmem>>, %arg8: memref<1x32xf32, #tpu.memory_space<vmem>>, %arg9: memref<128x32xbf16, #tpu.memory_space<vmem>>, %arg10: memref<32x32xf32, #tpu.memory_space<vmem>>, %arg11: memref<2x1x32xf32, #tpu.memory_space<vmem>>, %arg12: memref<2x1x32xf32, #tpu.memory_space<vmem>>, %arg13: memref<2x3x32x32xbf16, #tpu.memory_space<vmem>>, %arg14: memref<2x3x1x32xf32, #tpu.memory_space<vmem>>, %arg15: memref<2x32x32xbf16, #tpu.memory_space<vmem>>, %arg16: memref<2x1x32xf32, #tpu.memory_space<vmem>>, %arg17: memref<2x1x32xf32, #tpu.memory_space<vmem>>, %arg18: memref<2x1x32xf32, #tpu.memory_space<vmem>>, %arg19: memref<2x32x128xbf16, #tpu.memory_space<vmem>>, %arg20: memref<2x1x128xf32, #tpu.memory_space<vmem>>, %arg21: memref<2x128x32xbf16, #tpu.memory_space<vmem>>, %arg22: memref<2x1x32xf32, #tpu.memory_space<vmem>>, %arg23: memref<1x32xf32, #tpu.memory_space<vmem>>, %arg24: memref<1x32xf32, #tpu.memory_space<vmem>>, %arg25: memref<1x8x128xf32, #tpu.memory_space<vmem>>, %arg26: memref<1x8x128xf32, #tpu.memory_space<vmem>>) attributes {dimension_semantics = [#tpu.dimension_semantics<parallel>], iteration_bounds = array<i64: 2>, scalar_prefetch = 0 : i64, scratch_operands = 0 : i64, tpu.core_type = #tpu.core_type<tc>, window_params = [{transform_indices = @transform_0, window_bounds = array<i64: 1, 256, 4>}, {transform_indices = @transform_1, window_bounds = array<i64: 1, 1, 16>}, {transform_indices = @transform_2, window_bounds = array<i64: 1, 1, 16>}, {transform_indices = @transform_3, window_bounds = array<i64: 1, 1, 16>}, {pipeline_mode = #tpu.pipeline_mode<synchronous>, transform_indices = @transform_4, window_bounds = array<i64: 4, 64>}, {pipeline_mode = #tpu.pipeline_mode<synchronous>, transform_indices = @transform_5, window_bounds = array<i64: 1, 64>}, {pipeline_mode = #tpu.pipeline_mode<synchronous>, transform_indices = @transform_6, window_bounds = array<i64: 64, 32>}, {pipeline_mode = #tpu.pipeline_mode<synchronous>, transform_indices = @transform_7, window_bounds = array<i64: 1, 32>}, {pipeline_mode = #tpu.pipeline_mode<synchronous>, transform_indices = @transform_8, window_bounds = array<i64: 128, 32>}, {pipeline_mode = #tpu.pipeline_mode<synchronous>, transform_indices = @transform_9, window_bounds = array<i64: 32, 32>}, {pipeline_mode = #tpu.pipeline_mode<synchronous>, transform_indices = @transform_10, window_bounds = array<i64: 2, 1, 32>}, {pipeline_mode = #tpu.pipeline_mode<synchronous>, transform_indices = @transform_11, window_bounds = array<i64: 2, 1, 32>}, {pipeline_mode = #tpu.pipeline_mode<synchronous>, transform_indices = @transform_12, window_bounds = array<i64: 2, 3, 32, 32>}, {pipeline_mode = #tpu.pipeline_mode<synchronous>, transform_indices = @transform_13, window_bounds = array<i64: 2, 3, 1, 32>}, {pipeline_mode = #tpu.pipeline_mode<synchronous>, transform_indices = @transform_14, window_bounds = array<i64: 2, 32, 32>}, {pipeline_mode = #tpu.pipeline_mode<synchronous>, transform_indices = @transform_15, window_bounds = array<i64: 2, 1, 32>}, {pipeline_mode = #tpu.pipeline_mode<synchronous>, transform_indices = @transform_16, window_bounds = array<i64: 2, 1, 32>}, {pipeline_mode = #tpu.pipeline_mode<synchronous>, transform_indices = @transform_17, window_bounds = array<i64: 2, 1, 32>}, {pipeline_mode = #tpu.pipeline_mode<synchronous>, transform_indices = @transform_18, window_bounds = array<i64: 2, 32, 128>}, {pipeline_mode = #tpu.pipeline_mode<synchronous>, transform_indices = @transform_19, window_bounds = array<i64: 2, 1, 128>}, {pipeline_mode = #tpu.pipeline_mode<synchronous>, transform_indices = @transform_20, window_bounds = array<i64: 2, 128, 32>}, {pipeline_mode = #tpu.pipeline_mode<synchronous>, transform_indices = @transform_21, window_bounds = array<i64: 2, 1, 32>}, {pipeline_mode = #tpu.pipeline_mode<synchronous>, transform_indices = @transform_22, window_bounds = array<i64: 1, 32>}, {pipeline_mode = #tpu.pipeline_mode<synchronous>, transform_indices = @transform_23, window_bounds = array<i64: 1, 32>}, {transform_indices = @transform_24, window_bounds = array<i64: 1, 8, 128>}, {transform_indices = @transform_25, window_bounds = array<i64: 1, 8, 128>}]} {
    %c0 = arith.constant 0 : index
    %c0_0 = arith.constant 0 : index
    %c0_1 = arith.constant 0 : index
    %0 = vector.load %arg1[%c0, %c0_0, %c0_1] : memref<1x256x4xbf16, #tpu.memory_space<vmem>>, vector<1x256x4xbf16>
    %1 = vector.shape_cast %0 : vector<1x256x4xbf16> to vector<256x4xbf16>
    %c0_2 = arith.constant 0 : index
    %c0_3 = arith.constant 0 : index
    %2 = vector.load %arg5[%c0_2, %c0_3] : memref<4x64xbf16, #tpu.memory_space<vmem>>, vector<4x64xbf16>
    %cst = arith.constant dense<0.000000e+00> : vector<256x64xf32>
    %3 = tpu.matmul %1, %2, %cst {dimension_numbers = #tpu.dot_dimension_numbers<[1], [0], [0], [1], [0, 0, 1, 1], [], []>} : vector<256x4xbf16>, vector<4x64xbf16>, vector<256x64xf32> -> vector<256x64xf32>
    %c0_4 = arith.constant 0 : index
    %c0_5 = arith.constant 0 : index
    %4 = vector.load %arg6[%c0_4, %c0_5] : memref<1x64xf32, #tpu.memory_space<vmem>>, vector<1x64xf32>
    %5 = vector.broadcast %4 : vector<1x64xf32> to vector<256x64xf32>
    %6 = arith.addf %3, %5 : vector<256x64xf32>
    %cst_6 = arith.constant 0.000000e+00 : f32
    %7 = vector.broadcast %cst_6 : f32 to vector<256x64xf32>
    %8 = arith.maximumf %6, %7 : vector<256x64xf32>
    %cst_7 = arith.constant dense<0.000000e+00> : vector<64xf32>
    %9 = vector.multi_reduction <add>, %8, %cst_7 [0] : vector<256x64xf32> to vector<64xf32>
    %10 = vector.shape_cast %9 : vector<64xf32> to vector<1x64xf32>
    %cst_8 = arith.constant 2.560000e+02 : f32
    %11 = vector.broadcast %cst_8 : f32 to vector<1x64xf32>
    %12 = arith.divf %10, %11 : vector<1x64xf32>
    %c0_9 = arith.constant 0 : index
    %c0_10 = arith.constant 0 : index
    %13 = vector.load %arg7[%c0_9, %c0_10] : memref<64x32xbf16, #tpu.memory_space<vmem>>, vector<64x32xbf16>
    %14 = arith.truncf %12 : vector<1x64xf32> to vector<1x64xbf16>
    %cst_11 = arith.constant dense<0.000000e+00> : vector<1x32xf32>
    %15 = tpu.matmul %14, %13, %cst_11 {dimension_numbers = #tpu.dot_dimension_numbers<[1], [0], [0], [1], [0, 0, 1, 1], [], []>} : vector<1x64xbf16>, vector<64x32xbf16>, vector<1x32xf32> -> vector<1x32xf32>
    %c0_12 = arith.constant 0 : index
    %c0_13 = arith.constant 0 : index
    %16 = vector.load %arg8[%c0_12, %c0_13] : memref<1x32xf32, #tpu.memory_space<vmem>>, vector<1x32xf32>
    %17 = arith.addf %15, %16 : vector<1x32xf32>
    %c0_14 = arith.constant 0 : index
    %c0_15 = arith.constant 0 : index
    %c0_16 = arith.constant 0 : index
    %18 = vector.load %arg2[%c0_14, %c0_15, %c0_16] : memref<1x1x16xi32, #tpu.memory_space<vmem>>, vector<1x1x16xi32>
    %19 = vector.shape_cast %18 : vector<1x1x16xi32> to vector<16xi32>
    %20 = vector.shape_cast %19 : vector<16xi32> to vector<16x1xi32>
    %21 = tpu.iota {dimensions = array<i32: 1>} : vector<16x128xi32>
    %22 = vector.broadcast %20 : vector<16x1xi32> to vector<16x128xi32>
    %23 = arith.cmpi eq, %22, %21 : vector<16x128xi32>
    %24 = arith.extui %23 : vector<16x128xi1> to vector<16x128xi32>
    %25 = arith.sitofp %24 : vector<16x128xi32> to vector<16x128xf32>
    %26 = arith.truncf %25 : vector<16x128xf32> to vector<16x128xbf16>
    %c0_17 = arith.constant 0 : index
    %c0_18 = arith.constant 0 : index
    %27 = vector.load %arg9[%c0_17, %c0_18] : memref<128x32xbf16, #tpu.memory_space<vmem>>, vector<128x32xbf16>
    %cst_19 = arith.constant dense<0.000000e+00> : vector<16x32xf32>
    %28 = tpu.matmul %26, %27, %cst_19 {dimension_numbers = #tpu.dot_dimension_numbers<[1], [0], [0], [1], [0, 0, 1, 1], [], []>} : vector<16x128xbf16>, vector<128x32xbf16>, vector<16x32xf32> -> vector<16x32xf32>
    %29 = tpu.iota {dimensions = array<i32: 0>} : vector<16x1xi32>
    %c0_i32 = arith.constant 0 : i32
    %30 = vector.broadcast %c0_i32 : i32 to vector<16x1xi32>
    %31 = arith.cmpi eq, %29, %30 : vector<16x1xi32>
    %cst_20 = arith.constant 0.000000e+00 : f32
    %32 = vector.shape_cast %31 : vector<16x1xi1> to vector<16x1xi1>
    %33 = vector.broadcast %32 : vector<16x1xi1> to vector<16x32xi1>
    %34 = vector.shape_cast %17 : vector<1x32xf32> to vector<1x32xf32>
    %35 = vector.broadcast %34 : vector<1x32xf32> to vector<16x32xf32>
    %36 = vector.broadcast %cst_20 : f32 to vector<16x32xf32>
    %37 = arith.select %33, %35, %36 : vector<16x32xi1>, vector<16x32xf32>
    %38 = arith.addf %28, %37 : vector<16x32xf32>
    %c0_21 = arith.constant 0 : index
    %c0_22 = arith.constant 0 : index
    %39 = vector.load %arg10[%c0_21, %c0_22] : memref<32x32xf32, #tpu.memory_space<vmem>>, vector<16x32xf32>
    %40 = arith.addf %38, %39 : vector<16x32xf32>
    %41 = tpu.iota {dimensions = array<i32: 0>} : vector<16x16xi32>
    %42 = tpu.iota {dimensions = array<i32: 1>} : vector<16x16xi32>
    %c0_23 = arith.constant 0 : index
    %c0_24 = arith.constant 0 : index
    %c0_25 = arith.constant 0 : index
    %43 = vector.load %arg4[%c0_23, %c0_24, %c0_25] : memref<1x1x16xf32, #tpu.memory_space<vmem>>, vector<1x1x16xf32>
    %44 = vector.shape_cast %43 : vector<1x1x16xf32> to vector<16xf32>
    %45 = arith.cmpi sle, %42, %41 : vector<16x16xi32>
    %46 = vector.shape_cast %44 : vector<16xf32> to vector<1x16xf32>
    %cst_26 = arith.constant -1.000000e+09 : f32
    %47 = vector.shape_cast %46 : vector<1x16xf32> to vector<1x16xf32>
    %48 = vector.broadcast %47 : vector<1x16xf32> to vector<16x16xf32>
    %49 = vector.broadcast %cst_26 : f32 to vector<16x16xf32>
    %50 = arith.select %45, %48, %49 : vector<16x16xi1>, vector<16x16xf32>
    %c0_27 = arith.constant 0 : index
    %c0_28 = arith.constant 0 : index
    %c0_29 = arith.constant 0 : index
    %51 = vector.load %arg11[%c0_27, %c0_28, %c0_29] : memref<2x1x32xf32, #tpu.memory_space<vmem>>, vector<1x1x32xf32>
    %52 = vector.shape_cast %51 : vector<1x1x32xf32> to vector<1x32xf32>
    %c0_30 = arith.constant 0 : index
    %c0_31 = arith.constant 0 : index
    %c0_32 = arith.constant 0 : index
    %53 = vector.load %arg12[%c0_30, %c0_31, %c0_32] : memref<2x1x32xf32, #tpu.memory_space<vmem>>, vector<1x1x32xf32>
    %54 = vector.shape_cast %53 : vector<1x1x32xf32> to vector<1x32xf32>
    %cst_33 = arith.constant dense<0.000000e+00> : vector<16xf32>
    %55 = vector.multi_reduction <add>, %40, %cst_33 [1] : vector<16x32xf32> to vector<16xf32>
    %56 = vector.shape_cast %55 : vector<16xf32> to vector<16x1xf32>
    %cst_34 = arith.constant 3.200000e+01 : f32
    %57 = vector.broadcast %cst_34 : f32 to vector<16x1xf32>
    %58 = arith.divf %56, %57 : vector<16x1xf32>
    %59 = vector.broadcast %58 : vector<16x1xf32> to vector<16x32xf32>
    %60 = arith.subf %40, %59 : vector<16x32xf32>
    %61 = arith.mulf %60, %60 : vector<16x32xf32>
    %cst_35 = arith.constant dense<0.000000e+00> : vector<16xf32>
    %62 = vector.multi_reduction <add>, %61, %cst_35 [1] : vector<16x32xf32> to vector<16xf32>
    %63 = vector.shape_cast %62 : vector<16xf32> to vector<16x1xf32>
    %cst_36 = arith.constant 3.200000e+01 : f32
    %64 = vector.broadcast %cst_36 : f32 to vector<16x1xf32>
    %65 = arith.divf %63, %64 : vector<16x1xf32>
    %66 = vector.broadcast %58 : vector<16x1xf32> to vector<16x32xf32>
    %67 = arith.subf %40, %66 : vector<16x32xf32>
    %cst_37 = arith.constant 9.99999974E-6 : f32
    %68 = vector.broadcast %cst_37 : f32 to vector<16x1xf32>
    %69 = arith.addf %65, %68 : vector<16x1xf32>
    %70 = math.rsqrt %69 : vector<16x1xf32>
    %71 = vector.broadcast %70 : vector<16x1xf32> to vector<16x32xf32>
    %72 = arith.mulf %67, %71 : vector<16x32xf32>
    %73 = vector.broadcast %52 : vector<1x32xf32> to vector<16x32xf32>
    %74 = arith.mulf %72, %73 : vector<16x32xf32>
    %75 = vector.broadcast %54 : vector<1x32xf32> to vector<16x32xf32>
    %76 = arith.addf %74, %75 : vector<16x32xf32>
    %c0_38 = arith.constant 0 : index
    %c0_39 = arith.constant 0 : index
    %c0_40 = arith.constant 0 : index
    %c0_41 = arith.constant 0 : index
    %77 = vector.load %arg13[%c0_38, %c0_39, %c0_40, %c0_41] : memref<2x3x32x32xbf16, #tpu.memory_space<vmem>>, vector<1x1x32x32xbf16>
    %78 = vector.shape_cast %77 : vector<1x1x32x32xbf16> to vector<32x32xbf16>
    %79 = arith.truncf %76 : vector<16x32xf32> to vector<16x32xbf16>
    %cst_42 = arith.constant dense<0.000000e+00> : vector<16x32xf32>
    %80 = tpu.matmul %79, %78, %cst_42 {dimension_numbers = #tpu.dot_dimension_numbers<[1], [0], [0], [1], [0, 0, 1, 1], [], []>} : vector<16x32xbf16>, vector<32x32xbf16>, vector<16x32xf32> -> vector<16x32xf32>
    %c0_43 = arith.constant 0 : index
    %c0_44 = arith.constant 0 : index
    %c0_45 = arith.constant 0 : index
    %c0_46 = arith.constant 0 : index
    %81 = vector.load %arg14[%c0_43, %c0_44, %c0_45, %c0_46] : memref<2x3x1x32xf32, #tpu.memory_space<vmem>>, vector<1x1x1x32xf32>
    %82 = vector.shape_cast %81 : vector<1x1x1x32xf32> to vector<1x32xf32>
    %83 = vector.broadcast %82 : vector<1x32xf32> to vector<16x32xf32>
    %84 = arith.addf %80, %83 : vector<16x32xf32>
    %c0_47 = arith.constant 0 : index
    %c1 = arith.constant 1 : index
    %c0_48 = arith.constant 0 : index
    %c0_49 = arith.constant 0 : index
    %85 = vector.load %arg13[%c0_47, %c1, %c0_48, %c0_49] : memref<2x3x32x32xbf16, #tpu.memory_space<vmem>>, vector<1x1x32x32xbf16>
    %86 = vector.shape_cast %85 : vector<1x1x32x32xbf16> to vector<32x32xbf16>
    %87 = arith.truncf %76 : vector<16x32xf32> to vector<16x32xbf16>
    %cst_50 = arith.constant dense<0.000000e+00> : vector<16x32xf32>
    %88 = tpu.matmul %87, %86, %cst_50 {dimension_numbers = #tpu.dot_dimension_numbers<[1], [0], [0], [1], [0, 0, 1, 1], [], []>} : vector<16x32xbf16>, vector<32x32xbf16>, vector<16x32xf32> -> vector<16x32xf32>
    %c0_51 = arith.constant 0 : index
    %c1_52 = arith.constant 1 : index
    %c0_53 = arith.constant 0 : index
    %c0_54 = arith.constant 0 : index
    %89 = vector.load %arg14[%c0_51, %c1_52, %c0_53, %c0_54] : memref<2x3x1x32xf32, #tpu.memory_space<vmem>>, vector<1x1x1x32xf32>
    %90 = vector.shape_cast %89 : vector<1x1x1x32xf32> to vector<1x32xf32>
    %91 = vector.broadcast %90 : vector<1x32xf32> to vector<16x32xf32>
    %92 = arith.addf %88, %91 : vector<16x32xf32>
    %c0_55 = arith.constant 0 : index
    %c2 = arith.constant 2 : index
    %c0_56 = arith.constant 0 : index
    %c0_57 = arith.constant 0 : index
    %93 = vector.load %arg13[%c0_55, %c2, %c0_56, %c0_57] : memref<2x3x32x32xbf16, #tpu.memory_space<vmem>>, vector<1x1x32x32xbf16>
    %94 = vector.shape_cast %93 : vector<1x1x32x32xbf16> to vector<32x32xbf16>
    %95 = arith.truncf %76 : vector<16x32xf32> to vector<16x32xbf16>
    %cst_58 = arith.constant dense<0.000000e+00> : vector<16x32xf32>
    %96 = tpu.matmul %95, %94, %cst_58 {dimension_numbers = #tpu.dot_dimension_numbers<[1], [0], [0], [1], [0, 0, 1, 1], [], []>} : vector<16x32xbf16>, vector<32x32xbf16>, vector<16x32xf32> -> vector<16x32xf32>
    %c0_59 = arith.constant 0 : index
    %c2_60 = arith.constant 2 : index
    %c0_61 = arith.constant 0 : index
    %c0_62 = arith.constant 0 : index
    %97 = vector.load %arg14[%c0_59, %c2_60, %c0_61, %c0_62] : memref<2x3x1x32xf32, #tpu.memory_space<vmem>>, vector<1x1x1x32xf32>
    %98 = vector.shape_cast %97 : vector<1x1x1x32xf32> to vector<1x32xf32>
    %99 = vector.broadcast %98 : vector<1x32xf32> to vector<16x32xf32>
    %100 = arith.addf %96, %99 : vector<16x32xf32>
    %101 = arith.truncf %84 : vector<16x32xf32> to vector<16x32xbf16>
    %102 = vector.shape_cast %101 : vector<16x32xbf16> to vector<16x4x8xbf16>
    %103 = tpu.transpose %102, [1, 0, 2] : vector<16x4x8xbf16> -> vector<4x16x8xbf16>
    %104 = arith.truncf %92 : vector<16x32xf32> to vector<16x32xbf16>
    %105 = vector.shape_cast %104 : vector<16x32xbf16> to vector<16x4x8xbf16>
    %106 = tpu.transpose %105, [1, 0, 2] : vector<16x4x8xbf16> -> vector<4x16x8xbf16>
    %107 = arith.truncf %100 : vector<16x32xf32> to vector<16x32xbf16>
    %108 = vector.shape_cast %107 : vector<16x32xbf16> to vector<16x4x8xbf16>
    %109 = tpu.transpose %108, [1, 0, 2] : vector<16x4x8xbf16> -> vector<4x16x8xbf16>
    "tpu.trace_start"() <{level = 10 : i32, message = "hqd,hkd->hqk"}> : () -> ()
    %cst_63 = arith.constant dense<0.000000e+00> : vector<4x16x16xf32>
    %110 = tpu.matmul %103, %106, %cst_63 {dimension_numbers = #tpu.dot_dimension_numbers<[2], [2], [1], [1], [0, 0, 0, 1, 1, 1], [0], [0]>} : vector<4x16x8xbf16>, vector<4x16x8xbf16>, vector<4x16x16xf32> -> vector<4x16x16xf32>
    "tpu.trace_stop"() : () -> ()
    %cst_64 = arith.constant 0.353553385 : f32
    %111 = vector.broadcast %cst_64 : f32 to vector<4x16x16xf32>
    %112 = arith.mulf %110, %111 : vector<4x16x16xf32>
    %113 = vector.shape_cast %50 : vector<16x16xf32> to vector<1x16x16xf32>
    %114 = vector.broadcast %113 : vector<1x16x16xf32> to vector<4x16x16xf32>
    %115 = arith.addf %112, %114 : vector<4x16x16xf32>
    %cst_65 = arith.constant dense<0xFF800000> : vector<4x16xf32>
    %116 = vector.multi_reduction <maximumf>, %115, %cst_65 [2] : vector<4x16x16xf32> to vector<4x16xf32>
    %117 = vector.shape_cast %116 : vector<4x16xf32> to vector<4x16x1xf32>
    %118 = vector.broadcast %117 : vector<4x16x1xf32> to vector<4x16x16xf32>
    %119 = arith.subf %115, %118 : vector<4x16x16xf32>
    %120 = math.exp %119 : vector<4x16x16xf32>
    %cst_66 = arith.constant dense<0.000000e+00> : vector<4x16xf32>
    %121 = vector.multi_reduction <add>, %120, %cst_66 [2] : vector<4x16x16xf32> to vector<4x16xf32>
    %122 = vector.shape_cast %121 : vector<4x16xf32> to vector<4x16x1xf32>
    %123 = tpu.reciprocal %122 {approx = true} : vector<4x16x1xf32> -> vector<4x16x1xf32>
    %124 = vector.broadcast %123 : vector<4x16x1xf32> to vector<4x16x16xf32>
    %125 = arith.mulf %120, %124 : vector<4x16x16xf32>
    %126 = arith.truncf %125 : vector<4x16x16xf32> to vector<4x16x16xbf16>
    "tpu.trace_start"() <{level = 10 : i32, message = "hqk,hkd->hqd"}> : () -> ()
    %cst_67 = arith.constant dense<0.000000e+00> : vector<4x16x8xf32>
    %127 = tpu.matmul %126, %109, %cst_67 {dimension_numbers = #tpu.dot_dimension_numbers<[2], [1], [1], [2], [0, 0, 0, 1, 1, 2], [0], [0]>} : vector<4x16x16xbf16>, vector<4x16x8xbf16>, vector<4x16x8xf32> -> vector<4x16x8xf32>
    "tpu.trace_stop"() : () -> ()
    %128 = arith.truncf %127 : vector<4x16x8xf32> to vector<4x16x8xbf16>
    %129 = tpu.transpose %128, [1, 0, 2] : vector<4x16x8xbf16> -> vector<16x4x8xbf16>
    %130 = vector.shape_cast %129 : vector<16x4x8xbf16> to vector<16x32xbf16>
    %c0_68 = arith.constant 0 : index
    %c0_69 = arith.constant 0 : index
    %c0_70 = arith.constant 0 : index
    %131 = vector.load %arg15[%c0_68, %c0_69, %c0_70] : memref<2x32x32xbf16, #tpu.memory_space<vmem>>, vector<1x32x32xbf16>
    %132 = vector.shape_cast %131 : vector<1x32x32xbf16> to vector<32x32xbf16>
    %cst_71 = arith.constant dense<0.000000e+00> : vector<16x32xf32>
    %133 = tpu.matmul %130, %132, %cst_71 {dimension_numbers = #tpu.dot_dimension_numbers<[1], [0], [0], [1], [0, 0, 1, 1], [], []>} : vector<16x32xbf16>, vector<32x32xbf16>, vector<16x32xf32> -> vector<16x32xf32>
    %134 = arith.addf %40, %133 : vector<16x32xf32>
    %c0_72 = arith.constant 0 : index
    %c0_73 = arith.constant 0 : index
    %c0_74 = arith.constant 0 : index
    %135 = vector.load %arg16[%c0_72, %c0_73, %c0_74] : memref<2x1x32xf32, #tpu.memory_space<vmem>>, vector<1x1x32xf32>
    %136 = vector.shape_cast %135 : vector<1x1x32xf32> to vector<1x32xf32>
    %137 = vector.broadcast %136 : vector<1x32xf32> to vector<16x32xf32>
    %138 = arith.addf %134, %137 : vector<16x32xf32>
    %c0_75 = arith.constant 0 : index
    %c0_76 = arith.constant 0 : index
    %c0_77 = arith.constant 0 : index
    %139 = vector.load %arg17[%c0_75, %c0_76, %c0_77] : memref<2x1x32xf32, #tpu.memory_space<vmem>>, vector<1x1x32xf32>
    %140 = vector.shape_cast %139 : vector<1x1x32xf32> to vector<1x32xf32>
    %c0_78 = arith.constant 0 : index
    %c0_79 = arith.constant 0 : index
    %c0_80 = arith.constant 0 : index
    %141 = vector.load %arg18[%c0_78, %c0_79, %c0_80] : memref<2x1x32xf32, #tpu.memory_space<vmem>>, vector<1x1x32xf32>
    %142 = vector.shape_cast %141 : vector<1x1x32xf32> to vector<1x32xf32>
    %cst_81 = arith.constant dense<0.000000e+00> : vector<16xf32>
    %143 = vector.multi_reduction <add>, %138, %cst_81 [1] : vector<16x32xf32> to vector<16xf32>
    %144 = vector.shape_cast %143 : vector<16xf32> to vector<16x1xf32>
    %cst_82 = arith.constant 3.200000e+01 : f32
    %145 = vector.broadcast %cst_82 : f32 to vector<16x1xf32>
    %146 = arith.divf %144, %145 : vector<16x1xf32>
    %147 = vector.broadcast %146 : vector<16x1xf32> to vector<16x32xf32>
    %148 = arith.subf %138, %147 : vector<16x32xf32>
    %149 = arith.mulf %148, %148 : vector<16x32xf32>
    %cst_83 = arith.constant dense<0.000000e+00> : vector<16xf32>
    %150 = vector.multi_reduction <add>, %149, %cst_83 [1] : vector<16x32xf32> to vector<16xf32>
    %151 = vector.shape_cast %150 : vector<16xf32> to vector<16x1xf32>
    %cst_84 = arith.constant 3.200000e+01 : f32
    %152 = vector.broadcast %cst_84 : f32 to vector<16x1xf32>
    %153 = arith.divf %151, %152 : vector<16x1xf32>
    %154 = vector.broadcast %146 : vector<16x1xf32> to vector<16x32xf32>
    %155 = arith.subf %138, %154 : vector<16x32xf32>
    %cst_85 = arith.constant 9.99999974E-6 : f32
    %156 = vector.broadcast %cst_85 : f32 to vector<16x1xf32>
    %157 = arith.addf %153, %156 : vector<16x1xf32>
    %158 = math.rsqrt %157 : vector<16x1xf32>
    %159 = vector.broadcast %158 : vector<16x1xf32> to vector<16x32xf32>
    %160 = arith.mulf %155, %159 : vector<16x32xf32>
    %161 = vector.broadcast %140 : vector<1x32xf32> to vector<16x32xf32>
    %162 = arith.mulf %160, %161 : vector<16x32xf32>
    %163 = vector.broadcast %142 : vector<1x32xf32> to vector<16x32xf32>
    %164 = arith.addf %162, %163 : vector<16x32xf32>
    %c0_86 = arith.constant 0 : index
    %c0_87 = arith.constant 0 : index
    %c0_88 = arith.constant 0 : index
    %165 = vector.load %arg19[%c0_86, %c0_87, %c0_88] : memref<2x32x128xbf16, #tpu.memory_space<vmem>>, vector<1x32x128xbf16>
    %166 = vector.shape_cast %165 : vector<1x32x128xbf16> to vector<32x128xbf16>
    %167 = arith.truncf %164 : vector<16x32xf32> to vector<16x32xbf16>
    %cst_89 = arith.constant dense<0.000000e+00> : vector<16x128xf32>
    %168 = tpu.matmul %167, %166, %cst_89 {dimension_numbers = #tpu.dot_dimension_numbers<[1], [0], [0], [1], [0, 0, 1, 1], [], []>} : vector<16x32xbf16>, vector<32x128xbf16>, vector<16x128xf32> -> vector<16x128xf32>
    %c0_90 = arith.constant 0 : index
    %c0_91 = arith.constant 0 : index
    %c0_92 = arith.constant 0 : index
    %169 = vector.load %arg20[%c0_90, %c0_91, %c0_92] : memref<2x1x128xf32, #tpu.memory_space<vmem>>, vector<1x1x128xf32>
    %170 = vector.shape_cast %169 : vector<1x1x128xf32> to vector<1x128xf32>
    %171 = vector.broadcast %170 : vector<1x128xf32> to vector<16x128xf32>
    %172 = arith.addf %168, %171 : vector<16x128xf32>
    %173 = arith.mulf %172, %172 : vector<16x128xf32>
    %174 = arith.mulf %172, %173 : vector<16x128xf32>
    %cst_93 = arith.constant 4.471500e-02 : f32
    %175 = vector.broadcast %cst_93 : f32 to vector<16x128xf32>
    %176 = arith.mulf %175, %174 : vector<16x128xf32>
    %177 = arith.addf %172, %176 : vector<16x128xf32>
    %cst_94 = arith.constant 0.797884583 : f32
    %178 = vector.broadcast %cst_94 : f32 to vector<16x128xf32>
    %179 = arith.mulf %178, %177 : vector<16x128xf32>
    %180 = math.tanh %179 : vector<16x128xf32>
    %cst_95 = arith.constant 1.000000e+00 : f32
    %181 = vector.broadcast %cst_95 : f32 to vector<16x128xf32>
    %182 = arith.addf %181, %180 : vector<16x128xf32>
    %cst_96 = arith.constant 5.000000e-01 : f32
    %183 = vector.broadcast %cst_96 : f32 to vector<16x128xf32>
    %184 = arith.mulf %183, %182 : vector<16x128xf32>
    %185 = arith.mulf %172, %184 : vector<16x128xf32>
    %c0_97 = arith.constant 0 : index
    %c0_98 = arith.constant 0 : index
    %c0_99 = arith.constant 0 : index
    %186 = vector.load %arg21[%c0_97, %c0_98, %c0_99] : memref<2x128x32xbf16, #tpu.memory_space<vmem>>, vector<1x128x32xbf16>
    %187 = vector.shape_cast %186 : vector<1x128x32xbf16> to vector<128x32xbf16>
    %188 = arith.truncf %185 : vector<16x128xf32> to vector<16x128xbf16>
    %cst_100 = arith.constant dense<0.000000e+00> : vector<16x32xf32>
    %189 = tpu.matmul %188, %187, %cst_100 {dimension_numbers = #tpu.dot_dimension_numbers<[1], [0], [0], [1], [0, 0, 1, 1], [], []>} : vector<16x128xbf16>, vector<128x32xbf16>, vector<16x32xf32> -> vector<16x32xf32>
    %190 = arith.addf %138, %189 : vector<16x32xf32>
    %c0_101 = arith.constant 0 : index
    %c0_102 = arith.constant 0 : index
    %c0_103 = arith.constant 0 : index
    %191 = vector.load %arg22[%c0_101, %c0_102, %c0_103] : memref<2x1x32xf32, #tpu.memory_space<vmem>>, vector<1x1x32xf32>
    %192 = vector.shape_cast %191 : vector<1x1x32xf32> to vector<1x32xf32>
    %193 = vector.broadcast %192 : vector<1x32xf32> to vector<16x32xf32>
    %194 = arith.addf %190, %193 : vector<16x32xf32>
    %c1_104 = arith.constant 1 : index
    %c0_105 = arith.constant 0 : index
    %c0_106 = arith.constant 0 : index
    %195 = vector.load %arg11[%c1_104, %c0_105, %c0_106] : memref<2x1x32xf32, #tpu.memory_space<vmem>>, vector<1x1x32xf32>
    %196 = vector.shape_cast %195 : vector<1x1x32xf32> to vector<1x32xf32>
    %c1_107 = arith.constant 1 : index
    %c0_108 = arith.constant 0 : index
    %c0_109 = arith.constant 0 : index
    %197 = vector.load %arg12[%c1_107, %c0_108, %c0_109] : memref<2x1x32xf32, #tpu.memory_space<vmem>>, vector<1x1x32xf32>
    %198 = vector.shape_cast %197 : vector<1x1x32xf32> to vector<1x32xf32>
    %cst_110 = arith.constant dense<0.000000e+00> : vector<16xf32>
    %199 = vector.multi_reduction <add>, %194, %cst_110 [1] : vector<16x32xf32> to vector<16xf32>
    %200 = vector.shape_cast %199 : vector<16xf32> to vector<16x1xf32>
    %cst_111 = arith.constant 3.200000e+01 : f32
    %201 = vector.broadcast %cst_111 : f32 to vector<16x1xf32>
    %202 = arith.divf %200, %201 : vector<16x1xf32>
    %203 = vector.broadcast %202 : vector<16x1xf32> to vector<16x32xf32>
    %204 = arith.subf %194, %203 : vector<16x32xf32>
    %205 = arith.mulf %204, %204 : vector<16x32xf32>
    %cst_112 = arith.constant dense<0.000000e+00> : vector<16xf32>
    %206 = vector.multi_reduction <add>, %205, %cst_112 [1] : vector<16x32xf32> to vector<16xf32>
    %207 = vector.shape_cast %206 : vector<16xf32> to vector<16x1xf32>
    %cst_113 = arith.constant 3.200000e+01 : f32
    %208 = vector.broadcast %cst_113 : f32 to vector<16x1xf32>
    %209 = arith.divf %207, %208 : vector<16x1xf32>
    %210 = vector.broadcast %202 : vector<16x1xf32> to vector<16x32xf32>
    %211 = arith.subf %194, %210 : vector<16x32xf32>
    %cst_114 = arith.constant 9.99999974E-6 : f32
    %212 = vector.broadcast %cst_114 : f32 to vector<16x1xf32>
    %213 = arith.addf %209, %212 : vector<16x1xf32>
    %214 = math.rsqrt %213 : vector<16x1xf32>
    %215 = vector.broadcast %214 : vector<16x1xf32> to vector<16x32xf32>
    %216 = arith.mulf %211, %215 : vector<16x32xf32>
    %217 = vector.broadcast %196 : vector<1x32xf32> to vector<16x32xf32>
    %218 = arith.mulf %216, %217 : vector<16x32xf32>
    %219 = vector.broadcast %198 : vector<1x32xf32> to vector<16x32xf32>
    %220 = arith.addf %218, %219 : vector<16x32xf32>
    %c1_115 = arith.constant 1 : index
    %c0_116 = arith.constant 0 : index
    %c0_117 = arith.constant 0 : index
    %c0_118 = arith.constant 0 : index
    %221 = vector.load %arg13[%c1_115, %c0_116, %c0_117, %c0_118] : memref<2x3x32x32xbf16, #tpu.memory_space<vmem>>, vector<1x1x32x32xbf16>
    %222 = vector.shape_cast %221 : vector<1x1x32x32xbf16> to vector<32x32xbf16>
    %223 = arith.truncf %220 : vector<16x32xf32> to vector<16x32xbf16>
    %cst_119 = arith.constant dense<0.000000e+00> : vector<16x32xf32>
    %224 = tpu.matmul %223, %222, %cst_119 {dimension_numbers = #tpu.dot_dimension_numbers<[1], [0], [0], [1], [0, 0, 1, 1], [], []>} : vector<16x32xbf16>, vector<32x32xbf16>, vector<16x32xf32> -> vector<16x32xf32>
    %c1_120 = arith.constant 1 : index
    %c0_121 = arith.constant 0 : index
    %c0_122 = arith.constant 0 : index
    %c0_123 = arith.constant 0 : index
    %225 = vector.load %arg14[%c1_120, %c0_121, %c0_122, %c0_123] : memref<2x3x1x32xf32, #tpu.memory_space<vmem>>, vector<1x1x1x32xf32>
    %226 = vector.shape_cast %225 : vector<1x1x1x32xf32> to vector<1x32xf32>
    %227 = vector.broadcast %226 : vector<1x32xf32> to vector<16x32xf32>
    %228 = arith.addf %224, %227 : vector<16x32xf32>
    %c1_124 = arith.constant 1 : index
    %c1_125 = arith.constant 1 : index
    %c0_126 = arith.constant 0 : index
    %c0_127 = arith.constant 0 : index
    %229 = vector.load %arg13[%c1_124, %c1_125, %c0_126, %c0_127] : memref<2x3x32x32xbf16, #tpu.memory_space<vmem>>, vector<1x1x32x32xbf16>
    %230 = vector.shape_cast %229 : vector<1x1x32x32xbf16> to vector<32x32xbf16>
    %231 = arith.truncf %220 : vector<16x32xf32> to vector<16x32xbf16>
    %cst_128 = arith.constant dense<0.000000e+00> : vector<16x32xf32>
    %232 = tpu.matmul %231, %230, %cst_128 {dimension_numbers = #tpu.dot_dimension_numbers<[1], [0], [0], [1], [0, 0, 1, 1], [], []>} : vector<16x32xbf16>, vector<32x32xbf16>, vector<16x32xf32> -> vector<16x32xf32>
    %c1_129 = arith.constant 1 : index
    %c1_130 = arith.constant 1 : index
    %c0_131 = arith.constant 0 : index
    %c0_132 = arith.constant 0 : index
    %233 = vector.load %arg14[%c1_129, %c1_130, %c0_131, %c0_132] : memref<2x3x1x32xf32, #tpu.memory_space<vmem>>, vector<1x1x1x32xf32>
    %234 = vector.shape_cast %233 : vector<1x1x1x32xf32> to vector<1x32xf32>
    %235 = vector.broadcast %234 : vector<1x32xf32> to vector<16x32xf32>
    %236 = arith.addf %232, %235 : vector<16x32xf32>
    %c1_133 = arith.constant 1 : index
    %c2_134 = arith.constant 2 : index
    %c0_135 = arith.constant 0 : index
    %c0_136 = arith.constant 0 : index
    %237 = vector.load %arg13[%c1_133, %c2_134, %c0_135, %c0_136] : memref<2x3x32x32xbf16, #tpu.memory_space<vmem>>, vector<1x1x32x32xbf16>
    %238 = vector.shape_cast %237 : vector<1x1x32x32xbf16> to vector<32x32xbf16>
    %239 = arith.truncf %220 : vector<16x32xf32> to vector<16x32xbf16>
    %cst_137 = arith.constant dense<0.000000e+00> : vector<16x32xf32>
    %240 = tpu.matmul %239, %238, %cst_137 {dimension_numbers = #tpu.dot_dimension_numbers<[1], [0], [0], [1], [0, 0, 1, 1], [], []>} : vector<16x32xbf16>, vector<32x32xbf16>, vector<16x32xf32> -> vector<16x32xf32>
    %c1_138 = arith.constant 1 : index
    %c2_139 = arith.constant 2 : index
    %c0_140 = arith.constant 0 : index
    %c0_141 = arith.constant 0 : index
    %241 = vector.load %arg14[%c1_138, %c2_139, %c0_140, %c0_141] : memref<2x3x1x32xf32, #tpu.memory_space<vmem>>, vector<1x1x1x32xf32>
    %242 = vector.shape_cast %241 : vector<1x1x1x32xf32> to vector<1x32xf32>
    %243 = vector.broadcast %242 : vector<1x32xf32> to vector<16x32xf32>
    %244 = arith.addf %240, %243 : vector<16x32xf32>
    %245 = arith.truncf %228 : vector<16x32xf32> to vector<16x32xbf16>
    %246 = vector.shape_cast %245 : vector<16x32xbf16> to vector<16x4x8xbf16>
    %247 = tpu.transpose %246, [1, 0, 2] : vector<16x4x8xbf16> -> vector<4x16x8xbf16>
    %248 = arith.truncf %236 : vector<16x32xf32> to vector<16x32xbf16>
    %249 = vector.shape_cast %248 : vector<16x32xbf16> to vector<16x4x8xbf16>
    %250 = tpu.transpose %249, [1, 0, 2] : vector<16x4x8xbf16> -> vector<4x16x8xbf16>
    %251 = arith.truncf %244 : vector<16x32xf32> to vector<16x32xbf16>
    %252 = vector.shape_cast %251 : vector<16x32xbf16> to vector<16x4x8xbf16>
    %253 = tpu.transpose %252, [1, 0, 2] : vector<16x4x8xbf16> -> vector<4x16x8xbf16>
    "tpu.trace_start"() <{level = 10 : i32, message = "hqd,hkd->hqk"}> : () -> ()
    %cst_142 = arith.constant dense<0.000000e+00> : vector<4x16x16xf32>
    %254 = tpu.matmul %247, %250, %cst_142 {dimension_numbers = #tpu.dot_dimension_numbers<[2], [2], [1], [1], [0, 0, 0, 1, 1, 1], [0], [0]>} : vector<4x16x8xbf16>, vector<4x16x8xbf16>, vector<4x16x16xf32> -> vector<4x16x16xf32>
    "tpu.trace_stop"() : () -> ()
    %cst_143 = arith.constant 0.353553385 : f32
    %255 = vector.broadcast %cst_143 : f32 to vector<4x16x16xf32>
    %256 = arith.mulf %254, %255 : vector<4x16x16xf32>
    %257 = vector.shape_cast %50 : vector<16x16xf32> to vector<1x16x16xf32>
    %258 = vector.broadcast %257 : vector<1x16x16xf32> to vector<4x16x16xf32>
    %259 = arith.addf %256, %258 : vector<4x16x16xf32>
    %cst_144 = arith.constant dense<0xFF800000> : vector<4x16xf32>
    %260 = vector.multi_reduction <maximumf>, %259, %cst_144 [2] : vector<4x16x16xf32> to vector<4x16xf32>
    %261 = vector.shape_cast %260 : vector<4x16xf32> to vector<4x16x1xf32>
    %262 = vector.broadcast %261 : vector<4x16x1xf32> to vector<4x16x16xf32>
    %263 = arith.subf %259, %262 : vector<4x16x16xf32>
    %264 = math.exp %263 : vector<4x16x16xf32>
    %cst_145 = arith.constant dense<0.000000e+00> : vector<4x16xf32>
    %265 = vector.multi_reduction <add>, %264, %cst_145 [2] : vector<4x16x16xf32> to vector<4x16xf32>
    %266 = vector.shape_cast %265 : vector<4x16xf32> to vector<4x16x1xf32>
    %267 = tpu.reciprocal %266 {approx = true} : vector<4x16x1xf32> -> vector<4x16x1xf32>
    %268 = vector.broadcast %267 : vector<4x16x1xf32> to vector<4x16x16xf32>
    %269 = arith.mulf %264, %268 : vector<4x16x16xf32>
    %270 = arith.truncf %269 : vector<4x16x16xf32> to vector<4x16x16xbf16>
    "tpu.trace_start"() <{level = 10 : i32, message = "hqk,hkd->hqd"}> : () -> ()
    %cst_146 = arith.constant dense<0.000000e+00> : vector<4x16x8xf32>
    %271 = tpu.matmul %270, %253, %cst_146 {dimension_numbers = #tpu.dot_dimension_numbers<[2], [1], [1], [2], [0, 0, 0, 1, 1, 2], [0], [0]>} : vector<4x16x16xbf16>, vector<4x16x8xbf16>, vector<4x16x8xf32> -> vector<4x16x8xf32>
    "tpu.trace_stop"() : () -> ()
    %272 = arith.truncf %271 : vector<4x16x8xf32> to vector<4x16x8xbf16>
    %273 = tpu.transpose %272, [1, 0, 2] : vector<4x16x8xbf16> -> vector<16x4x8xbf16>
    %274 = vector.shape_cast %273 : vector<16x4x8xbf16> to vector<16x32xbf16>
    %c1_147 = arith.constant 1 : index
    %c0_148 = arith.constant 0 : index
    %c0_149 = arith.constant 0 : index
    %275 = vector.load %arg15[%c1_147, %c0_148, %c0_149] : memref<2x32x32xbf16, #tpu.memory_space<vmem>>, vector<1x32x32xbf16>
    %276 = vector.shape_cast %275 : vector<1x32x32xbf16> to vector<32x32xbf16>
    %cst_150 = arith.constant dense<0.000000e+00> : vector<16x32xf32>
    %277 = tpu.matmul %274, %276, %cst_150 {dimension_numbers = #tpu.dot_dimension_numbers<[1], [0], [0], [1], [0, 0, 1, 1], [], []>} : vector<16x32xbf16>, vector<32x32xbf16>, vector<16x32xf32> -> vector<16x32xf32>
    %278 = arith.addf %194, %277 : vector<16x32xf32>
    %c1_151 = arith.constant 1 : index
    %c0_152 = arith.constant 0 : index
    %c0_153 = arith.constant 0 : index
    %279 = vector.load %arg16[%c1_151, %c0_152, %c0_153] : memref<2x1x32xf32, #tpu.memory_space<vmem>>, vector<1x1x32xf32>
    %280 = vector.shape_cast %279 : vector<1x1x32xf32> to vector<1x32xf32>
    %281 = vector.broadcast %280 : vector<1x32xf32> to vector<16x32xf32>
    %282 = arith.addf %278, %281 : vector<16x32xf32>
    %c1_154 = arith.constant 1 : index
    %c0_155 = arith.constant 0 : index
    %c0_156 = arith.constant 0 : index
    %283 = vector.load %arg17[%c1_154, %c0_155, %c0_156] : memref<2x1x32xf32, #tpu.memory_space<vmem>>, vector<1x1x32xf32>
    %284 = vector.shape_cast %283 : vector<1x1x32xf32> to vector<1x32xf32>
    %c1_157 = arith.constant 1 : index
    %c0_158 = arith.constant 0 : index
    %c0_159 = arith.constant 0 : index
    %285 = vector.load %arg18[%c1_157, %c0_158, %c0_159] : memref<2x1x32xf32, #tpu.memory_space<vmem>>, vector<1x1x32xf32>
    %286 = vector.shape_cast %285 : vector<1x1x32xf32> to vector<1x32xf32>
    %cst_160 = arith.constant dense<0.000000e+00> : vector<16xf32>
    %287 = vector.multi_reduction <add>, %282, %cst_160 [1] : vector<16x32xf32> to vector<16xf32>
    %288 = vector.shape_cast %287 : vector<16xf32> to vector<16x1xf32>
    %cst_161 = arith.constant 3.200000e+01 : f32
    %289 = vector.broadcast %cst_161 : f32 to vector<16x1xf32>
    %290 = arith.divf %288, %289 : vector<16x1xf32>
    %291 = vector.broadcast %290 : vector<16x1xf32> to vector<16x32xf32>
    %292 = arith.subf %282, %291 : vector<16x32xf32>
    %293 = arith.mulf %292, %292 : vector<16x32xf32>
    %cst_162 = arith.constant dense<0.000000e+00> : vector<16xf32>
    %294 = vector.multi_reduction <add>, %293, %cst_162 [1] : vector<16x32xf32> to vector<16xf32>
    %295 = vector.shape_cast %294 : vector<16xf32> to vector<16x1xf32>
    %cst_163 = arith.constant 3.200000e+01 : f32
    %296 = vector.broadcast %cst_163 : f32 to vector<16x1xf32>
    %297 = arith.divf %295, %296 : vector<16x1xf32>
    %298 = vector.broadcast %290 : vector<16x1xf32> to vector<16x32xf32>
    %299 = arith.subf %282, %298 : vector<16x32xf32>
    %cst_164 = arith.constant 9.99999974E-6 : f32
    %300 = vector.broadcast %cst_164 : f32 to vector<16x1xf32>
    %301 = arith.addf %297, %300 : vector<16x1xf32>
    %302 = math.rsqrt %301 : vector<16x1xf32>
    %303 = vector.broadcast %302 : vector<16x1xf32> to vector<16x32xf32>
    %304 = arith.mulf %299, %303 : vector<16x32xf32>
    %305 = vector.broadcast %284 : vector<1x32xf32> to vector<16x32xf32>
    %306 = arith.mulf %304, %305 : vector<16x32xf32>
    %307 = vector.broadcast %286 : vector<1x32xf32> to vector<16x32xf32>
    %308 = arith.addf %306, %307 : vector<16x32xf32>
    %c1_165 = arith.constant 1 : index
    %c0_166 = arith.constant 0 : index
    %c0_167 = arith.constant 0 : index
    %309 = vector.load %arg19[%c1_165, %c0_166, %c0_167] : memref<2x32x128xbf16, #tpu.memory_space<vmem>>, vector<1x32x128xbf16>
    %310 = vector.shape_cast %309 : vector<1x32x128xbf16> to vector<32x128xbf16>
    %311 = arith.truncf %308 : vector<16x32xf32> to vector<16x32xbf16>
    %cst_168 = arith.constant dense<0.000000e+00> : vector<16x128xf32>
    %312 = tpu.matmul %311, %310, %cst_168 {dimension_numbers = #tpu.dot_dimension_numbers<[1], [0], [0], [1], [0, 0, 1, 1], [], []>} : vector<16x32xbf16>, vector<32x128xbf16>, vector<16x128xf32> -> vector<16x128xf32>
    %c1_169 = arith.constant 1 : index
    %c0_170 = arith.constant 0 : index
    %c0_171 = arith.constant 0 : index
    %313 = vector.load %arg20[%c1_169, %c0_170, %c0_171] : memref<2x1x128xf32, #tpu.memory_space<vmem>>, vector<1x1x128xf32>
    %314 = vector.shape_cast %313 : vector<1x1x128xf32> to vector<1x128xf32>
    %315 = vector.broadcast %314 : vector<1x128xf32> to vector<16x128xf32>
    %316 = arith.addf %312, %315 : vector<16x128xf32>
    %317 = arith.mulf %316, %316 : vector<16x128xf32>
    %318 = arith.mulf %316, %317 : vector<16x128xf32>
    %cst_172 = arith.constant 4.471500e-02 : f32
    %319 = vector.broadcast %cst_172 : f32 to vector<16x128xf32>
    %320 = arith.mulf %319, %318 : vector<16x128xf32>
    %321 = arith.addf %316, %320 : vector<16x128xf32>
    %cst_173 = arith.constant 0.797884583 : f32
    %322 = vector.broadcast %cst_173 : f32 to vector<16x128xf32>
    %323 = arith.mulf %322, %321 : vector<16x128xf32>
    %324 = math.tanh %323 : vector<16x128xf32>
    %cst_174 = arith.constant 1.000000e+00 : f32
    %325 = vector.broadcast %cst_174 : f32 to vector<16x128xf32>
    %326 = arith.addf %325, %324 : vector<16x128xf32>
    %cst_175 = arith.constant 5.000000e-01 : f32
    %327 = vector.broadcast %cst_175 : f32 to vector<16x128xf32>
    %328 = arith.mulf %327, %326 : vector<16x128xf32>
    %329 = arith.mulf %316, %328 : vector<16x128xf32>
    %c1_176 = arith.constant 1 : index
    %c0_177 = arith.constant 0 : index
    %c0_178 = arith.constant 0 : index
    %330 = vector.load %arg21[%c1_176, %c0_177, %c0_178] : memref<2x128x32xbf16, #tpu.memory_space<vmem>>, vector<1x128x32xbf16>
    %331 = vector.shape_cast %330 : vector<1x128x32xbf16> to vector<128x32xbf16>
    %332 = arith.truncf %329 : vector<16x128xf32> to vector<16x128xbf16>
    %cst_179 = arith.constant dense<0.000000e+00> : vector<16x32xf32>
    %333 = tpu.matmul %332, %331, %cst_179 {dimension_numbers = #tpu.dot_dimension_numbers<[1], [0], [0], [1], [0, 0, 1, 1], [], []>} : vector<16x128xbf16>, vector<128x32xbf16>, vector<16x32xf32> -> vector<16x32xf32>
    %334 = arith.addf %282, %333 : vector<16x32xf32>
    %c1_180 = arith.constant 1 : index
    %c0_181 = arith.constant 0 : index
    %c0_182 = arith.constant 0 : index
    %335 = vector.load %arg22[%c1_180, %c0_181, %c0_182] : memref<2x1x32xf32, #tpu.memory_space<vmem>>, vector<1x1x32xf32>
    %336 = vector.shape_cast %335 : vector<1x1x32xf32> to vector<1x32xf32>
    %337 = vector.broadcast %336 : vector<1x32xf32> to vector<16x32xf32>
    %338 = arith.addf %334, %337 : vector<16x32xf32>
    %c0_183 = arith.constant 0 : index
    %c0_184 = arith.constant 0 : index
    %339 = vector.load %arg23[%c0_183, %c0_184] : memref<1x32xf32, #tpu.memory_space<vmem>>, vector<1x32xf32>
    %c0_185 = arith.constant 0 : index
    %c0_186 = arith.constant 0 : index
    %340 = vector.load %arg24[%c0_185, %c0_186] : memref<1x32xf32, #tpu.memory_space<vmem>>, vector<1x32xf32>
    %cst_187 = arith.constant dense<0.000000e+00> : vector<16xf32>
    %341 = vector.multi_reduction <add>, %338, %cst_187 [1] : vector<16x32xf32> to vector<16xf32>
    %342 = vector.shape_cast %341 : vector<16xf32> to vector<16x1xf32>
    %cst_188 = arith.constant 3.200000e+01 : f32
    %343 = vector.broadcast %cst_188 : f32 to vector<16x1xf32>
    %344 = arith.divf %342, %343 : vector<16x1xf32>
    %345 = vector.broadcast %344 : vector<16x1xf32> to vector<16x32xf32>
    %346 = arith.subf %338, %345 : vector<16x32xf32>
    %347 = arith.mulf %346, %346 : vector<16x32xf32>
    %cst_189 = arith.constant dense<0.000000e+00> : vector<16xf32>
    %348 = vector.multi_reduction <add>, %347, %cst_189 [1] : vector<16x32xf32> to vector<16xf32>
    %349 = vector.shape_cast %348 : vector<16xf32> to vector<16x1xf32>
    %cst_190 = arith.constant 3.200000e+01 : f32
    %350 = vector.broadcast %cst_190 : f32 to vector<16x1xf32>
    %351 = arith.divf %349, %350 : vector<16x1xf32>
    %352 = vector.broadcast %344 : vector<16x1xf32> to vector<16x32xf32>
    %353 = arith.subf %338, %352 : vector<16x32xf32>
    %cst_191 = arith.constant 9.99999974E-6 : f32
    %354 = vector.broadcast %cst_191 : f32 to vector<16x1xf32>
    %355 = arith.addf %351, %354 : vector<16x1xf32>
    %356 = math.rsqrt %355 : vector<16x1xf32>
    %357 = vector.broadcast %356 : vector<16x1xf32> to vector<16x32xf32>
    %358 = arith.mulf %353, %357 : vector<16x32xf32>
    %359 = vector.broadcast %339 : vector<1x32xf32> to vector<16x32xf32>
    %360 = arith.mulf %358, %359 : vector<16x32xf32>
    %361 = vector.broadcast %340 : vector<1x32xf32> to vector<16x32xf32>
    %362 = arith.addf %360, %361 : vector<16x32xf32>
    %363 = arith.truncf %362 : vector<16x32xf32> to vector<16x32xbf16>
    %c0_192 = arith.constant 0 : index
    %c0_193 = arith.constant 0 : index
    %364 = vector.load %arg9[%c0_192, %c0_193] : memref<128x32xbf16, #tpu.memory_space<vmem>>, vector<128x32xbf16>
    "tpu.trace_start"() <{level = 10 : i32, message = "sd,vd->sv"}> : () -> ()
    %cst_194 = arith.constant dense<0.000000e+00> : vector<16x128xf32>
    %365 = tpu.matmul %363, %364, %cst_194 {dimension_numbers = #tpu.dot_dimension_numbers<[1], [1], [0], [0], [0, 0, 1, 0], [], []>} : vector<16x32xbf16>, vector<128x32xbf16>, vector<16x128xf32> -> vector<16x128xf32>
    "tpu.trace_stop"() : () -> ()
    %c0_195 = arith.constant 0 : index
    %c0_196 = arith.constant 0 : index
    %c0_197 = arith.constant 0 : index
    %366 = vector.load %arg3[%c0_195, %c0_196, %c0_197] : memref<1x1x16xi32, #tpu.memory_space<vmem>>, vector<1x1x16xi32>
    %367 = vector.shape_cast %366 : vector<1x1x16xi32> to vector<16xi32>
    %cst_198 = arith.constant dense<0xFF800000> : vector<16xf32>
    %368 = vector.multi_reduction <maximumf>, %365, %cst_198 [1] : vector<16x128xf32> to vector<16xf32>
    %369 = vector.shape_cast %368 : vector<16xf32> to vector<16x1xf32>
    %370 = vector.broadcast %369 : vector<16x1xf32> to vector<16x128xf32>
    %371 = arith.subf %365, %370 : vector<16x128xf32>
    %372 = math.exp %371 : vector<16x128xf32>
    %cst_199 = arith.constant dense<0.000000e+00> : vector<16xf32>
    %373 = vector.multi_reduction <add>, %372, %cst_199 [1] : vector<16x128xf32> to vector<16xf32>
    %374 = vector.shape_cast %373 : vector<16xf32> to vector<16x1xf32>
    %375 = math.log %374 : vector<16x1xf32>
    %376 = arith.addf %375, %369 : vector<16x1xf32>
    %377 = tpu.iota {dimensions = array<i32: 1>} : vector<16x128xi32>
    %378 = vector.shape_cast %367 : vector<16xi32> to vector<16x1xi32>
    %379 = vector.broadcast %378 : vector<16x1xi32> to vector<16x128xi32>
    %380 = arith.cmpi eq, %377, %379 : vector<16x128xi32>
    %cst_200 = arith.constant 0.000000e+00 : f32
    %381 = vector.broadcast %cst_200 : f32 to vector<16x128xf32>
    %382 = arith.select %380, %365, %381 : vector<16x128xi1>, vector<16x128xf32>
    %cst_201 = arith.constant dense<0.000000e+00> : vector<16xf32>
    %383 = vector.multi_reduction <add>, %382, %cst_201 [1] : vector<16x128xf32> to vector<16xf32>
    %384 = vector.shape_cast %383 : vector<16xf32> to vector<16x1xf32>
    %385 = vector.shape_cast %367 : vector<16xi32> to vector<16x1xi32>
    %c-100_i32 = arith.constant -100 : i32
    %386 = vector.broadcast %c-100_i32 : i32 to vector<16x1xi32>
    %387 = arith.cmpi ne, %385, %386 : vector<16x1xi32>
    %388 = arith.subf %376, %384 : vector<16x1xf32>
    %cst_202 = arith.constant 0.000000e+00 : f32
    %389 = vector.broadcast %cst_202 : f32 to vector<16x1xf32>
    %390 = arith.select %387, %388, %389 : vector<16x1xi1>, vector<16x1xf32>
    %391 = vector.shape_cast %390 : vector<16x1xf32> to vector<1x16x1xf32>
    %cst_203 = arith.constant dense<0.000000e+00> : vector<1xf32>
    %392 = vector.multi_reduction <add>, %391, %cst_203 [1, 2] : vector<1x16x1xf32> to vector<1xf32>
    %393 = vector.shape_cast %392 : vector<1xf32> to vector<1x1x1xf32>
    %394 = vector.extract %393[0, 0, 0] : f32 from vector<1x1x1xf32>
    %395 = arith.extui %387 : vector<16x1xi1> to vector<16x1xi32>
    %396 = arith.sitofp %395 : vector<16x1xi32> to vector<16x1xf32>
    %397 = vector.shape_cast %396 : vector<16x1xf32> to vector<1x16x1xf32>
    %cst_204 = arith.constant dense<0.000000e+00> : vector<1xf32>
    %398 = vector.multi_reduction <add>, %397, %cst_204 [1, 2] : vector<1x16x1xf32> to vector<1xf32>
    %399 = vector.shape_cast %398 : vector<1xf32> to vector<1x1x1xf32>
    %400 = vector.extract %399[0, 0, 0] : f32 from vector<1x1x1xf32>
    %401 = vector.broadcast %394 : f32 to vector<8x128xf32>
    %c0_205 = arith.constant 0 : index
    %c0_206 = arith.constant 0 : index
    %c0_207 = arith.constant 0 : index
    %402 = vector.load %arg25[%c0_205, %c0_206, %c0_207] : memref<1x8x128xf32, #tpu.memory_space<vmem>>, vector<1x8x128xf32>
    %403 = vector.shape_cast %402 : vector<1x8x128xf32> to vector<8x128xf32>
    %404 = vector.shape_cast %401 : vector<8x128xf32> to vector<1x8x128xf32>
    tpu.vector_store %arg25[%c0_205, %c0_206, %c0_207], %404 {strides = array<i32>} : memref<1x8x128xf32, #tpu.memory_space<vmem>>, vector<1x8x128xf32>,
    %405 = vector.broadcast %400 : f32 to vector<8x128xf32>
    %c0_208 = arith.constant 0 : index
    %c0_209 = arith.constant 0 : index
    %c0_210 = arith.constant 0 : index
    %406 = vector.load %arg26[%c0_208, %c0_209, %c0_210] : memref<1x8x128xf32, #tpu.memory_space<vmem>>, vector<1x8x128xf32>
    %407 = vector.shape_cast %406 : vector<1x8x128xf32> to vector<8x128xf32>
    %408 = vector.shape_cast %405 : vector<8x128xf32> to vector<1x8x128xf32>
    tpu.vector_store %arg26[%c0_208, %c0_209, %c0_210], %408 {strides = array<i32>} : memref<1x8x128xf32, #tpu.memory_space<vmem>>, vector<1x8x128xf32>,
    return
  }
  func.func @transform_0(%arg0: i32) -> (i32, i32, i32) {
    %c0_i32 = arith.constant 0 : i32
    %c0_i32_0 = arith.constant 0 : i32
    %c0_i32_1 = arith.constant 0 : i32
    return %arg0, %c0_i32, %c0_i32_0 : i32, i32, i32
  }
  func.func @transform_1(%arg0: i32) -> (i32, i32, i32) {
    %c0_i32 = arith.constant 0 : i32
    %c0_i32_0 = arith.constant 0 : i32
    %c0_i32_1 = arith.constant 0 : i32
    return %arg0, %c0_i32, %c0_i32_0 : i32, i32, i32
  }
  func.func @transform_2(%arg0: i32) -> (i32, i32, i32) {
    %c0_i32 = arith.constant 0 : i32
    %c0_i32_0 = arith.constant 0 : i32
    %c0_i32_1 = arith.constant 0 : i32
    return %arg0, %c0_i32, %c0_i32_0 : i32, i32, i32
  }
  func.func @transform_3(%arg0: i32) -> (i32, i32, i32) {
    %c0_i32 = arith.constant 0 : i32
    %c0_i32_0 = arith.constant 0 : i32
    %c0_i32_1 = arith.constant 0 : i32
    return %arg0, %c0_i32, %c0_i32_0 : i32, i32, i32
  }
  func.func @transform_4(%arg0: i32) -> (i32, i32) {
    %c0_i32 = arith.constant 0 : i32
    %c0_i32_0 = arith.constant 0 : i32
    %c0_i32_1 = arith.constant 0 : i32
    return %c0_i32, %c0_i32_0 : i32, i32
  }
  func.func @transform_5(%arg0: i32) -> (i32, i32) {
    %c0_i32 = arith.constant 0 : i32
    %c0_i32_0 = arith.constant 0 : i32
    %c0_i32_1 = arith.constant 0 : i32
    return %c0_i32, %c0_i32_0 : i32, i32
  }
  func.func @transform_6(%arg0: i32) -> (i32, i32) {
    %c0_i32 = arith.constant 0 : i32
    %c0_i32_0 = arith.constant 0 : i32
    %c0_i32_1 = arith.constant 0 : i32
    return %c0_i32, %c0_i32_0 : i32, i32
  }
  func.func @transform_7(%arg0: i32) -> (i32, i32) {
    %c0_i32 = arith.constant 0 : i32
    %c0_i32_0 = arith.constant 0 : i32
    %c0_i32_1 = arith.constant 0 : i32
    return %c0_i32, %c0_i32_0 : i32, i32
  }
  func.func @transform_8(%arg0: i32) -> (i32, i32) {
    %c0_i32 = arith.constant 0 : i32
    %c0_i32_0 = arith.constant 0 : i32
    %c0_i32_1 = arith.constant 0 : i32
    return %c0_i32, %c0_i32_0 : i32, i32
  }
  func.func @transform_9(%arg0: i32) -> (i32, i32) {
    %c0_i32 = arith.constant 0 : i32
    %c0_i32_0 = arith.constant 0 : i32
    %c0_i32_1 = arith.constant 0 : i32
    return %c0_i32, %c0_i32_0 : i32, i32
  }
  func.func @transform_10(%arg0: i32) -> (i32, i32, i32) {
    %c0_i32 = arith.constant 0 : i32
    %c0_i32_0 = arith.constant 0 : i32
    %c0_i32_1 = arith.constant 0 : i32
    %c0_i32_2 = arith.constant 0 : i32
    return %c0_i32, %c0_i32_0, %c0_i32_1 : i32, i32, i32
  }
  func.func @transform_11(%arg0: i32) -> (i32, i32, i32) {
    %c0_i32 = arith.constant 0 : i32
    %c0_i32_0 = arith.constant 0 : i32
    %c0_i32_1 = arith.constant 0 : i32
    %c0_i32_2 = arith.constant 0 : i32
    return %c0_i32, %c0_i32_0, %c0_i32_1 : i32, i32, i32
  }
  func.func @transform_12(%arg0: i32) -> (i32, i32, i32, i32) {
    %c0_i32 = arith.constant 0 : i32
    %c0_i32_0 = arith.constant 0 : i32
    %c0_i32_1 = arith.constant 0 : i32
    %c0_i32_2 = arith.constant 0 : i32
    %c0_i32_3 = arith.constant 0 : i32
    return %c0_i32, %c0_i32_0, %c0_i32_1, %c0_i32_2 : i32, i32, i32, i32
  }
  func.func @transform_13(%arg0: i32) -> (i32, i32, i32, i32) {
    %c0_i32 = arith.constant 0 : i32
    %c0_i32_0 = arith.constant 0 : i32
    %c0_i32_1 = arith.constant 0 : i32
    %c0_i32_2 = arith.constant 0 : i32
    %c0_i32_3 = arith.constant 0 : i32
    return %c0_i32, %c0_i32_0, %c0_i32_1, %c0_i32_2 : i32, i32, i32, i32
  }
  func.func @transform_14(%arg0: i32) -> (i32, i32, i32) {
    %c0_i32 = arith.constant 0 : i32
    %c0_i32_0 = arith.constant 0 : i32
    %c0_i32_1 = arith.constant 0 : i32
    %c0_i32_2 = arith.constant 0 : i32
    return %c0_i32, %c0_i32_0, %c0_i32_1 : i32, i32, i32
  }
  func.func @transform_15(%arg0: i32) -> (i32, i32, i32) {
    %c0_i32 = arith.constant 0 : i32
    %c0_i32_0 = arith.constant 0 : i32
    %c0_i32_1 = arith.constant 0 : i32
    %c0_i32_2 = arith.constant 0 : i32
    return %c0_i32, %c0_i32_0, %c0_i32_1 : i32, i32, i32
  }
  func.func @transform_16(%arg0: i32) -> (i32, i32, i32) {
    %c0_i32 = arith.constant 0 : i32
    %c0_i32_0 = arith.constant 0 : i32
    %c0_i32_1 = arith.constant 0 : i32
    %c0_i32_2 = arith.constant 0 : i32
    return %c0_i32, %c0_i32_0, %c0_i32_1 : i32, i32, i32
  }
  func.func @transform_17(%arg0: i32) -> (i32, i32, i32) {
    %c0_i32 = arith.constant 0 : i32
    %c0_i32_0 = arith.constant 0 : i32
    %c0_i32_1 = arith.constant 0 : i32
    %c0_i32_2 = arith.constant 0 : i32
    return %c0_i32, %c0_i32_0, %c0_i32_1 : i32, i32, i32
  }
  func.func @transform_18(%arg0: i32) -> (i32, i32, i32) {
    %c0_i32 = arith.constant 0 : i32
    %c0_i32_0 = arith.constant 0 : i32
    %c0_i32_1 = arith.constant 0 : i32
    %c0_i32_2 = arith.constant 0 : i32
    return %c0_i32, %c0_i32_0, %c0_i32_1 : i32, i32, i32
  }
  func.func @transform_19(%arg0: i32) -> (i32, i32, i32) {
    %c0_i32 = arith.constant 0 : i32
    %c0_i32_0 = arith.constant 0 : i32
    %c0_i32_1 = arith.constant 0 : i32
    %c0_i32_2 = arith.constant 0 : i32
    return %c0_i32, %c0_i32_0, %c0_i32_1 : i32, i32, i32
  }
  func.func @transform_20(%arg0: i32) -> (i32, i32, i32) {
    %c0_i32 = arith.constant 0 : i32
    %c0_i32_0 = arith.constant 0 : i32
    %c0_i32_1 = arith.constant 0 : i32
    %c0_i32_2 = arith.constant 0 : i32
    return %c0_i32, %c0_i32_0, %c0_i32_1 : i32, i32, i32
  }
  func.func @transform_21(%arg0: i32) -> (i32, i32, i32) {
    %c0_i32 = arith.constant 0 : i32
    %c0_i32_0 = arith.constant 0 : i32
    %c0_i32_1 = arith.constant 0 : i32
    %c0_i32_2 = arith.constant 0 : i32
    return %c0_i32, %c0_i32_0, %c0_i32_1 : i32, i32, i32
  }
  func.func @transform_22(%arg0: i32) -> (i32, i32) {
    %c0_i32 = arith.constant 0 : i32
    %c0_i32_0 = arith.constant 0 : i32
    %c0_i32_1 = arith.constant 0 : i32
    return %c0_i32, %c0_i32_0 : i32, i32
  }
  func.func @transform_23(%arg0: i32) -> (i32, i32) {
    %c0_i32 = arith.constant 0 : i32
    %c0_i32_0 = arith.constant 0 : i32
    %c0_i32_1 = arith.constant 0 : i32
    return %c0_i32, %c0_i32_0 : i32, i32
  }
  func.func @transform_24(%arg0: i32) -> (i32, i32, i32) {
    %c0_i32 = arith.constant 0 : i32
    %c0_i32_0 = arith.constant 0 : i32
    %c0_i32_1 = arith.constant 0 : i32
    return %arg0, %c0_i32, %c0_i32_0 : i32, i32, i32
  }
  func.func @transform_25(%arg0: i32) -> (i32, i32, i32) {
    %c0_i32 = arith.constant 0 : i32
    %c0_i32_0 = arith.constant 0 : i32
    %c0_i32_1 = arith.constant 0 : i32
    return %arg0, %c0_i32, %c0_i32_0 : i32, i32, i32
  }
}

</mosaic_0001>

<bundles_post_ra>
// kernel: vision_language_forward.1
= control target key start
LH: loop header
LB: loop body
LE: loop exit
PB: predicated region body
PF: predicated region fallthrough
CT: control target
= control target key end

     0   :  { %s5953_s29 = smov 0   ;;  %s7325_s0 = inlined_call_operand.vmem [shape: bf16[2,256,4], index: 0, kind: input, shape index: {}]   ;;  %s7326_s1 = inlined_call_operand.vmem [shape: s32[2,1,16], index: 1, kind: input, shape index: {}]   ;;  %s7327_s2 = inlined_call_operand.vmem [shape: s32[2,1,16], index: 2, kind: input, shape index: {}]   ;;  %s7328_s3 = inlined_call_operand.vmem [shape: f32[2,1,16], index: 3, kind: input, shape index: {}]   ;;  %s7329_s4 = inlined_call_operand.vmem [shape: bf16[4,64], index: 4, kind: input, shape index: {}]   ;;  %s7330_s5 = inlined_call_operand.vmem [shape: f32[1,64], index: 5, kind: input, shape index: {}]   ;;  %s7331_s6 = inlined_call_operand.vmem [shape: bf16[64,32], index: 6, kind: input, shape index: {}]   ;;  %s7332_s7 = inlined_call_operand.vmem [shape: f32[1,32], index: 7, kind: input, shape index: {}]   ;;  %s7333_s8 = inlined_call_operand.vmem [shape: bf16[128,32], index: 8, kind: input, shape index: {}]   ;;  %s7334_s9 = inlined_call_operand.vmem [shape: f32[32,32], index: 9, kind: input, shape index: {}]   ;;  %s7335_s10 = inlined_call_operand.vmem [shape: f32[2,1,32], index: 10, kind: input, shape index: {}]   ;;  %s7336_s11 = inlined_call_operand.vmem [shape: f32[2,1,32], index: 11, kind: input, shape index: {}]   ;;  %s7337_s12 = inlined_call_operand.vmem [shape: bf16[2,3,32,32], index: 12, kind: input, shape index: {}]   ;;  %s7338_s13 = inlined_call_operand.vmem [shape: f32[2,3,1,32], index: 13, kind: input, shape index: {}]   ;;  %s7339_s14 = inlined_call_operand.vmem [shape: bf16[2,32,32], index: 14, kind: input, shape index: {}]   ;;  %s7340_s15 = inlined_call_operand.vmem [shape: f32[2,1,32], index: 15, kind: input, shape index: {}]   ;;  %s7341_s16 = inlined_call_operand.vmem [shape: f32[2,1,32], index: 16, kind: input, shape index: {}]   ;;  %s7342_s17 = inlined_call_operand.vmem [shape: f32[2,1,32], index: 17, kind: input, shape index: {}]   ;;  %s7343_s18 = inlined_call_operand.vmem [shape: bf16[2,32,128], index: 18, kind: input, shape index: {}]   ;;  %s7344_s19 = inlined_call_operand.vmem [shape: f32[2,1,128], index: 19, kind: input, shape index: {}]   ;;  %s7345_s20 = inlined_call_operand.vmem [shape: bf16[2,128,32], index: 20, kind: input, shape index: {}]   ;;  %s7346_s21 = inlined_call_operand.vmem [shape: f32[2,1,32], index: 21, kind: input, shape index: {}]   ;;  %s7347_s22 = inlined_call_operand.vmem [shape: f32[1,32], index: 22, kind: input, shape index: {}]   ;;  %s7348_s23 = inlined_call_operand.vmem [shape: f32[1,32], index: 23, kind: input, shape index: {}]   ;;  %s7349_s24 = inlined_call_operand.vmem [shape: f32[2,8,128], index: 24, kind: output, shape index: {0}]   ;;  %s7350_s25 = inlined_call_operand.vmem [shape: f32[2,8,128], index: 25, kind: output, shape index: {1}]  }
   0x1   :  { %7367 = sst [smem:[#allocation2_spill]] %s7325_s0 }
   0x2   :  { %7368 = sst [smem:[#allocation3_spill]] %s7326_s1 }
   0x3   :  { %7369 = sst [smem:[#allocation4_spill]] %s7327_s2 }
   0x4   :  { %7370 = sst [smem:[#allocation5_spill]] %s7328_s3 }
   0x5   :  { %7371 = sst [smem:[#allocation6_spill]] %s7329_s4 }
   0x6   :  { %7372 = sst [smem:[#allocation7_spill]] %s7330_s5 }
   0x7   :  { %7373 = sst [smem:[#allocation8_spill]] %s7331_s6 }
   0x8   :  { %7374 = sst [smem:[#allocation9_spill]] %s7332_s7 }
   0x9   :  { %7375 = sst [smem:[#allocation10_spill]] %s7333_s8 }
   0xa   :  { %7376 = sst [smem:[#allocation11_spill]] %s7334_s9 }
   0xb LB: > { %s5167_s2 = sadd.s32 4294967295, %s5809_s29   ;;  %p5171_p0 = scmp.ge.s32.totalorder %s5809_s29, 1  ;;  %s5809_s29 = sphi %s5953_s29, %s36_s29  }
   0xc   : > { %p714_p1 = scmp.lt.s32.totalorder %s5809_s29, 3 }
   0xe   : > { %p715_p2 = pnand %p5171_p0, %p714_p1 }
   0xf   : > { %s7377_s7 = sld [smem:[#allocation6_spill]] (!%p715_p2)  ;;  %p794_p3 = scmp.lt.s32.totalorder (!%p715_p2), %s5167_s2, 1 }
  0x10   : > { %718 = sbr.rel (%p715_p2) target bundleno = 5449 (0x1549), region = 116  ;;  %s7378_s8 = sld [smem:[#allocation2_spill]] (!%p715_p2) }
  0x11   : > { %s7379_s9 = sld [smem:[#allocation3_spill]] (!%p715_p2)  ;;  %s7358_s0 = smov (!%p715_p2), 120  }
  0x12   : > { %s7380_s30 = sld [smem:[#allocation5_spill]] (!%p715_p2)  ;;  %s7356_s26 = smov (!%p715_p2), 104  }
  0x13   : > { %s7381_s1 = sld [smem:[#allocation7_spill]] (!%p715_p2)  ;;  %s7360_s4 = smov (!%p715_p2), 24  }
  0x14   : > { %s7384_s28 = sld [smem:[#allocation9_spill]] (!%p715_p2) }
  0x15   : > { %v849_v0 = vld [vmem:[%s7377_s7] sm:$0x3]  ;;  %vm983_vm0 = vcmask 1041408   ;;  %s7395_s2 = smov (!%p794_p3, %s5167_s2), 1  ;;  %vm934_vm1 = vcmask 31744   ;;  %vm1108_vm2 = vcmask 523264   ;;  %v1238_v45 = vlaneseq }
  0x16   : > { %v985_v1 = vsel %vm983_vm0, %v849_v0, 0  ;;  %s5572_s3 = sshll.u32 %s7395_s2, 7  ;;  %vm1363_vm8 = vcmask 261120   ;;  %vm1586_vm0 = vcmask 1047556  }
  0x17   : > { %994 = vmatpush.bf16.msra.mxu0 %v985_v1  ;;  %5645 = vmatpush.bf16.msra.mxu3 %v985_v1  ;;  %s5970_s27 = scalar_lea.vmem %s7378_s8, %s5572_s3  ;;  %s801_s5 = scalar_lea.vmem %s7379_s9, %s7395_s2  ;;  %v6025_v48 = vshrl.u32 %v1238_v45, 7 }
  0x18   : > { %v5573_v2 = vld [vmem:[%s5970_s27] sm:$0xff]  ;;  %v5574_v3 = vld [vmem:[%s5970_s27 + $0x8] sm:$0xff]  ;;  %v5575_v4 = vld [vmem:[%s5970_s27 + $0x10] sm:$0xff]  ;;  %s7385_s3 = sld [smem:[#allocation11_spill]]  ;;  %s7386_s6 = scalar_lea.vmem %s7380_s30, %s7395_s2 }
  0x19   : > { %v5576_v5 = vld [vmem:[%s5970_s27 + $0x18] sm:$0xff]  ;;  %v5577_v6 = vld [vmem:[%s5970_s27 + $0x20] sm:$0xff]  ;;  %v5578_v7 = vld [vmem:[%s5970_s27 + $0x28] sm:$0xff]  ;;  %5670 = vset.pattern.permute.xlu0 %v6025_v48  ;;  %5672 = vset.pattern.permute.xlu2 %v6025_v48  ;;  %v6041_v61 = vadd.s32 8, %v6025_v48  ;;  %vm1278_vm7 = vcmp.eq.s32.totalorder %v6025_v48, 0  ;;  %s7361_s8 = smov 16  }
  0x1a   : > { %5240 = vmatmul.msk.bf16.vlgmr.msra.gmra.mxu0 %vm934_vm1, %v5573_v2  ;;  %v5579_v8 = vld [vmem:[%s5970_s27 + $0x30] sm:$0xff]  ;;  %v5580_v9 = vld [vmem:[%s5970_s27 + $0x38] sm:$0xff]  ;;  %v5581_v10 = vld [vmem:[%s5970_s27 + $0x40] sm:$0xff]  ;;  %s7391_s9 = smov 16  }
  0x1b   : > { %v6000_v12 = vld [vmem:[%s7381_s1] ss:$0 sm:$0xff]  ;;  %v5582_v21 = vld [vmem:[%s5970_s27 + $0x48] sm:$0xff]  ;;  %v5587_v30 = vld [vmem:[%s5970_s27 + $0x70] sm:$0xff]  ;;  %s7362_s1 = smov 8  }
  0x1c   : > { %5254 = vmatmul.msk.bf16.vlgmr.msra.gmra.mxu3 %vm934_vm1, %v5587_v30  ;;  %v5583_v33 = vld [vmem:[%s5970_s27 + $0x50] sm:$0xff]  ;;  %v5588_v42 = vld [vmem:[%s5970_s27 + $0x78] sm:$0xff]  ;;  %v5674_v54 = vld [vmem:[%s801_s5] ss:$0 sm:$0xff]  ;;  %s7382_s5 = sld [smem:[#allocation10_spill]] }
  0x1d   : > { %v5584_v46 = vld [vmem:[%s5970_s27 + $0x58] sm:$0xff]  ;;  %v5585_v59 = vld [vmem:[%s5970_s27 + $0x60] sm:$0xff] }
  0x21   : > { %1242 = vperm.xlu0 %5670, %v5674_v54  }
  0x29   : > { %5671 = vset.pattern.permute.xlu0 %v6041_v61 }
  0x2a   : > { %5241 = vmatmul.msk.bf16.gmra.mxu0 %vm934_vm1, %v5574_v3 }
  0x2c   : > { %5255 = vmatmul.msk.bf16.gmra.mxu3 %vm934_vm1, %v5588_v42 }
  0x31   : > { %1248 = vperm.xlu0 %5671, %v5674_v54   ;;  %v5597_v54 = vld [vmem:[%s7382_s5 + $0x20] sm:$0xff] }
  0x3a   : > { %5242 = vmatmul.msk.bf16.gmra.mxu0 %vm934_vm1, %v5575_v4 }
  0x4a   : > { %5243 = vmatmul.msk.bf16.gmra.mxu0 %vm934_vm1, %v5576_v5 }
  0x5a   : > { %5244 = vmatmul.msk.bf16.gmra.mxu0 %vm934_vm1, %v5577_v6 }
  0x6a   : > { %5245 = vmatmul.msk.bf16.gmra.mxu0 %vm934_vm1, %v5578_v7  ;;  %v5586_v7 = vld [vmem:[%s5970_s27 + $0x68] sm:$0xff]  ;;  %s7383_s27 = sld [smem:[#allocation8_spill]] }
  0x7a   : > { %5246 = vmatmul.msk.bf16.gmra.mxu0 %vm934_vm1, %v5579_v8 }
  0x8a   : > { %5247 = vmatmul.msk.bf16.gmra.mxu0 %vm934_vm1, %v5580_v9 }
  0x97   : > { %v996_v11 = vpop.f32.mrf.mxu0 }
  0x98   : > { %v997_v13 = vadd.f32 %v6000_v12, %v996_v11 }
  0x9a   : > { %5248 = vmatmul.msk.bf16.gmra.mxu0 %vm934_vm1, %v5581_v10  ;;  %v1076_v15 = vmax.f32 %v997_v13, 0.0 }
  0x9c   : > { %v1109_v18 = vsel %vm1108_vm2, %v1076_v15, 0.0 }
  0x9f   : > { %v998_v14 = vpop.f32.mrf.mxu0 }
  0xa0   : > { %v999_v16 = vadd.f32 %v6000_v12, %v998_v14 }
  0xa2   : > { %v1077_v17 = vmax.f32 %v999_v16, 0.0 }
  0xa4   : > { %v1110_v19 = vsel %vm1108_vm2, %v1077_v17, 0.0 }
  0xa5   : > { %v1111_v20 = vadd.f32 %v1110_v19, %v1109_v18 }
  0xa7   : > { %v1001_v22 = vpop.f32.mrf.mxu0 }
  0xa8   : > { %v1002_v23 = vadd.f32 %v6000_v12, %v1001_v22 }
  0xaa   : > { %v1078_v24 = vmax.f32 %v1002_v23, 0.0  ;;  %5249 = vmatmul.msk.bf16.gmra.mxu0 %vm934_vm1, %v5582_v21 }
  0xac   : > { %v1112_v25 = vsel %vm1108_vm2, %v1078_v24, 0.0 }
  0xad   : > { %v1113_v26 = vadd.f32 %v1112_v25, %v1111_v20 }
  0xaf   : > { %v1003_v27 = vpop.f32.mrf.mxu0 }
  0xb0   : > { %v1004_v28 = vadd.f32 %v6000_v12, %v1003_v27 }
  0xb2   : > { %v1079_v29 = vmax.f32 %v1004_v28, 0.0 }
  0xb4   : > { %v1114_v31 = vsel %vm1108_vm2, %v1079_v29, 0.0 }
  0xb5   : > { %v1115_v32 = vadd.f32 %v1114_v31, %v1113_v26 }
  0xb7   : > { %v1006_v34 = vpop.f32.mrf.mxu0 }
  0xb8   : > { %v1007_v35 = vadd.f32 %v6000_v12, %v1006_v34 }
  0xba   : > { %v1080_v36 = vmax.f32 %v1007_v35, 0.0  ;;  %5250 = vmatmul.msk.bf16.gmra.mxu0 %vm934_vm1, %v5583_v33 }
  0xbc   : > { %v1116_v37 = vsel %vm1108_vm2, %v1080_v36, 0.0 }
  0xbd   : > { %v1117_v38 = vadd.f32 %v1116_v37, %v1115_v32 }
  0xbf   : > { %v1008_v39 = vpop.f32.mrf.mxu0 }
  0xc0   : > { %v1009_v40 = vadd.f32 %v6000_v12, %v1008_v39 }
  0xc2   : > { %v1081_v41 = vmax.f32 %v1009_v40, 0.0 }
  0xc4   : > { %v1118_v43 = vsel %vm1108_vm2, %v1081_v41, 0.0 }
  0xc5   : > { %v1119_v44 = vadd.f32 %v1118_v43, %v1117_v38 }
  0xc7   : > { %v1011_v47 = vpop.f32.mrf.mxu0 }
  0xc8   : > { %v1012_v49 = vadd.f32 %v6000_v12, %v1011_v47 }
  0xca   : > { %v1082_v50 = vmax.f32 %v1012_v49, 0.0  ;;  %5251 = vmatmul.msk.bf16.gmra.mxu0 %vm934_vm1, %v5584_v46  ;;  %v5600_v49 = vld [vmem:[%s7382_s5 + $0x38] sm:$0xff] }
  0xcb   : > { %1335 = vmatpush.bf16.msra.mxu2 %v5600_v49 }
  0xcc   : > { %v1120_v51 = vsel %vm1108_vm2, %v1082_v50, 0.0 }
  0xcd   : > { %v1121_v52 = vadd.f32 %v1120_v51, %v1119_v44  ;;  %v5599_v51 = vld [vmem:[%s7382_s5 + $0x30] sm:$0xff] }
  0xcf   : > { %v1013_v53 = vpop.f32.mrf.mxu0  ;;  %1336 = vmatpush.bf16.msra.mxu2 %v5599_v51 }
  0xd0   : > { %v1014_v55 = vadd.f32 %v6000_v12, %v1013_v53 }
  0xd2   : > { %v1083_v56 = vmax.f32 %v1014_v55, 0.0  ;;  %v5596_v55 = vld [vmem:[%s7382_s5 + $0x18] sm:$0xff] }
  0xd4   : > { %v1122_v57 = vsel %vm1108_vm2, %v1083_v56, 0.0 }
  0xd5   : > { %v1123_v58 = vadd.f32 %v1122_v57, %v1121_v52  ;;  %v5598_v52 = vld [vmem:[%s7382_s5 + $0x28] sm:$0xff]  ;;  %v5595_v57 = vld [vmem:[%s7382_s5 + $0x10] sm:$0xff] }
  0xd6   : > { %1337 = vmatpush.bf16.msra.mxu2 %v5598_v52 }
  0xd7   : > { %v1016_v60 = vpop.f32.mrf.mxu0 }
  0xd8   : > { %v1017_v62 = vadd.f32 %v6000_v12, %v1016_v60  ;;  %v6087_v60 = vand.u32 127, %v1238_v45 }
  0xda   : > { %v1084_v63 = vmax.f32 %v1017_v62, 0.0  ;;  %5252 = vmatmul.msk.bf16.gmra.mxu0 %vm934_vm1, %v5585_v59  ;;  %1338 = vmatpush.bf16.msra.mxu2 %v5597_v54  ;;  %v5594_v59 = vld [vmem:[%s7382_s5 + $0x8] sm:$0xff] }
  0xdc   : > { %v1124_v0 = vsel %vm1108_vm2, %v1084_v63, 0.0  ;;  %v5593_v63 = vld [vmem:[%s7382_s5] sm:$0xff] }
  0xdd   : > { %v1125_v1 = vadd.f32 %v1124_v0, %v1123_v58  ;;  %v1243_v58 = vpop.permute.xlu0 %1242  ;;  %v1066_v0 = vpop.f32.mrf.mxu3 }
  0xde   : > { %1339 = vmatpush.bf16.msra.mxu2 %v5596_v55  ;;  %vm1252_vm3 = vcmp.eq.s32.totalorder %v1243_v58, %v6087_v60  ;;  %v1067_v49 = vadd.f32 %v6000_v12, %v1066_v0 }
  0xdf   : > { %v1018_v2 = vpop.f32.mrf.mxu0 }
  0xe0   : > { %v1019_v3 = vadd.f32 %v6000_v12, %v1018_v2 }
  0xe2   : > { %v1085_v4 = vmax.f32 %v1019_v3, 0.0  ;;  %1340 = vmatpush.bf16.msra.mxu2 %v5595_v57  ;;  %v5811_v3 = vmov 1.0|1.0  }
  0xe4   : > { %v1126_v5 = vsel %vm1108_vm2, %v1085_v4, 0.0 }
  0xe5   : > { %v1127_v6 = vadd.f32 %v1126_v5, %v1125_v1  ;;  %v1249_v1 = vpop.permute.xlu0 %1248 }
  0xe6   : > { %1341 = vmatpush.bf16.msra.mxu2 %v5594_v59  ;;  %vm1253_vm4 = vcmp.eq.s32.totalorder %v1249_v1, %v6087_v60  ;;  %v1104_v59 = vmax.f32 %v1067_v49, 0.0 }
  0xe7   : > { %v1021_v8 = vpop.f32.mrf.mxu0  ;;  %vm5307_vm5 = vmpackc.low %vm1253_vm4, %vm1252_vm3  ;;  %vm2389_vm3 = vcmask 130048   ;;  %vm1355_vm4 = vcmp.le.s32.totalorder %v6087_v60, %v6041_v61 }
  0xe8   : > { %v1022_v9 = vadd.f32 %v6000_v12, %v1021_v8 }
  0xea   : > { %v1086_v10 = vmax.f32 %v1022_v9, 0.0  ;;  %5253 = vmatmul.msk.bf16.gmra.mxu0 %vm934_vm1, %v5586_v7  ;;  %1342 = vmatpush.bf16.msra.mxu2 %v5593_v63  ;;  %v1068_v9 = vpop.f32.mrf.mxu3  ;;  %vm2274_vm1 = vcmask 64512  }
  0xeb   : > { %v1069_v54 = vadd.f32 %v6000_v12, %v1068_v9 }
  0xec   : > { %v1128_v11 = vsel %vm1108_vm2, %v1086_v10, 0.0 }
  0xed   : > { %v1129_v13 = vadd.f32 %v1128_v11, %v1127_v6  ;;  %5308 = vmatmul.msk.bf16.vlgmr.msra.gmra.mxu2 %vm5307_vm5, %v5811_v3  ;;  %v1105_v0 = vmax.f32 %v1069_v54, 0.0  ;;  %vm2849_vm5 = vcmask 195584  }
  0xef   : > { %v1023_v14 = vpop.f32.mrf.mxu0 }
  0xf0   : > { %v1024_v15 = vadd.f32 %v6000_v12, %v1023_v14  ;;  %v5592_v14 = vld [vmem:[%s7383_s27 + $0x18] sm:$0xff] }
  0xf1   : > { %1227 = vmatpush.bf16.msra.mxu1 %v5592_v14 }
  0xf2   : > { %v1087_v16 = vmax.f32 %v1024_v15, 0.0 }
  0xf4   : > { %v1130_v17 = vsel %vm1108_vm2, %v1087_v16, 0.0 }
  0xf5   : > { %v1131_v18 = vadd.f32 %v1130_v17, %v1129_v13 }
  0xf7   : > { %v1026_v19 = vpop.f32.mrf.mxu0 }
  0xf8   : > { %v1027_v20 = vadd.f32 %v6000_v12, %v1026_v19 }
  0xfa   : > { %v1088_v21 = vmax.f32 %v1027_v20, 0.0 }
  0xfc   : > { %v1132_v22 = vsel %vm1108_vm2, %v1088_v21, 0.0 }
  0xfd   : > { %v1133_v23 = vadd.f32 %v1132_v22, %v1131_v18 }
  0xff   : > { %v1028_v24 = vpop.f32.mrf.mxu0 }
 0x100   : > { %v1029_v25 = vadd.f32 %v6000_v12, %v1028_v24 }
 0x102   : > { %v1089_v26 = vmax.f32 %v1029_v25, 0.0 }
 0x104   : > { %v1134_v27 = vsel %vm1108_vm2, %v1089_v26, 0.0 }
 0x105   : > { %v1135_v28 = vadd.f32 %v1134_v27, %v1133_v23  ;;  %v5591_v23 = vld [vmem:[%s7383_s27 + $0x10] sm:$0xff] }
 0x106   : > { %1228 = vmatpush.bf16.msra.mxu1 %v5591_v23 }
 0x107   : > { %v1031_v29 = vpop.f32.mrf.mxu0 }
 0x108   : > { %v1032_v30 = vadd.f32 %v6000_v12, %v1031_v29  ;;  %v5590_v29 = vld [vmem:[%s7383_s27 + $0x8] sm:$0xff] }
 0x10a   : > { %v1090_v31 = vmax.f32 %v1032_v30, 0.0  ;;  %1229 = vmatpush.bf16.msra.mxu1 %v5590_v29 }
 0x10c   : > { %v1136_v32 = vsel %vm1108_vm2, %v1090_v31, 0.0 }
 0x10d   : > { %v1137_v33 = vadd.f32 %v1136_v32, %v1135_v28 }
 0x10f   : > { %v1033_v34 = vpop.f32.mrf.mxu0 }
 0x110   : > { %v1034_v35 = vadd.f32 %v6000_v12, %v1033_v34 }
 0x112   : > { %v1091_v36 = vmax.f32 %v1034_v35, 0.0  ;;  %v1071_v35 = vpop.f32.mrf.mxu3 }
 0x114   : > { %v1138_v37 = vsel %vm1108_vm2, %v1091_v36, 0.0 }
 0x115   : > { %v1139_v38 = vadd.f32 %v1138_v37, %v1137_v33 }
 0x117   : > { %v1036_v39 = vpop.f32.mrf.mxu0 }
 0x118   : > { %v1037_v40 = vadd.f32 %v6000_v12, %v1036_v39  ;;  %v5589_v39 = vld [vmem:[%s7383_s27] sm:$0xff] }
 0x119   : > { %1230 = vmatpush.bf16.msra.mxu1 %v5589_v39 }
 0x11a   : > { %v1092_v41 = vmax.f32 %v1037_v40, 0.0  ;;  %v1073_v58 = vpop.f32.mrf.mxu3 }
 0x11b   : > { %v1074_v3 = vadd.f32 %v6000_v12, %v1073_v58 }
 0x11c   : > { %v1140_v42 = vsel %vm1108_vm2, %v1092_v41, 0.0 }
 0x11d   : > { %v1141_v43 = vadd.f32 %v1140_v42, %v1139_v38  ;;  %v1107_v9 = vmax.f32 %v1074_v3, 0.0  ;;  %v5601_v3 = vld [vmem:[%s7337_s12] sm:$0xff] }
 0x11f   : > { %v1038_v44 = vpop.f32.mrf.mxu0 }
 0x120   : > { %v1039_v2 = vadd.f32 %v6000_v12, %v1038_v44 }
 0x122   : > { %v1093_v5 = vmax.f32 %v1039_v2, 0.0 }
 0x124   : > { %v1142_v10 = vsel %vm1108_vm2, %v1093_v5, 0.0  ;;  %v1164_v5 = vsel %vm1108_vm2, %v1104_v59, 0.0 }
 0x125   : > { %v1143_v19 = vadd.f32 %v1142_v10, %v1141_v43 }
 0x127   : > { %v1041_v46 = vpop.f32.mrf.mxu0 }
 0x128   : > { %v1042_v4 = vadd.f32 %v6000_v12, %v1041_v46 }
 0x12a   : > { %v1094_v7 = vmax.f32 %v1042_v4, 0.0 }
 0x12c   : > { %v1144_v16 = vsel %vm1108_vm2, %v1094_v7, 0.0 }
 0x12d   : > { %v1145_v24 = vadd.f32 %v1144_v16, %v1143_v19 }
 0x12f   : > { %v1043_v47 = vpop.f32.mrf.mxu0 }
 0x130   : > { %v1044_v6 = vadd.f32 %v6000_v12, %v1043_v47 }
 0x132   : > { %v1095_v11 = vmax.f32 %v1044_v6, 0.0 }
 0x134   : > { %v1146_v20 = vsel %vm1108_vm2, %v1095_v11, 0.0 }
 0x135   : > { %v1147_v28 = vadd.f32 %v1146_v20, %v1145_v24 }
 0x137   : > { %v1046_v50 = vpop.f32.mrf.mxu0 }
 0x138   : > { %v1047_v8 = vadd.f32 %v6000_v12, %v1046_v50 }
 0x13a   : > { %v1096_v17 = vmax.f32 %v1047_v8, 0.0  ;;  %v1166_v8 = vsel %vm1108_vm2, %v1105_v0, 0.0  ;;  %v5606_v0 = vld [vmem:[%s7337_s12 + $0x28] sm:$0xff] }
 0x13b   : > { %1527 = vmatpush.bf16.msrb.mxu1 %v5606_v0 }
 0x13c   : > { %v1148_v25 = vsel %vm1108_vm2, %v1096_v17, 0.0 }
 0x13d   : > { %v1149_v33 = vadd.f32 %v1148_v25, %v1147_v28  ;;  %v1195_v28 = vld [vmem:[%s7384_s28] sm:$0x1]  ;;  %s7363_s28 = smov 112  }
 0x13f   : > { %v1048_v53 = vpop.f32.mrf.mxu0 }
 0x140   : > { %v1049_v13 = vadd.f32 %v6000_v12, %v1048_v53  ;;  %v5812_v53 = vmov 256.0  }
 0x141   : > { %5699 = vrcp.f32 %v5812_v53 }
 0x142   : > { %v1097_v21 = vmax.f32 %v1049_v13, 0.0 }
 0x144   : > { %v1150_v30 = vsel %vm1108_vm2, %v1097_v21, 0.0 }
 0x145   : > { %v1151_v40 = vadd.f32 %v1150_v30, %v1149_v33 }
 0x147   : > { %v1051_v56 = vpop.f32.mrf.mxu0 }
 0x148   : > { %v1052_v18 = vadd.f32 %v6000_v12, %v1051_v56 }
 0x14a   : > { %v1098_v26 = vmax.f32 %v1052_v18, 0.0 }
 0x14c   : > { %v1152_v36 = vsel %vm1108_vm2, %v1098_v26, 0.0 }
 0x14d   : > { %v1153_v43 = vadd.f32 %v1152_v36, %v1151_v40  ;;  %v1350_v40 = vld [vmem:[%s7385_s3 + $0x8] sm:$0xff] }
 0x14f   : > { %v1053_v62 = vpop.f32.mrf.mxu0 }
 0x150   : > { %v1054_v22 = vadd.f32 %v6000_v12, %v1053_v62  ;;  %v1072_v62 = vadd.f32 %v6000_v12, %v1071_v35 }
 0x152   : > { %v1099_v31 = vmax.f32 %v1054_v22, 0.0  ;;  %v1106_v6 = vmax.f32 %v1072_v62, 0.0 }
 0x154   : > { %v1154_v41 = vsel %vm1108_vm2, %v1099_v31, 0.0  ;;  %v1168_v13 = vsel %vm1108_vm2, %v1106_v6, 0.0  ;;  %v5604_v6 = vld [vmem:[%s7337_s12 + $0x18] sm:$0xff] }
 0x155   : > { %v1155_v47 = vadd.f32 %v1154_v41, %v1153_v43  ;;  %v5813_v43 = vmov 32.0  }
 0x156   : > { %5701 = vrcp.f32 %v5813_v43  ;;  %v5680_v43 = vld [vmem:[%s7338_s13 + $0x1] ss:$0 sm:$0xff] }
 0x157   : > { %v1056_v45 = vpop.f32.mrf.mxu0 }
 0x158   : > { %v1057_v27 = vadd.f32 %v6000_v12, %v1056_v45  ;;  %v5700_v45 = vpop.eup %5699 }
 0x159   : > { %v1179_v10 = vmul.f32 256.0, %v5700_v45  ;;  %vm1183_vm6 = vweird.f32 %v5700_v45 }
 0x15a   : > { %v1100_v37 = vmax.f32 %v1057_v27, 0.0 }
 0x15b   : > { %v1180_v16 = vsub.f32 1.0, %v1179_v10 }
 0x15c   : > { %v1156_v44 = vsel %vm1108_vm2, %v1100_v37, 0.0 }
 0x15d   : > { %v1157_v51 = vadd.f32 %v1156_v44, %v1155_v47  ;;  %v5702_v44 = vpop.eup %5701 }
 0x15e   : > { %vm1375_vm9 = vweird.f32 %v5702_v44 }
 0x15f   : > { %v1058_v15 = vpop.f32.mrf.mxu0 }
 0x160   : > { %v1059_v32 = vadd.f32 %v6000_v12, %v1058_v15  ;;  %v1170_v15 = vsel %vm1108_vm2, %v1107_v9, 0.0  ;;  %v5603_v9 = vld [vmem:[%s7337_s12 + $0x10] sm:$0xff] }
 0x162   : > { %v1101_v42 = vmax.f32 %v1059_v32, 0.0 }
 0x164   : > { %v1158_v50 = vsel %vm1108_vm2, %v1101_v42, 0.0 }
 0x165   : > { %v1159_v57 = vadd.f32 %v1158_v50, %v1157_v51 }
 0x167   : > { %v1061_v34 = vpop.f32.mrf.mxu0 }
 0x168   : > { %v1062_v38 = vadd.f32 %v6000_v12, %v1061_v34  ;;  %v1349_v34 = vld [vmem:[%s7385_s3] sm:$0xff]  ;;  %s7392_s3 = smov 24  }
 0x16a   : > { %v1102_v46 = vmax.f32 %v1062_v38, 0.0 }
 0x16c   : > { %v1160_v55 = vsel %vm1108_vm2, %v1102_v46, 0.0  ;;  %v1371_v46 = vmul.f32 32.0, %v5702_v44 }
 0x16d   : > { %v1161_v1 = vadd.f32 %v1160_v55, %v1159_v57 }
 0x16e   : > { %v1372_v47 = vsub.f32 1.0, %v1371_v46 }
 0x16f   : > { %v1063_v52 = vpop.f32.mrf.mxu0 }
 0x170   : > { %v1064_v56 = vadd.f32 %v6000_v12, %v1063_v52  ;;  %v1181_v12 = vmul.f32 %v5700_v45, %v1180_v16  ;;  %v1344_v30 = vpop.f32.mrf.mxu2  ;;  %v1373_v49 = vmul.f32 %v5702_v44, %v1372_v47 }
 0x172   : > { %v1103_v63 = vmax.f32 %v1064_v56, 0.0  ;;  %v1182_v21 = vadd.f32 %v5700_v45, %v1181_v12  ;;  %v1374_v50 = vadd.f32 %v5702_v44, %v1373_v49 }
 0x174   : > { %v1162_v2 = vsel %vm1108_vm2, %v1103_v63, 0.0  ;;  %v1184_v24 = vsel %vm1183_vm6, %v5700_v45, %v1182_v21  ;;  %v6155_v51 = vsel %vm1375_vm9, %v5702_v44, %v1374_v50  ;;  %v5605_v45 = vld [vmem:[%s7337_s12 + $0x20] sm:$0xff] }
 0x175   : > { %v1163_v4 = vadd.f32 %v1162_v2, %v1161_v1  ;;  %v5602_v1 = vld [vmem:[%s7337_s12 + $0x8] sm:$0xff]  ;;  %1528 = vmatpush.bf16.msrb.mxu1 %v5605_v45 }
 0x176   : > { %1455 = vmatpush.bf16.msrb.mxu3 %v5602_v1 }
 0x177   : > { %v1165_v7 = vadd.f32 %v1164_v5, %v1163_v4 }
 0x178   : > { %v1346_v39 = vpop.f32.mrf.mxu2 }
 0x179   : > { %v1167_v11 = vadd.f32 %v1166_v8, %v1165_v7  ;;  %v6151_v41 = vadd.f32 %v1350_v40, %v1346_v39 }
 0x17a   : > { %1456 = vmatpush.bf16.msrb.mxu3 %v5601_v3  ;;  %v5817_v3 = vmov 1983009808  }
 0x17b   : > { %v1169_v14 = vadd.f32 %v1168_v13, %v1167_v11  ;;  %v1367_v42 = vsel %vm1363_vm8, %v6151_v41, 0.0  ;;  %v1577_v45 = vunpack.c.l.s4 %v5817_v3 }
 0x17d   : > { %v1171_v17 = vadd.f32 %v1170_v15, %v1169_v14 }
 0x17e   : > { %1491 = vmatpush.bf16.msra.mxu3 %v5604_v6 }
 0x17f   : > { %v1172_v18 = vrot.slane %v1171_v17, 4 }
 0x181   : > { %v1173_v19 = vadd.f32 %v1172_v18, %v1171_v17 }
 0x182   : > { %1492 = vmatpush.bf16.msra.mxu3 %v5603_v9  ;;  %v5818_v9 = vmov 1934713408  }
 0x183   : > { %v1174_v20 = vrot.slane %v1173_v19, 2 }
 0x185   : > { %v1175_v22 = vadd.f32 %v1174_v20, %v1173_v19 }
 0x187   : > { %v1176_v23 = vrot.slane %v1175_v22, 1 }
 0x189   : > { %v1177_v25 = vadd.f32 %v1176_v23, %v1175_v22 }
 0x18b   : > { %v1185_v26 = vmul.f32 %v1184_v24, %v1177_v25  ;;  %v5676_v24 = vld [vmem:[%s7335_s10] ss:$0 sm:$0xff] }
 0x18d   : > { %v1194_v27 = vpack.c.bf16 %v1185_v26, %v1185_v26 }
 0x18f   : > { %5272 = vmatmul.msk.bf16.vlgmr.msra.gmra.mxu1 %vm1108_vm2, %v1194_v27  ;;  %vm1354_vm2 = vcmp.le.s32.totalorder %v6087_v60, %v6025_v48 }
 0x20c   : > { %v1232_v29 = vpop.f32.mrf.mxu1 }
 0x20d   : > { %v1233_v31 = vadd.f32 %v1232_v29, %v1195_v28  ;;  %v5677_v29 = vld [vmem:[%s7336_s11] ss:$0 sm:$0xff] }
 0x20f   : > { %v1284_v32 = vperm.slane %v1233_v31, 0 }
 0x211   : > { %v1285_v33 = vsel %vm1278_vm7, %v1284_v32, 0.0 }
 0x212   : > { %v1345_v35 = vadd.f32 %v1344_v30, %v1285_v33 }
 0x214   : > { %v1234_v36 = vpop.f32.mrf.mxu1  ;;  %v6144_v37 = vadd.f32 %v1349_v34, %v1345_v35  ;;  %v5679_v34 = vld [vmem:[%s7338_s13] ss:$0 sm:$0xff] }
 0x216   : > { %v1364_v38 = vsel %vm1363_vm8, %v6144_v37, 0.0 }
 0x217   : > { %1365 = vadd.xlane.f32.xlu1 %v1364_v38 }
 0x21f   : > { %1368 = vadd.xlane.f32.xlu1 %v1367_v42 }
 0x28a   : > { %v1366_v52 = vpop.xlane.xlu1 %1365 }
 0x28b   : > { %v1377_v53 = vmul.f32 %v6155_v51, %v1366_v52 }
 0x28d   : > { %v1379_v54 = vsub.f32 %v6144_v37, %v1377_v53 }
 0x28f   : > { %v1381_v55 = vmul.f32 %v1379_v54, %v1379_v54 }
 0x291   : > { %v1383_v56 = vsel %vm1363_vm8, %v1381_v55, 0.0  ;;  %v5678_v55 = vld [vmem:[%s7338_s13 + $0x2] ss:$0 sm:$0xff] }
 0x292   : > { %1384 = vadd.xlane.f32.xlu2 %v1383_v56  ;;  %v1369_v57 = vpop.xlane.xlu1 %1368 }
 0x293   : > { %v1378_v58 = vmul.f32 %v6155_v51, %v1369_v57 }
 0x295   : > { %v1380_v59 = vsub.f32 %v6151_v41, %v1378_v58 }
 0x297   : > { %v1382_v62 = vmul.f32 %v1380_v59, %v1380_v59 }
 0x299   : > { %v1386_v63 = vsel %vm1363_vm8, %v1382_v62, 0.0 }
 0x29a   : > { %1387 = vadd.xlane.f32.xlu2 %v1386_v63 }
 0x305   : > { %v1385_v2 = vpop.xlane.xlu2 %1384 }
 0x306   : > { %v1389_v4 = vmul.f32 %v1385_v2, %v6155_v51 }
 0x308   : > { %v1391_v5 = vadd.f32 1e-05, %v1389_v4 }
 0x30a   : > { %5703 = vrsqrt.f32 %v1391_v5  ;;  %vm1399_vm11 = vweird.f32 %v1391_v5 }
 0x30d   : > { %v1388_v7 = vpop.xlane.xlu2 %1387 }
 0x30e   : > { %v1390_v8 = vmul.f32 %v1388_v7, %v6155_v51  ;;  %v6233_v7 = vunpack.c.0.s8 %v1577_v45 }
 0x310   : > { %v5704_v10 = vpop.eup %5703  ;;  %v1392_v11 = vadd.f32 1e-05, %v1390_v8 }
 0x311   : > { %v1394_v13 = vmul.f32 %v5704_v10, %v1391_v5  ;;  %vm1400_vm10 = vweird.f32 %v5704_v10 }
 0x312   : > { %5705 = vrsqrt.f32 %v1392_v11  ;;  %vm1401_vm12 = vmor %vm1399_vm11, %vm1400_vm10  ;;  %vm1409_vm14 = vweird.f32 %v1392_v11 }
 0x313   : > { %v1395_v14 = vmul.f32 %v5704_v10, %v1394_v13 }
 0x315   : > { %v1396_v15 = vmul.f32 0.5, %v1395_v14 }
 0x317   : > { %v1397_v16 = vsub.f32 1.5, %v1396_v15 }
 0x318   : > { %v5706_v17 = vpop.eup %5705 }
 0x319   : > { %v1398_v18 = vmul.f32 %v5704_v10, %v1397_v16  ;;  %v1404_v12 = vmul.f32 %v5706_v17, %v1392_v11  ;;  %vm1410_vm13 = vweird.f32 %v5706_v17 }
 0x31a   : > { %vm1411_vm15 = vmor %vm1409_vm14, %vm1410_vm13 }
 0x31b   : > { %v1405_v19 = vmul.f32 %v5706_v17, %v1404_v12  ;;  %v1402_v20 = vsel %vm1401_vm12, %v5704_v10, %v1398_v18  ;;  %v1591_v10 = vunpack.c.l.s4 %v5818_v9 }
 0x31c   : > { %v1413_v23 = vmul.f32 %v1402_v20, %v1379_v54 }
 0x31d   : > { %v1406_v21 = vmul.f32 0.5, %v1405_v19 }
 0x31e   : > { %v1418_v28 = vmul.f32 %v5676_v24, %v1413_v23 }
 0x31f   : > { %v1407_v22 = vsub.f32 1.5, %v1406_v21  ;;  %v6237_v21 = vunpack.c.0.s8 %v1591_v10 }
 0x320   : > { %v1423_v31 = vadd.f32 %v5677_v29, %v1418_v28 }
 0x321   : > { %v1408_v25 = vmul.f32 %v5706_v17, %v1407_v22 }
 0x323   : > { %v1412_v26 = vsel %vm1411_vm15, %v5706_v17, %v1408_v25 }
 0x324   : > { %v1414_v27 = vmul.f32 %v1412_v26, %v1380_v59 }
 0x326   : > { %v1419_v30 = vmul.f32 %v5676_v24, %v1414_v27 }
 0x328   : > { %v1424_v32 = vadd.f32 %v5677_v29, %v1419_v30 }
 0x32a   : > { %v1429_v33 = vpack.c.bf16 %v1424_v32, %v1423_v31 }
 0x32c   : > { %5317 = vmatmul.msk.bf16.vlgmr.msrb.gmra.mxu3 %vm1363_vm8, %v1429_v33  ;;  %5345 = vmatmul.msk.bf16.vlgmr.msrb.gmra.mxu1 %vm1363_vm8, %v1429_v33 }
 0x33c   : > { %5331 = vmatmul.msk.bf16.vlgmr.msra.gmra.mxu3 %vm1363_vm8, %v1429_v33 }
 0x3a9   : > { %v1530_v52 = vpop.f32.mrf.mxu1 }
 0x3aa   : > { %v1531_v58 = vadd.f32 %v5678_v55, %v1530_v52 }
 0x3ac   : > { %v6227_v59 = vpack.c.bf16 %v1531_v58, %v1531_v58 }
 0x3af   : > { %v1458_v35 = vpop.f32.mrf.mxu3 }
 0x3b0   : > { %v1459_v36 = vadd.f32 %v5679_v34, %v1458_v35 }
 0x3b1   : > { %v1532_v54 = vpop.f32.mrf.mxu1 }
 0x3b2   : > { %v6195_v38 = vpack.c.bf16 %v1459_v36, %v1459_v36  ;;  %v1533_v56 = vadd.f32 %v5678_v55, %v1532_v54 }
 0x3b4   : > { %1543 = vrot.lane.b32.xlu2 %v6195_v38, %s7363_s28  ;;  %v6219_v57 = vpack.c.bf16 %v1533_v56, %v1533_v56  ;;  %v1554_v29 = vshrl.u32 %v6195_v38, 16 }
 0x3b7   : > { %v1460_v39 = vpop.f32.mrf.mxu3 }
 0x3b8   : > { %v1461_v40 = vadd.f32 %v5679_v34, %v1460_v39 }
 0x3ba   : > { %v6199_v42 = vpack.c.bf16 %v1461_v40, %v1461_v40 }
 0x3bc   : > { %1541 = vrot.lane.b32.xlu0 %v6199_v42, %s7358_s0  ;;  %v1566_v27 = vshrl.u32 %v6199_v42, 16 }
 0x3bf   : > { %v1494_v44 = vpop.f32.mrf.mxu3 }
 0x3c0   : > { %v1495_v46 = vadd.f32 %v5680_v43, %v1494_v44 }
 0x3c2   : > { %v1780_v47 = vpack.c.bf16 %v1495_v46, %v1495_v46 }
 0x3c4   : > { %1784 = vrot.lane.b32.xlu1 %v1780_v47, %s7358_s0  ;;  %1788 = vrot.lane.b32.xlu0 %v1780_v47, %s7363_s28  ;;  %v1799_v6 = vshrl.u32 %v1780_v47, 16 }
 0x3c7   : > { %v1496_v49 = vpop.f32.mrf.mxu3 }
 0x3c8   : > { %v1497_v50 = vadd.f32 %v5680_v43, %v1496_v49 }
 0x3ca   : > { %v1781_v53 = vpack.c.bf16 %v1497_v50, %v1497_v50 }
 0x3cc   : > { %1792 = vrot.lane.b32.xlu0 %v1780_v47, %s7356_s26  ;;  %1786 = vrot.lane.b32.xlu2 %v1781_v53, %s7358_s0  ;;  %v1811_v14 = vshrl.u32 %v1781_v53, 16 }
 0x3cd   : > { %1539 = vrot.lane.b32.xlu1 %v6195_v38, %s7358_s0 }
 0x3d4   : > { %1790 = vrot.lane.b32.xlu0 %v1781_v53, %s7363_s28  ;;  %1794 = vrot.lane.b32.xlu2 %v1781_v53, %s7356_s26 }
 0x3d5   : > { %1545 = vrot.lane.b32.xlu1 %v6199_v42, %s7363_s28 }
 0x3dc   : > { %1547 = vrot.lane.b32.xlu0 %v6195_v38, %s7356_s26  ;;  %1549 = vrot.lane.b32.xlu2 %v6199_v42, %s7356_s26 }
 0x3dd   : > { %2030 = vrot.lane.b32.xlu1 %v6219_v57, %s7358_s0 }
 0x3e4   : > { %2028 = vrot.lane.b32.xlu0 %v6227_v59, %s7358_s0  ;;  %s7388_s0 = smov 120  }
 0x40e   : > { %v6231_v62 = vpop.permute.xlu2 %1543 }
 0x426   : > { %v1787_v1 = vpop.permute.xlu2 %1786 }
 0x427   : > { %v1812_v11 = vshrl.u32 %v1787_v1, 16  ;;  %v1810_v19 = vpack.i.b16 %v1787_v1, %v1781_v53  ;;  %v1560_v1 = vshrl.u32 %v6231_v62, 16 }
 0x429   : > { %v1813_v22 = vpack.i.b16 %v1812_v11, %v1811_v14  ;;  %v1876_v34 = vperm.slane %v1810_v19, %v6233_v7 }
 0x42b   : > { %v6248_v40 = vperm.slane %v1813_v22, %v6233_v7  ;;  %v1884_v45 = vrot.slane %v1876_v34, 4 }
 0x42e   : > { %v1542_v63 = vpop.permute.xlu0 %1541  ;;  %v1795_v20 = vpop.permute.xlu2 %1794 }
 0x42f   : > { %v1567_v28 = vshrl.u32 %v1542_v63, 16  ;;  %v1565_v35 = vpack.i.b16 %v1542_v63, %v6199_v42  ;;  %v1818_v49 = vshrl.u32 %v1795_v20, 16 }
 0x431   : > { %v1632_v58 = vperm.slane %v1565_v35, %v6233_v7 }
 0x433   : > { %v1640_v14 = vrot.slane %v1632_v58, 4 }
 0x436   : > { %v1785_v0 = vpop.permute.xlu1 %1784  ;;  %v1789_v2 = vpop.permute.xlu0 %1788 }
 0x437   : > { %v1800_v4 = vshrl.u32 %v1785_v0, 16  ;;  %v1798_v5 = vpack.i.b16 %v1785_v0, %v1780_v47  ;;  %v1805_v17 = vshrl.u32 %v1789_v2, 16  ;;  %v1568_v47 = vpack.i.b16 %v1567_v28, %v1566_v27 }
 0x439   : > { %v1801_v8 = vpack.i.b16 %v1800_v4, %v1799_v6  ;;  %v1824_v13 = vperm.slane %v1798_v5, %v6233_v7  ;;  %v1910_v4 = vrot.slane %v6248_v40, 4  ;;  %v1550_v5 = vpop.permute.xlu2 %1549 }
 0x43b   : > { %v1850_v16 = vperm.slane %v1801_v8, %v6233_v7  ;;  %v1832_v23 = vrot.slane %v1824_v13, 4 }
 0x43d   : > { %v1858_v30 = vrot.slane %v1850_v16, 4 }
 0x43e   : > { %v1793_v15 = vpop.permute.xlu0 %1792 }
 0x43f   : > { %v1804_v18 = vpack.i.b16 %v1793_v15, %v1789_v2  ;;  %v1806_v12 = vshrl.u32 %v1793_v15, 16  ;;  %v1540_v26 = vpop.permute.xlu1 %1539 }
 0x440   : > { %v1555_v39 = vshrl.u32 %v1540_v26, 16  ;;  %v1553_v42 = vpack.i.b16 %v1540_v26, %v6195_v38  ;;  %v1658_v38 = vperm.slane %v1568_v47, %v6233_v7 }
 0x441   : > { %v1807_v24 = vpack.i.b16 %v1806_v12, %v1805_v17  ;;  %v1829_v25 = vperm.slane %v1804_v18, %v6233_v7  ;;  %v1573_v18 = vshrl.u32 %v1550_v5, 16 }
 0x442   : > { %v1556_v63 = vpack.i.b16 %v1555_v39, %v1554_v29  ;;  %v6263_v10 = vperm.slane %v1553_v42, %v6233_v7  ;;  %v1666_v26 = vrot.slane %v1658_v38, 4 }
 0x443   : > { %v1830_v31 = vrot.slane %v1829_v25, 4  ;;  %v1833_v32 = vsel %vm1586_vm0, %v1829_v25, %v1832_v23  ;;  %v1855_v33 = vperm.slane %v1807_v24, %v6233_v7 }
 0x444   : > { %v1841_v36 = vperm.slane %v1833_v32, %v6237_v21  ;;  %v1588_v28 = vrot.slane %v6263_v10, 4 }
 0x445   : > { %v1831_v43 = vsel %vm1586_vm0, %v1830_v31, %v1824_v13  ;;  %v1856_v44 = vrot.slane %v1855_v33, 4  ;;  %v1859_v46 = vsel %vm1586_vm0, %v1855_v33, %v1858_v30 }
 0x446   : > { %v1837_v50 = vperm.slane %v1831_v43, %v6237_v21  ;;  %v1844_v52 = vrot.slane %v1841_v36, 4  ;;  %v1791_v53 = vpop.permute.xlu0 %1790  ;;  %v1867_v54 = vperm.slane %v1859_v46, %v6237_v21 }
 0x447   : > { %v1816_v55 = vpack.i.b16 %v1795_v20, %v1791_v53  ;;  %v1817_v56 = vshrl.u32 %v1791_v53, 16  ;;  %v1857_v0 = vsel %vm1586_vm0, %v1856_v44, %v1850_v16  ;;  %v1546_v13 = vpop.permute.xlu1 %1545  ;;  %v6267_v16 = vperm.slane %v1556_v63, %v6233_v7 }
 0x448   : > { %v1842_v6 = vrot.slane %v1837_v50, 4  ;;  %v1845_v8 = vsel %vm1586_vm0, 0, %v1844_v52  ;;  %v1870_v9 = vrot.slane %v1867_v54, 4  ;;  %v1863_v15 = vperm.slane %v1857_v0, %v6237_v21 }
 0x449   : > { %v1819_v2 = vpack.i.b16 %v1818_v49, %v1817_v56  ;;  %v1881_v3 = vperm.slane %v1816_v55, %v6233_v7  ;;  %v6271_v12 = vsel %vm1586_vm0, %v1844_v52, %v1837_v50  ;;  %v1929_v19 = vrot.slane %v1845_v8, 4 }
 0x44a   : > { %v1843_v22 = vsel %vm1586_vm0, 0, %v1842_v6  ;;  %v1571_v24 = vpack.i.b16 %v1550_v5, %v1546_v13  ;;  %v1572_v25 = vshrl.u32 %v1546_v13, 16  ;;  %v1871_v27 = vsel %vm1586_vm0, 0, %v1870_v9 }
 0x44b   : > { %v1882_v11 = vrot.slane %v1881_v3, 4  ;;  %v1885_v17 = vsel %vm1586_vm0, %v1881_v3, %v1884_v45  ;;  %v1907_v20 = vperm.slane %v1819_v2, %v6233_v7  ;;  %v1868_v30 = vrot.slane %v1863_v15, 4 }
 0x44c   : > { %v1893_v23 = vperm.slane %v1885_v17, %v6237_v21  ;;  %v1614_v31 = vrot.slane %v6267_v16, 4  ;;  %v1574_v32 = vpack.i.b16 %v1573_v18, %v1572_v25  ;;  %v1637_v33 = vperm.slane %v1571_v24, %v6233_v7 }
 0x44d   : > { %v1883_v29 = vsel %vm1586_vm0, %v1882_v11, %v1876_v34  ;;  %v1928_v36 = vperm.slane %v6271_v12, %v6233_v7  ;;  %v1930_v39 = vsel %vm1586_vm0, %v1929_v19, %v1843_v22  ;;  %v6285_v43 = vsel %vm1586_vm0, %v1870_v9, %v1863_v15 }
 0x44e   : > { %v1548_v35 = vpop.permute.xlu0 %1547  ;;  %v1908_v44 = vrot.slane %v1907_v20, 4  ;;  %v1948_v46 = vrot.slane %v1871_v27, 4  ;;  %v1889_v47 = vperm.slane %v1883_v29, %v6237_v21  ;;  %v1896_v34 = vrot.slane %v1893_v23, 4 }
 0x44f   : > { %v1911_v49 = vsel %vm1586_vm0, %v1907_v20, %v1910_v4  ;;  %v1638_v50 = vrot.slane %v1637_v33, 4  ;;  %v1641_v52 = vsel %vm1586_vm0, %v1637_v33, %v1640_v14  ;;  %v1663_v53 = vperm.slane %v1574_v32, %v6233_v7 }
 0x450   : > { %v1561_v54 = vshrl.u32 %v1548_v35, 16  ;;  %v1869_v42 = vsel %vm1586_vm0, 0, %v1868_v30  ;;  %v1934_v55 = vperm.slane %v1930_v39, %v6233_v7  ;;  %v1947_v56 = vperm.slane %v6285_v43, %v6233_v7 }
 0x451   : > { %v1649_v63 = vperm.slane %v1641_v52, %v6237_v21  ;;  %v1909_v0 = vsel %vm1586_vm0, %v1908_v44, %v6248_v40  ;;  %v1919_v2 = vperm.slane %v1911_v49, %v6237_v21  ;;  %v1639_v3 = vsel %vm1586_vm0, %v1638_v50, %v1632_v58 }
 0x452   : > { %v1559_v45 = vpack.i.b16 %v1548_v35, %v6231_v62  ;;  %v1894_v4 = vrot.slane %v1889_v47, 4  ;;  %v1897_v5 = vsel %vm1586_vm0, 0, %v1896_v34  ;;  %v1645_v6 = vperm.slane %v1639_v3, %v6237_v21 }
 0x453   : > { %v1652_v8 = vrot.slane %v1649_v63, 4  ;;  %v6304_v9 = vsel %vm1586_vm0, %v1896_v34, %v1889_v47  ;;  %v1664_v11 = vrot.slane %v1663_v53, 4  ;;  %v1667_v13 = vsel %vm1586_vm0, %v1663_v53, %v1666_v26 }
 0x454   : > { %v1562_v40 = vpack.i.b16 %v1561_v54, %v1560_v1  ;;  %v1915_v14 = vperm.slane %v1909_v0, %v6237_v21  ;;  %v1650_v58 = vrot.slane %v1645_v6, 4  ;;  %v1675_v17 = vperm.slane %v1667_v13, %v6237_v21 }
 0x455   : > { %v1653_v15 = vsel %vm1586_vm0, 0, %v1652_v8  ;;  %v1922_v18 = vrot.slane %v1919_v2, 4  ;;  %v1665_v19 = vsel %vm1586_vm0, %v1664_v11, %v1658_v38  ;;  %v1584_v22 = vperm.slane %v1559_v45, %v6233_v7 }
 0x456   : > { %v1723_v20 = vrot.slane %v1653_v15, 4  ;;  %v1651_v23 = vsel %vm1586_vm0, 0, %v1650_v58  ;;  %v1671_v24 = vperm.slane %v1665_v19, %v6237_v21  ;;  %v1678_v25 = vrot.slane %v1675_v17, 4 }
 0x457   : > { %v1611_v62 = vperm.slane %v1562_v40, %v6233_v7  ;;  %v1949_v1 = vsel %vm1586_vm0, %v1948_v46, %v1869_v42  ;;  %v1585_v26 = vrot.slane %v1584_v22, 4  ;;  %v1589_v27 = vsel %vm1586_vm0, %v1584_v22, %v1588_v28 }
 0x458   : > { %v1935_v29 = vrot.slane %v1934_v55, 4  ;;  %v1895_v30 = vsel %vm1586_vm0, 0, %v1894_v4  ;;  %v1966_v38 = vperm.slane %v6304_v9, %v6233_v7  ;;  %v1676_v32 = vrot.slane %v1671_v24, 4 }
 0x459   : > { %v1679_v33 = vsel %vm1586_vm0, 0, %v1678_v25  ;;  %v1967_v35 = vrot.slane %v1897_v5, 4  ;;  %v1724_v39 = vsel %vm1586_vm0, %v1723_v20, %v1651_v23  ;;  %v1587_v44 = vsel %vm1586_vm0, %v1585_v26, %v6263_v10 }
 0x45a   : > { %v1597_v46 = vperm.slane %v1589_v27, %v6237_v21  ;;  %v1920_v47 = vrot.slane %v1915_v14, 4  ;;  %v1923_v28 = vsel %vm1586_vm0, 0, %v1922_v18  ;;  %v1593_v34 = vperm.slane %v1587_v44, %v6237_v21 }
 0x45b   : > { %v1612_v49 = vrot.slane %v1611_v62, 4  ;;  %v1981_v50 = vsel %vm1586_vm0, %v1922_v18, %v1915_v14  ;;  %v1742_v52 = vrot.slane %v1679_v33, 4  ;;  %v1615_v54 = vsel %vm1586_vm0, %v1611_v62, %v1614_v31 }
 0x45c   : > { %v1600_v53 = vrot.slane %v1597_v46, 4  ;;  %v1677_v42 = vsel %vm1586_vm0, 0, %v1676_v32  ;;  %v1728_v10 = vperm.slane %v1724_v39, %v6233_v7  ;;  %v1598_v55 = vrot.slane %v1593_v34, 4 }
 0x45d   : > { %v1613_v63 = vsel %vm1586_vm0, %v1612_v49, %v6267_v16  ;;  %v1968_v0 = vsel %vm1586_vm0, %v1967_v35, %v1895_v30  ;;  %v1623_v45 = vperm.slane %v1615_v54, %v6237_v21  ;;  %v1985_v4 = vperm.slane %v1981_v50, %v6233_v7 }
 0x45e   : > { %v1601_v2 = vsel %vm1586_vm0, 0, %v1600_v53  ;;  %v1619_v3 = vperm.slane %v1613_v63, %v6237_v21  ;;  %v1986_v5 = vrot.slane %v1923_v28, 4  ;;  %v1599_v31 = vsel %vm1586_vm0, 0, %v1598_v55 }
 0x45f   : > { %v1685_v9 = vrot.slane %v1601_v2, 4  ;;  %v1921_v11 = vsel %vm1586_vm0, 0, %v1920_v47  ;;  %v1743_v13 = vsel %vm1586_vm0, %v1742_v52, %v1677_v42  ;;  %v1626_v16 = vrot.slane %v1623_v45, 4 }
 0x460   : > { %v1624_v40 = vrot.slane %v1619_v3, 4  ;;  %v1972_v14 = vperm.slane %v1968_v0, %v6233_v7  ;;  %v1718_v58 = vsel %vm1586_vm0, %v1652_v8, %v1645_v6  ;;  %v1729_v15 = vrot.slane %v1728_v10, 4 }
 0x461   : > { %v1686_v17 = vsel %vm1586_vm0, %v1685_v9, %v1599_v31  ;;  %v1627_v19 = vsel %vm1586_vm0, 0, %v1626_v16  ;;  %v1936_v22 = vsel %vm1586_vm0, %v1935_v29, %v1928_v36  ;;  %v1737_v23 = vsel %vm1586_vm0, %v1678_v25, %v1671_v24 }
 0x462   : > { %v1625_v18 = vsel %vm1586_vm0, 0, %v1624_v40  ;;  %v1690_v20 = vperm.slane %v1686_v17, %v6233_v7  ;;  %v1747_v62 = vperm.slane %v1743_v13, %v6233_v7  ;;  %v1680_v6 = vsel %vm1586_vm0, %v1600_v53, %v1593_v34 }
 0x463   : > { %v1704_v8 = vrot.slane %v1627_v19, 4  ;;  %v1987_v26 = vsel %vm1586_vm0, %v1986_v5, %v1921_v11  ;;  %v1722_v27 = vperm.slane %v1718_v58, %v6233_v7  ;;  %v1699_v32 = vsel %vm1586_vm0, %v1626_v16, %v1619_v3 }
 0x464   : > { %v1691_v30 = vrot.slane %v1690_v20, 4  ;;  %v1940_v12 = vperm.slane %v1936_v22, %v6237_v21  ;;  %v1953_v36 = vperm.slane %v1949_v1, %v6233_v7  ;;  %v1973_v29 = vrot.slane %v1972_v14, 4 }
 0x465   : > { %v1705_v33 = vsel %vm1586_vm0, %v1704_v8, %v1625_v18  ;;  %v1730_v24 = vsel %vm1586_vm0, %v1729_v15, %v1722_v27  ;;  %v1741_v25 = vperm.slane %v1737_v23, %v6233_v7  ;;  %v1684_v35 = vperm.slane %v1680_v6, %v6233_v7 }
 0x466   : > { %v1709_v39 = vperm.slane %v1705_v33, %v6233_v7  ;;  %v1748_v44 = vrot.slane %v1747_v62, 4  ;;  %v1954_v46 = vrot.slane %v1953_v36, 4  ;;  %v1974_v47 = vsel %vm1586_vm0, %v1973_v29, %v1966_v38 }
 0x467   : > { %v1991_v28 = vperm.slane %v1987_v26, %v6233_v7  ;;  %v1692_v34 = vsel %vm1586_vm0, %v1691_v30, %v1684_v35  ;;  %v1703_v49 = vperm.slane %v1699_v32, %v6233_v7  ;;  %v1978_v50 = vperm.slane %v1974_v47, %v6237_v21 }
 0x468   : > { %v1710_v1 = vrot.slane %v1709_v39, 4  ;;  %v1955_v52 = vsel %vm1586_vm0, %v1954_v46, %v1947_v56  ;;  %v1941_v54 = vrot.slane %v1940_v12, 4  ;;  %v2003_v38 = vshrl.u32 %v1940_v12, 16 }
 0x469   : > { %v1992_v53 = vrot.slane %v1991_v28, 4  ;;  %v1959_v42 = vperm.slane %v1955_v52, %v6237_v21  ;;  %v1979_v10 = vrot.slane %v1978_v50, 4  ;;  %v6382_v2 = vperm.slane %v1692_v34, %v6237_v21 }
 0x46a   : > { %v1711_v55 = vsel %vm1586_vm0, %v1710_v1, %v1703_v49  ;;  %v1942_v0 = vsel %vm1586_vm0, 0, %v1941_v54  ;;  %v2015_v31 = vshrl.u32 %v1978_v50, 16  ;;  %v6390_v11 = vperm.slane %v1730_v24, %v6237_v21 }
 0x46b   : > { %v1993_v63 = vsel %vm1586_vm0, %v1992_v53, %v1985_v4  ;;  %v6385_v43 = vperm.slane %v1711_v55, %v6237_v21  ;;  %v2002_v3 = vpack.i.b16 %v1959_v42, %v1940_v12  ;;  %v2004_v45 = vshrl.u32 %v1959_v42, 16 }
 0x46c   : > { %v1997_v56 = vperm.slane %v1993_v63, %v6237_v21  ;;  %v1960_v5 = vrot.slane %v1959_v42, 4  ;;  %v1980_v9 = vsel %vm1586_vm0, 0, %v1979_v10  ;;  %v1749_v4 = vsel %vm1586_vm0, %v1748_v44, %v1741_v25 }
 0x46d   : > { %v2005_v40 = vpack.i.b16 %v2004_v45, %v2003_v38  ;;  %v2009_v14 = vshrl.u32 %v1942_v0, 16  ;;  %v1753_v17 = vperm.slane %v1749_v4, %v6237_v21  ;;  %v1758_v18 = vpack.i.b16 %v6385_v43, %v6382_v2 }
 0x46e   : > { %v2014_v13 = vpack.i.b16 %v1997_v56, %v1978_v50  ;;  %v2016_v16 = vshrl.u32 %v1997_v56, 16  ;;  %v1961_v58 = vsel %vm1586_vm0, 0, %v1960_v5  ;;  %v1998_v15 = vrot.slane %v1997_v56, 4 }
 0x46f   : > { %v2271_v19 = vunpack.c.l.b16 %v2002_v3  ;;  %v2008_v23 = vpack.i.b16 %v1961_v58, %v1942_v0  ;;  %v2298_v62 = vunpack.c.l.b16 %v2005_v40  ;;  %v2010_v8 = vshrl.u32 %v1961_v58, 16 }
 0x470   : > { %v2272_v20 = vunpack.c.l.b16 %v2014_v13  ;;  %v2017_v22 = vpack.i.b16 %v2016_v16, %v2015_v31  ;;  %v1999_v6 = vsel %vm1586_vm0, 0, %v1998_v15  ;;  %v2021_v26 = vshrl.u32 %v1980_v9, 16 }
 0x471   : > { %v2020_v32 = vpack.i.b16 %v1999_v6, %v1980_v9  ;;  %v1770_v33 = vpack.i.b16 %v1753_v17, %v6390_v11  ;;  %v2324_v12 = vunpack.c.l.b16 %v2008_v23  ;;  %v2011_v36 = vpack.i.b16 %v2010_v8, %v2009_v14  ;;  %v5675_v8 = vld [vmem:[%s7386_s6] ss:$0 sm:$0xff] }
 0x472   : > { %v2273_v27 = vpack.c.b16 %v2272_v20, %v2271_v19  ;;  %v2299_v30 = vunpack.c.l.b16 %v2017_v22  ;;  %v2022_v29 = vshrl.u32 %v1999_v6, 16  ;;  %v1759_v24 = vshrl.u32 %v6382_v2, 16 }
 0x473   : > { %v2325_v39 = vunpack.c.l.b16 %v2020_v32  ;;  %v1760_v44 = vshrl.u32 %v6385_v43, 16  ;;  %v2268_v47 = vunpack.c.l.b16 %v1758_v18  ;;  %v1771_v28 = vshrl.u32 %v6390_v11, 16 }
 0x474   : > { %v2279_v25 = vsel %vm2274_vm1, %v2273_v27, 0  ;;  %v2300_v35 = vpack.c.b16 %v2299_v30, %v2298_v62  ;;  %v2023_v46 = vpack.i.b16 %v2022_v29, %v2021_v26  ;;  %v1772_v50 = vshrl.u32 %v1753_v17, 16 }
 0x475   : > { %2288 = vmatpush.bf16.xpose.msrb.mxu3 %v2279_v25  ;;  %v2326_v49 = vpack.c.b16 %v2325_v39, %v2324_v12  ;;  %v1761_v1 = vpack.i.b16 %v1760_v44, %v1759_v24  ;;  %v2350_v52 = vunpack.c.l.b16 %v2011_v36  ;;  %v2269_v54 = vunpack.c.l.b16 %v1770_v33 }
 0x476   : > { %v2305_v34 = vsel %vm2274_vm1, %v2300_v35, 0  ;;  %v2351_v53 = vunpack.c.l.b16 %v2023_v46  ;;  %v1773_v38 = vpack.i.b16 %v1772_v50, %v1771_v28  ;;  %v1716_v55 = vrot.slane %v6385_v43, 4 }
 0x477   : > { %2314 = vmatpush.bf16.xpose.msra.mxu1 %v2305_v34  ;;  %v2331_v42 = vsel %vm2274_vm1, %v2326_v49, 0  ;;  %v2295_v10 = vunpack.c.l.b16 %v1761_v1  ;;  %v2270_v0 = vpack.c.b16 %v2269_v54, %v2268_v47  ;;  %v1697_v3 = vrot.slane %v6382_v2, 4 }
 0x478   : > { %v2352_v63 = vpack.c.b16 %v2351_v53, %v2350_v52  ;;  %v2296_v56 = vunpack.c.l.b16 %v1773_v38  ;;  %v1754_v45 = vrot.slane %v1753_v17, 4  ;;  %v1717_v9 = vsel %vm1586_vm0, 0, %v1716_v55 }
 0x479   : > { %v1735_v4 = vrot.slane %v6390_v11, 4  ;;  %v1698_v43 = vsel %vm1586_vm0, 0, %v1697_v3  ;;  %v1766_v40 = vshrl.u32 %v1717_v9, 16  ;;  %v6424_v26 = vsel %vm1354_vm2, %v5675_v8, -1e+09 }
 0x47a   : > { %v2357_v5 = vsel %vm2274_vm1, %v2352_v63, 0  ;;  %v2297_v31 = vpack.c.b16 %v2296_v56, %v2295_v10  ;;  %v1755_v13 = vsel %vm1586_vm0, 0, %v1754_v45  ;;  %v1765_v16 = vshrl.u32 %v1698_v43, 16 }
 0x47b   : > { %v1736_v2 = vsel %vm1586_vm0, 0, %v1735_v4  ;;  %v1778_v14 = vshrl.u32 %v1755_v13, 16  ;;  %v1764_v17 = vpack.i.b16 %v1717_v9, %v1698_v43  ;;  %v6432_v35 = vsel %vm1355_vm4, %v5675_v8, -1e+09  ;;  %v2029_v43 = vpop.permute.xlu0 %2028 }
 0x47c   : > { %5346 = vmatmul.msk.bf16.vlgmr.msrb.gmra.mxu3 %vm2274_vm1, %v2270_v0  ;;  %v1767_v58 = vpack.i.b16 %v1766_v40, %v1765_v16  ;;  %v1777_v15 = vshrl.u32 %v1736_v2, 16  ;;  %v1776_v19 = vpack.i.b16 %v1755_v13, %v1736_v2 }
 0x47d   : > { %2366 = vmatpush.bf16.xpose.msra.mxu3 %v2357_v5  ;;  %v2321_v20 = vunpack.c.l.b16 %v1764_v17  ;;  %v6454_v5 = vpop.permute.xlu1 %2030 }
 0x47e   : > { %5347 = vmatmul.msk.bf16.vlgmr.msra.gmra.mxu1 %vm2274_vm1, %v2297_v31  ;;  %v1779_v18 = vpack.i.b16 %v1778_v14, %v1777_v15  ;;  %v2347_v11 = vunpack.c.l.b16 %v1767_v58  ;;  %v2322_v23 = vunpack.c.l.b16 %v1776_v19 }
 0x47f   : > { %2340 = vmatpush.bf16.xpose.msrb.mxu1 %v2331_v42 }
 0x480   : > { %v2348_v22 = vunpack.c.l.b16 %v1779_v18  ;;  %v2323_v6 = vpack.c.b16 %v2322_v23, %v2321_v20 }
 0x482   : > { %v2349_v62 = vpack.c.b16 %v2348_v22, %v2347_v11 }
 0x48c   : > { %5349 = vmatmul.msk.bf16.vlgmr.msra.gmra.mxu3 %vm2274_vm1, %v2349_v62 }
 0x48e   : > { %5348 = vmatmul.msk.bf16.vlgmr.msrb.gmra.mxu1 %vm2274_vm1, %v2323_v6 }
 0x4fb   : > { %v2316_v27 = vpop.f32.mrf.mxu1 }
 0x4fc   : > { %v2375_v30 = vmul.f32 0.35355338, %v2316_v27 }
 0x4fe   : > { %v2383_v32 = vadd.f32 %v2375_v30, %v6424_v26 }
 0x4ff   : > { %v2290_v33 = vpop.f32.mrf.mxu3 }
 0x500   : > { %v2396_v12 = vsel %vm2389_vm3, %v2383_v32, -inf  ;;  %v2373_v36 = vmul.f32 0.35355338, %v2290_v33 }
 0x501   : > { %2397 = vmax.xlane.f32.xlu2 %v2396_v12 }
 0x502   : > { %v2381_v24 = vadd.f32 %v2373_v36, %v6424_v26 }
 0x503   : > { %v2318_v29 = vpop.f32.mrf.mxu1 }
 0x504   : > { %v2376_v25 = vmul.f32 0.35355338, %v2318_v29  ;;  %v2390_v48 = vsel %vm2389_vm3, %v2381_v24, -inf }
 0x505   : > { %2391 = vmax.xlane.f32.xlu1 %v2390_v48 }
 0x506   : > { %v2384_v46 = vadd.f32 %v2376_v25, %v6432_v35 }
 0x507   : > { %v2292_v39 = vpop.f32.mrf.mxu3 }
 0x508   : > { %v2374_v44 = vmul.f32 0.35355338, %v2292_v39  ;;  %v2399_v49 = vsel %vm2389_vm3, %v2384_v46, -inf }
 0x50a   : > { %v2382_v28 = vadd.f32 %v2374_v44, %v6432_v35 }
 0x50b   : > { %v2342_v47 = vpop.f32.mrf.mxu1 }
 0x50c   : > { %v2377_v34 = vmul.f32 0.35355338, %v2342_v47  ;;  %v2393_v61 = vsel %vm2389_vm3, %v2382_v28, -inf }
 0x50d   : > { %2400 = vmax.xlane.f32.xlu1 %v2399_v49  ;;  %2394 = vmax.xlane.f32.xlu0 %v2393_v61 }
 0x50e   : > { %v2385_v1 = vadd.f32 %v2377_v34, %v6424_v26 }
 0x50f   : > { %v2368_v50 = vpop.f32.mrf.mxu3 }
 0x510   : > { %v2402_v52 = vsel %vm2389_vm3, %v2385_v1, -inf  ;;  %v2379_v53 = vmul.f32 0.35355338, %v2368_v50 }
 0x511   : > { %2403 = vmax.xlane.f32.xlu2 %v2402_v52  ;;  %v2043_v52 = vshrl.u32 %v6227_v59, 16 }
 0x512   : > { %v2387_v42 = vadd.f32 %v2379_v53, %v6424_v26  ;;  %v2042_v53 = vpack.i.b16 %v2029_v43, %v6227_v59 }
 0x513   : > { %v2344_v54 = vpop.f32.mrf.mxu1 }
 0x514   : > { %v2378_v38 = vmul.f32 0.35355338, %v2344_v54  ;;  %v2408_v10 = vsel %vm2389_vm3, %v2387_v42, -inf }
 0x515   : > { %2409 = vmax.xlane.f32.xlu1 %v2408_v10 }
 0x516   : > { %v2386_v55 = vadd.f32 %v2378_v38, %v6432_v35 }
 0x517   : > { %v2370_v63 = vpop.f32.mrf.mxu3 }
 0x518   : > { %v2405_v0 = vsel %vm2389_vm3, %v2386_v55, -inf  ;;  %v2380_v56 = vmul.f32 0.35355338, %v2370_v63  ;;  %v2056_v63 = vshrl.u32 %v6454_v5, 16 }
 0x519   : > { %2406 = vmax.xlane.f32.xlu0 %v2405_v0 }
 0x51a   : > { %v2388_v3 = vadd.f32 %v2380_v56, %v6432_v35 }
 0x51c   : > { %v2411_v45 = vsel %vm2389_vm3, %v2388_v3, -inf }
 0x51d   : > { %2412 = vmax.xlane.f32.xlu2 %v2411_v45 }
 0x52d   : > { %2034 = vrot.lane.b32.xlu0 %v6219_v57, %s7363_s28 }
 0x52e   : > { %2036 = vrot.lane.b32.xlu1 %v6227_v59, %s7356_s26 }
 0x535   : > { %2038 = vrot.lane.b32.xlu0 %v6219_v57, %s7356_s26  ;;  %2032 = vrot.lane.b32.xlu2 %v6227_v59, %s7363_s28  ;;  %v2054_v59 = vpack.i.b16 %v6454_v5, %v6219_v57 }
 0x574   : > { %v2398_v31 = vpop.xlane.xlu2 %2397 }
 0x575   : > { %v2416_v9 = vsub.f32 %v2383_v32, %v2398_v31 }
 0x577   : > { %v2426_v4 = vmul.f32 1.442695, %v2416_v9  ;;  %v2055_v9 = vshrl.u32 %v6219_v57, 16 }
 0x578   : > { %v2392_v13 = vpop.xlane.xlu1 %2391 }
 0x579   : > { %5707 = vpow2.f32 %v2426_v4  ;;  %v2414_v40 = vsub.f32 %v2381_v24, %v2392_v13 }
 0x57b   : > { %v2422_v2 = vmul.f32 1.442695, %v2414_v40  ;;  %v2057_v40 = vpack.i.b16 %v2056_v63, %v2055_v9 }
 0x57d   : > { %5709 = vpow2.f32 %v2422_v2 }
 0x57f   : > { %v6456_v16 = vpop.eup %5707 }
 0x580   : > { %v2444_v14 = vsel %vm2389_vm3, %v6456_v16, 0.0  ;;  %v2401_v58 = vpop.xlane.xlu1 %2400  ;;  %v2395_v15 = vpop.xlane.xlu0 %2394 }
 0x581   : > { %2445 = vadd.xlane.f32.xlu0 %v2444_v14  ;;  %v2417_v17 = vsub.f32 %v2384_v46, %v2401_v58  ;;  %v2415_v18 = vsub.f32 %v2382_v28, %v2395_v15 }
 0x583   : > { %v6460_v19 = vpop.eup %5709  ;;  %v2428_v11 = vmul.f32 1.442695, %v2417_v17  ;;  %v2424_v20 = vmul.f32 1.442695, %v2415_v18  ;;  %v2120_v17 = vperm.slane %v2054_v59, %v6233_v7 }
 0x584   : > { %v2404_v22 = vpop.xlane.xlu2 %2403  ;;  %v2438_v62 = vsel %vm2389_vm3, %v6460_v19, 0.0 }
 0x585   : > { %v2418_v23 = vsub.f32 %v2385_v1, %v2404_v22  ;;  %5711 = vpow2.f32 %v2428_v11  ;;  %2439 = vadd.xlane.f32.xlu2 %v2438_v62  ;;  %v2044_v1 = vshrl.u32 %v2029_v43, 16 }
 0x586   : > { %5713 = vpow2.f32 %v2424_v20 }
 0x587   : > { %v2430_v6 = vmul.f32 1.442695, %v2418_v23 }
 0x588   : > { %v2410_v8 = vpop.xlane.xlu1 %2409 }
 0x589   : > { %v2420_v27 = vsub.f32 %v2387_v42, %v2410_v8  ;;  %5715 = vpow2.f32 %v2430_v6  ;;  %v2045_v42 = vpack.i.b16 %v2044_v1, %v2043_v52 }
 0x58b   : > { %v6464_v30 = vpop.eup %5711  ;;  %v2434_v32 = vmul.f32 1.442695, %v2420_v27  ;;  %v2094_v56 = vperm.slane %v2045_v42, %v6233_v7  ;;  %v2146_v27 = vperm.slane %v2057_v40, %v6233_v7 }
 0x58c   : > { %v2407_v33 = vpop.xlane.xlu0 %2406  ;;  %v6466_v12 = vpop.eup %5713  ;;  %v2447_v29 = vsel %vm2389_vm3, %v6464_v30, 0.0 }
 0x58d   : > { %v2419_v36 = vsub.f32 %v2386_v55, %v2407_v33  ;;  %5717 = vpow2.f32 %v2434_v32  ;;  %v2441_v24 = vsel %vm2389_vm3, %v6466_v12, 0.0  ;;  %2448 = vadd.xlane.f32.xlu2 %v2447_v29  ;;  %v2068_v55 = vperm.slane %v2042_v53, %v6233_v7 }
 0x58e   : > { %2442 = vadd.xlane.f32.xlu1 %v2441_v24  ;;  %v2102_v2 = vrot.slane %v2094_v56, 4  ;;  %v2154_v53 = vrot.slane %v2146_v27, 4 }
 0x58f   : > { %v2432_v25 = vmul.f32 1.442695, %v2419_v36  ;;  %v6472_v44 = vpop.eup %5715  ;;  %v2076_v4 = vrot.slane %v2068_v55, 4 }
 0x590   : > { %v2413_v48 = vpop.xlane.xlu2 %2412  ;;  %v2450_v34 = vsel %vm2389_vm3, %v6472_v44, 0.0 }
 0x591   : > { %5719 = vpow2.f32 %v2432_v25  ;;  %v2421_v39 = vsub.f32 %v2388_v3, %v2413_v48 }
 0x593   : > { %v6474_v46 = vpop.eup %5717  ;;  %v2436_v47 = vmul.f32 1.442695, %v2421_v39 }
 0x594   : > { %v2456_v28 = vsel %vm2389_vm3, %v6474_v46, 0.0 }
 0x595   : > { %5721 = vpow2.f32 %v2436_v47  ;;  %2457 = vadd.xlane.f32.xlu2 %v2456_v28 }
 0x596   : > { %2451 = vadd.xlane.f32.xlu1 %v2450_v34  ;;  %v2128_v34 = vrot.slane %v2120_v17, 4 }
 0x597   : > { %v6480_v49 = vpop.eup %5719 }
 0x598   : > { %v2453_v61 = vsel %vm2389_vm3, %v6480_v49, 0.0  ;;  %v2033_v38 = vpop.permute.xlu2 %2032 }
 0x599   : > { %2454 = vadd.xlane.f32.xlu0 %v2453_v61  ;;  %v2049_v3 = vshrl.u32 %v2033_v38, 16 }
 0x59b   : > { %v6484_v50 = vpop.eup %5721 }
 0x59c   : > { %v2459_v54 = vsel %vm2389_vm3, %v6484_v50, 0.0 }
 0x59e   : > { %2460 = vadd.xlane.f32.xlu1 %v2459_v54 }
 0x59f   : > { %v2035_v10 = vpop.permute.xlu0 %2034 }
 0x5a0   : > { %v2037_v0 = vpop.permute.xlu1 %2036  ;;  %v2061_v32 = vshrl.u32 %v2035_v10, 16 }
 0x5a1   : > { %v2048_v45 = vpack.i.b16 %v2037_v0, %v2033_v38  ;;  %v2050_v31 = vshrl.u32 %v2037_v0, 16 }
 0x5a3   : > { %v2051_v43 = vpack.i.b16 %v2050_v31, %v2049_v3  ;;  %v2073_v13 = vperm.slane %v2048_v45, %v6233_v7 }
 0x5a5   : > { %v2074_v14 = vrot.slane %v2073_v13, 4  ;;  %v2077_v58 = vsel %vm1586_vm0, %v2073_v13, %v2076_v4  ;;  %v2099_v15 = vperm.slane %v2051_v43, %v6233_v7 }
 0x5a6   : > { %v2085_v18 = vperm.slane %v2077_v58, %v6237_v21 }
 0x5a7   : > { %v2039_v11 = vpop.permute.xlu0 %2038  ;;  %v2075_v20 = vsel %vm1586_vm0, %v2074_v14, %v2068_v55  ;;  %v2100_v22 = vrot.slane %v2099_v15, 4  ;;  %v2103_v57 = vsel %vm1586_vm0, %v2099_v15, %v2102_v2 }
 0x5a8   : > { %v2060_v5 = vpack.i.b16 %v2039_v11, %v2035_v10  ;;  %v2081_v23 = vperm.slane %v2075_v20, %v6237_v21  ;;  %v2088_v62 = vrot.slane %v2085_v18, 4  ;;  %v2111_v6 = vperm.slane %v2103_v57, %v6237_v21 }
 0x5a9   : > { %v2062_v8 = vshrl.u32 %v2039_v11, 16  ;;  %v2101_v33 = vsel %vm1586_vm0, %v2100_v22, %v2094_v56 }
 0x5aa   : > { %v2125_v36 = vperm.slane %v2060_v5, %v6233_v7  ;;  %v2086_v29 = vrot.slane %v2081_v23, 4  ;;  %v2089_v24 = vsel %vm1586_vm0, 0, %v2088_v62  ;;  %v2107_v25 = vperm.slane %v2101_v33, %v6237_v21 }
 0x5ab   : > { %v2114_v48 = vrot.slane %v2111_v6, 4  ;;  %v2173_v39 = vrot.slane %v2089_v24, 4  ;;  %v2063_v47 = vpack.i.b16 %v2062_v8, %v2061_v32  ;;  %v2168_v55 = vsel %vm1586_vm0, %v2088_v62, %v2081_v23 }
 0x5ac   : > { %v2126_v28 = vrot.slane %v2125_v36, 4  ;;  %v2087_v61 = vsel %vm1586_vm0, 0, %v2086_v29  ;;  %v2112_v1 = vrot.slane %v2107_v25, 4  ;;  %v2129_v0 = vsel %vm1586_vm0, %v2125_v36, %v2128_v34 }
 0x5ad   : > { %v2115_v52 = vsel %vm1586_vm0, 0, %v2114_v48  ;;  %v2174_v54 = vsel %vm1586_vm0, %v2173_v39, %v2087_v61  ;;  %v2137_v45 = vperm.slane %v2129_v0, %v6237_v21  ;;  %v2151_v31 = vperm.slane %v2063_v47, %v6233_v7 }
 0x5ae   : > { %v2192_v42 = vrot.slane %v2115_v52, 4  ;;  %v2127_v38 = vsel %vm1586_vm0, %v2126_v28, %v2120_v17  ;;  %v2113_v10 = vsel %vm1586_vm0, 0, %v2112_v1  ;;  %v2178_v63 = vperm.slane %v2174_v54, %v6233_v7 }
 0x5af   : > { %v2133_v3 = vperm.slane %v2127_v38, %v6237_v21  ;;  %v2187_v59 = vsel %vm1586_vm0, %v2114_v48, %v2107_v25  ;;  %v2140_v13 = vrot.slane %v2137_v45, 4  ;;  %v2152_v40 = vrot.slane %v2151_v31, 4 }
 0x5b0   : > { %v2193_v56 = vsel %vm1586_vm0, %v2192_v42, %v2113_v10  ;;  %v2179_v9 = vrot.slane %v2178_v63, 4  ;;  %v2155_v2 = vsel %vm1586_vm0, %v2151_v31, %v2154_v53  ;;  %v2172_v14 = vperm.slane %v2168_v55, %v6233_v7 }
 0x5b1   : > { %v2197_v4 = vperm.slane %v2193_v56, %v6233_v7  ;;  %v2138_v43 = vrot.slane %v2133_v3, 4  ;;  %v2163_v58 = vperm.slane %v2155_v2, %v6237_v21  ;;  %v2191_v17 = vperm.slane %v2187_v59, %v6233_v7 }
 0x5b2   : > { %v2141_v11 = vsel %vm1586_vm0, 0, %v2140_v13  ;;  %v2153_v20 = vsel %vm1586_vm0, %v2152_v40, %v2146_v27  ;;  %v2180_v23 = vsel %vm1586_vm0, %v2179_v9, %v2172_v14  ;;  %v2206_v32 = vsel %vm1586_vm0, %v2140_v13, %v2133_v3 }
 0x5b3   : > { %v2198_v15 = vrot.slane %v2197_v4, 4  ;;  %v2139_v18 = vsel %vm1586_vm0, 0, %v2138_v43  ;;  %v2159_v22 = vperm.slane %v2153_v20, %v6237_v21  ;;  %v2166_v57 = vrot.slane %v2163_v58, 4 }
 0x5b4   : > { %v2211_v5 = vrot.slane %v2141_v11, 4  ;;  %v2184_v27 = vperm.slane %v2180_v23, %v6237_v21  ;;  %v2210_v48 = vperm.slane %v2206_v32, %v6233_v7 }
 0x5b5   : > { %v2199_v62 = vsel %vm1586_vm0, %v2198_v15, %v2191_v17  ;;  %v2164_v6 = vrot.slane %v2159_v22, 4  ;;  %v2167_v8 = vsel %vm1586_vm0, 0, %v2166_v57  ;;  %v2225_v47 = vsel %vm1586_vm0, %v2166_v57, %v2159_v22 }
 0x5b6   : > { %v2212_v33 = vsel %vm1586_vm0, %v2211_v5, %v2139_v18  ;;  %v2230_v29 = vrot.slane %v2167_v8, 4  ;;  %v2203_v24 = vperm.slane %v2199_v62, %v6237_v21  ;;  %v2185_v52 = vrot.slane %v2184_v27, 4 }
 0x5b7   : > { %v2216_v36 = vperm.slane %v2212_v33, %v6233_v7  ;;  %v2165_v25 = vsel %vm1586_vm0, 0, %v2164_v6  ;;  %v2229_v53 = vperm.slane %v2225_v47, %v6233_v7  ;;  %v2247_v63 = vshrl.u32 %v2184_v27, 16 }
 0x5b8   : > { %v2231_v28 = vsel %vm1586_vm0, %v2230_v29, %v2165_v25  ;;  %v2204_v61 = vrot.slane %v2203_v24, 4  ;;  %v2248_v38 = vshrl.u32 %v2203_v24, 16  ;;  %v2246_v3 = vpack.i.b16 %v2203_v24, %v2184_v27 }
 0x5b9   : > { %v2217_v39 = vrot.slane %v2216_v36, 4  ;;  %v2235_v34 = vperm.slane %v2231_v28, %v6233_v7  ;;  %v2186_v45 = vsel %vm1586_vm0, 0, %v2185_v52 }
 0x5ba   : > { %v2205_v10 = vsel %vm1586_vm0, 0, %v2204_v61  ;;  %v2249_v31 = vpack.i.b16 %v2248_v38, %v2247_v63  ;;  %v2253_v14 = vshrl.u32 %v2186_v45, 16  ;;  %v2491_v58 = vunpack.c.l.b16 %v2246_v3 }
 0x5bb   : > { %v2218_v1 = vsel %vm1586_vm0, %v2217_v39, %v2210_v48  ;;  %v2236_v42 = vrot.slane %v2235_v34, 4  ;;  %v2254_v59 = vshrl.u32 %v2205_v10, 16  ;;  %v2252_v2 = vpack.i.b16 %v2205_v10, %v2186_v45 }
 0x5bc   : > { %v2222_v54 = vperm.slane %v2218_v1, %v6237_v21  ;;  %v2517_v23 = vunpack.c.l.b16 %v2249_v31 }
 0x5bd   : > { %v2237_v55 = vsel %vm1586_vm0, %v2236_v42, %v2229_v53  ;;  %v2255_v20 = vpack.i.b16 %v2254_v59, %v2253_v14  ;;  %v2543_v6 = vunpack.c.l.b16 %v2252_v2 }
 0x5be   : > { %v2223_v0 = vrot.slane %v2222_v54, 4  ;;  %v2241_v56 = vperm.slane %v2237_v55, %v6237_v21  ;;  %v2259_v9 = vshrl.u32 %v2222_v54, 16 }
 0x5bf   : > { %v2569_v29 = vunpack.c.l.b16 %v2255_v20 }
 0x5c0   : > { %v2258_v4 = vpack.i.b16 %v2241_v56, %v2222_v54  ;;  %v2260_v43 = vshrl.u32 %v2241_v56, 16  ;;  %v2224_v13 = vsel %vm1586_vm0, 0, %v2223_v0  ;;  %v2242_v40 = vrot.slane %v2241_v56, 4 }
 0x5c1   : > { %v2265_v22 = vshrl.u32 %v2224_v13, 16 }
 0x5c2   : > { %v2492_v15 = vunpack.c.l.b16 %v2258_v4  ;;  %v2261_v17 = vpack.i.b16 %v2260_v43, %v2259_v9  ;;  %v2243_v18 = vsel %vm1586_vm0, 0, %v2242_v40 }
 0x5c3   : > { %v2264_v11 = vpack.i.b16 %v2243_v18, %v2224_v13  ;;  %v2266_v57 = vshrl.u32 %v2243_v18, 16 }
 0x5c4   : > { %v2493_v5 = vpack.c.b16 %v2492_v15, %v2491_v58  ;;  %v2518_v62 = vunpack.c.l.b16 %v2261_v17 }
 0x5c5   : > { %v2544_v8 = vunpack.c.l.b16 %v2264_v11  ;;  %v2267_v32 = vpack.i.b16 %v2266_v57, %v2265_v22 }
 0x5c6   : > { %2505 = vmatpush.bf16.msra.mxu1 %v2493_v5  ;;  %v2519_v33 = vpack.c.b16 %v2518_v62, %v2517_v23 }
 0x5c7   : > { %v2545_v36 = vpack.c.b16 %v2544_v8, %v2543_v6  ;;  %v2570_v27 = vunpack.c.l.b16 %v2267_v32 }
 0x5c8   : > { %2531 = vmatpush.bf16.msrb.mxu2 %v2519_v33 }
 0x5c9   : > { %2557 = vmatpush.bf16.msrb.mxu3 %v2545_v36  ;;  %v2571_v24 = vpack.c.b16 %v2570_v27, %v2569_v29 }
 0x5cb   : > { %2583 = vmatpush.bf16.msrb.mxu1 %v2571_v24 }
 0x5f4   : > { %v2446_v25 = vpop.xlane.xlu0 %2445 }
 0x5f5   : > { %5723 = vrcp.f32 %v2446_v25 }
 0x5f8   : > { %v2440_v48 = vpop.xlane.xlu2 %2439 }
 0x5f9   : > { %5725 = vrcp.f32 %v2440_v48 }
 0x5fb   : > { %v5724_v47 = vpop.eup %5723 }
 0x5fc   : > { %v2472_v61 = vmul.f32 %v5724_v47, %v6456_v16 }
 0x5fe   : > { %v2480_v54 = vpack.c.bf16 %v2472_v61, %v2472_v61 }
 0x5ff   : > { %v5726_v34 = vpop.eup %5725 }
 0x600   : > { %v2449_v39 = vpop.xlane.xlu2 %2448  ;;  %v2470_v1 = vmul.f32 %v5726_v34, %v6460_v19  ;;  %v2514_v45 = vunpack.c.l.b16 %v2480_v54 }
 0x601   : > { %v2443_v28 = vpop.xlane.xlu1 %2442  ;;  %5727 = vrcp.f32 %v2449_v39 }
 0x602   : > { %5729 = vrcp.f32 %v2443_v28  ;;  %v2478_v10 = vpack.c.bf16 %v2470_v1, %v2470_v1 }
 0x604   : > { %v2488_v16 = vunpack.c.l.b16 %v2478_v10 }
 0x607   : > { %v5728_v52 = vpop.eup %5727 }
 0x608   : > { %v5730_v53 = vpop.eup %5729  ;;  %v2473_v42 = vmul.f32 %v5728_v52, %v6464_v30  ;;  %v2458_v38 = vpop.xlane.xlu2 %2457 }
 0x609   : > { %v2471_v55 = vmul.f32 %v5730_v53, %v6466_v12  ;;  %v2452_v63 = vpop.xlane.xlu1 %2451 }
 0x60a   : > { %v2481_v0 = vpack.c.bf16 %v2473_v42, %v2473_v42  ;;  %5731 = vrcp.f32 %v2452_v63 }
 0x60b   : > { %v2479_v56 = vpack.c.bf16 %v2471_v55, %v2471_v55  ;;  %5733 = vrcp.f32 %v2458_v38 }
 0x60c   : > { %v2455_v3 = vpop.xlane.xlu0 %2454  ;;  %v2515_v31 = vunpack.c.l.b16 %v2481_v0 }
 0x60d   : > { %5735 = vrcp.f32 %v2455_v3  ;;  %v2489_v19 = vunpack.c.l.b16 %v2479_v56 }
 0x60e   : > { %v2516_v9 = vpack.c.b16 %v2515_v31, %v2514_v45 }
 0x60f   : > { %v2490_v59 = vpack.c.b16 %v2489_v19, %v2488_v16 }
 0x610   : > { %v5732_v4 = vpop.eup %5731  ;;  %5351 = vmatmul.msk.bf16.vlgmr.msrb.gmra.mxu2 %vm2389_vm3, %v2516_v9 }
 0x611   : > { %v5734_v30 = vpop.eup %5733  ;;  %v2474_v43 = vmul.f32 %v5732_v4, %v6472_v44  ;;  %v2461_v12 = vpop.xlane.xlu1 %2460  ;;  %5350 = vmatmul.msk.bf16.vlgmr.msra.gmra.mxu1 %vm2389_vm3, %v2490_v59 }
 0x612   : > { %5737 = vrcp.f32 %v2461_v12  ;;  %v2476_v14 = vmul.f32 %v5734_v30, %v6474_v46 }
 0x613   : > { %v5736_v13 = vpop.eup %5735  ;;  %v2482_v40 = vpack.c.bf16 %v2474_v43, %v2474_v43 }
 0x614   : > { %v2475_v2 = vmul.f32 %v5736_v13, %v6480_v49  ;;  %v2484_v11 = vpack.c.bf16 %v2476_v14, %v2476_v14 }
 0x615   : > { %v2540_v15 = vunpack.c.l.b16 %v2482_v40 }
 0x616   : > { %v2483_v58 = vpack.c.bf16 %v2475_v2, %v2475_v2  ;;  %v2566_v44 = vunpack.c.l.b16 %v2484_v11 }
 0x618   : > { %v2541_v17 = vunpack.c.l.b16 %v2483_v58  ;;  %v5738_v18 = vpop.eup %5737 }
 0x619   : > { %v2477_v22 = vmul.f32 %v5738_v18, %v6484_v50 }
 0x61a   : > { %v2542_v20 = vpack.c.b16 %v2541_v17, %v2540_v15 }
 0x61b   : > { %v2485_v57 = vpack.c.bf16 %v2477_v22, %v2477_v22 }
 0x61c   : > { %5352 = vmatmul.msk.bf16.vlgmr.msrb.gmra.mxu3 %vm2389_vm3, %v2542_v20 }
 0x61d   : > { %v2567_v5 = vunpack.c.l.b16 %v2485_v57 }
 0x61f   : > { %v2568_v23 = vpack.c.b16 %v2567_v5, %v2566_v44 }
 0x621   : > { %5353 = vmatmul.msk.bf16.vlgmr.msrb.gmra.mxu1 %vm2389_vm3, %v2568_v23 }
 0x68e   : > { %v2507_v62 = vpop.f32.mrf.mxu1 }
 0x68f   : > { %v2590_v46 = vpack.c.bf16 %v2507_v62, %v2507_v62 }
 0x691   : > { %v2601_v33 = vshrl.u32 %v2590_v46, 16 }
 0x693   : > { %v2533_v49 = vpop.f32.mrf.mxu2 }
 0x694   : > { %v2592_v6 = vpack.c.bf16 %v2533_v49, %v2533_v49 }
 0x696   : > { %v2509_v8 = vpop.f32.mrf.mxu1  ;;  %v2602_v32 = vshrl.u32 %v2592_v6, 16  ;;  %v2600_v36 = vpack.i.b16 %v2592_v6, %v2590_v46 }
 0x697   : > { %v2591_v39 = vpack.c.bf16 %v2509_v8, %v2509_v8 }
 0x698   : > { %v2603_v27 = vpack.i.b16 %v2602_v32, %v2601_v33  ;;  %v2626_v48 = vperm.slane %v2600_v36, %v6233_v7 }
 0x699   : > { %v2613_v42 = vshrl.u32 %v2591_v39, 16 }
 0x69a   : > { %v2652_v34 = vperm.slane %v2603_v27, %v6233_v7  ;;  %v2634_v54 = vrot.slane %v2626_v48, 4 }
 0x69b   : > { %v2535_v29 = vpop.f32.mrf.mxu2 }
 0x69c   : > { %v2593_v24 = vpack.c.bf16 %v2535_v29, %v2535_v29  ;;  %v2660_v55 = vrot.slane %v2652_v34, 4 }
 0x69e   : > { %v2585_v50 = vpop.f32.mrf.mxu1  ;;  %v2614_v61 = vshrl.u32 %v2593_v24, 16  ;;  %v2612_v63 = vpack.i.b16 %v2593_v24, %v2591_v39 }
 0x69f   : > { %v2559_v25 = vpop.f32.mrf.mxu3  ;;  %v2596_v47 = vpack.c.bf16 %v2585_v50, %v2585_v50 }
 0x6a0   : > { %v2594_v28 = vpack.c.bf16 %v2559_v25, %v2559_v25  ;;  %v2615_v0 = vpack.i.b16 %v2614_v61, %v2613_v42  ;;  %v2678_v2 = vperm.slane %v2612_v63, %v6233_v7 }
 0x6a1   : > { %v2608_v1 = vshrl.u32 %v2596_v47, 16 }
 0x6a2   : > { %v2606_v52 = vpack.i.b16 %v2596_v47, %v2594_v28  ;;  %v2607_v53 = vshrl.u32 %v2594_v28, 16  ;;  %v2704_v14 = vperm.slane %v2615_v0, %v6233_v7  ;;  %v2686_v49 = vrot.slane %v2678_v2, 4 }
 0x6a4   : > { %v2609_v38 = vpack.i.b16 %v2608_v1, %v2607_v53  ;;  %v2631_v10 = vperm.slane %v2606_v52, %v6233_v7  ;;  %v2712_v27 = vrot.slane %v2704_v14, 4 }
 0x6a6   : > { %v2632_v56 = vrot.slane %v2631_v10, 4  ;;  %v2635_v3 = vsel %vm1586_vm0, %v2631_v10, %v2634_v54  ;;  %v2657_v45 = vperm.slane %v2609_v38, %v6233_v7  ;;  %v2587_v16 = vpop.f32.mrf.mxu1 }
 0x6a7   : > { %v2643_v31 = vperm.slane %v2635_v3, %v6237_v21  ;;  %v2561_v19 = vpop.f32.mrf.mxu3  ;;  %v2597_v30 = vpack.c.bf16 %v2587_v16, %v2587_v16 }
 0x6a8   : > { %v2633_v9 = vsel %vm1586_vm0, %v2632_v56, %v2626_v48  ;;  %v2658_v59 = vrot.slane %v2657_v45, 4  ;;  %v2661_v4 = vsel %vm1586_vm0, %v2657_v45, %v2660_v55  ;;  %v2595_v40 = vpack.c.bf16 %v2561_v19, %v2561_v19 }
 0x6a9   : > { %v2639_v43 = vperm.slane %v2633_v9, %v6237_v21  ;;  %v2646_v12 = vrot.slane %v2643_v31, 4  ;;  %v2669_v13 = vperm.slane %v2661_v4, %v6237_v21  ;;  %v2620_v22 = vshrl.u32 %v2597_v30, 16 }
 0x6aa   : > { %v2659_v58 = vsel %vm1586_vm0, %v2658_v59, %v2652_v34  ;;  %v2618_v57 = vpack.i.b16 %v2597_v30, %v2595_v40  ;;  %v2619_v44 = vshrl.u32 %v2595_v40, 16 }
 0x6ab   : > { %v2644_v15 = vrot.slane %v2639_v43, 4  ;;  %v2647_v17 = vsel %vm1586_vm0, 0, %v2646_v12  ;;  %v2665_v18 = vperm.slane %v2659_v58, %v6237_v21  ;;  %v2672_v11 = vrot.slane %v2669_v13, 4 }
 0x6ac   : > { %v2731_v20 = vrot.slane %v2647_v17, 4  ;;  %v2621_v8 = vpack.i.b16 %v2620_v22, %v2619_v44  ;;  %v2726_v33 = vsel %vm1586_vm0, %v2646_v12, %v2639_v43  ;;  %v2683_v29 = vperm.slane %v2618_v57, %v6233_v7 }
 0x6ad   : > { %v2645_v5 = vsel %vm1586_vm0, 0, %v2644_v15  ;;  %v2670_v23 = vrot.slane %v2665_v18, 4  ;;  %v2673_v62 = vsel %vm1586_vm0, 0, %v2672_v11  ;;  %v2745_v24 = vsel %vm1586_vm0, %v2672_v11, %v2665_v18 }
 0x6ae   : > { %v2732_v6 = vsel %vm1586_vm0, %v2731_v20, %v2645_v5  ;;  %v2750_v46 = vrot.slane %v2673_v62, 4  ;;  %v2709_v25 = vperm.slane %v2621_v8, %v6233_v7  ;;  %v2684_v48 = vrot.slane %v2683_v29, 4 }
 0x6af   : > { %v2671_v32 = vsel %vm1586_vm0, 0, %v2670_v23  ;;  %v2736_v36 = vperm.slane %v2732_v6, %v6233_v7  ;;  %v2687_v39 = vsel %vm1586_vm0, %v2683_v29, %v2686_v49  ;;  %v2730_v34 = vperm.slane %v2726_v33, %v6233_v7 }
 0x6b0   : > { %v2751_v50 = vsel %vm1586_vm0, %v2750_v46, %v2671_v32  ;;  %v2695_v61 = vperm.slane %v2687_v39, %v6237_v21  ;;  %v2710_v1 = vrot.slane %v2709_v25, 4  ;;  %v2713_v52 = vsel %vm1586_vm0, %v2709_v25, %v2712_v27 }
 0x6b1   : > { %v2737_v47 = vrot.slane %v2736_v36, 4  ;;  %v2755_v28 = vperm.slane %v2751_v50, %v6233_v7  ;;  %v2749_v53 = vperm.slane %v2745_v24, %v6233_v7  ;;  %v2685_v54 = vsel %vm1586_vm0, %v2684_v48, %v2678_v2 }
 0x6b2   : > { %v2721_v42 = vperm.slane %v2713_v52, %v6237_v21  ;;  %v2691_v10 = vperm.slane %v2685_v54, %v6237_v21  ;;  %v2698_v55 = vrot.slane %v2695_v61, 4  ;;  %v2711_v63 = vsel %vm1586_vm0, %v2710_v1, %v2704_v14 }
 0x6b3   : > { %v2756_v38 = vrot.slane %v2755_v28, 4  ;;  %v2717_v0 = vperm.slane %v2711_v63, %v6237_v21  ;;  %v2738_v3 = vsel %vm1586_vm0, %v2737_v47, %v2730_v34 }
 0x6b4   : > { %v2724_v56 = vrot.slane %v2721_v42, 4  ;;  %v2696_v31 = vrot.slane %v2691_v10, 4  ;;  %v2699_v16 = vsel %vm1586_vm0, 0, %v2698_v55  ;;  %v2742_v12 = vperm.slane %v2738_v3, %v6237_v21 }
 0x6b5   : > { %v2757_v45 = vsel %vm1586_vm0, %v2756_v38, %v2749_v53  ;;  %v2722_v9 = vrot.slane %v2717_v0, 4  ;;  %v2769_v4 = vrot.slane %v2699_v16, 4  ;;  %v2764_v40 = vsel %vm1586_vm0, %v2698_v55, %v2691_v10 }
 0x6b6   : > { %v2761_v19 = vperm.slane %v2757_v45, %v6237_v21  ;;  %v2725_v59 = vsel %vm1586_vm0, 0, %v2724_v56  ;;  %v2697_v30 = vsel %vm1586_vm0, 0, %v2696_v31  ;;  %v2783_v58 = vsel %vm1586_vm0, %v2724_v56, %v2717_v0 }
 0x6b7   : > { %v2788_v43 = vrot.slane %v2725_v59, 4  ;;  %v2723_v13 = vsel %vm1586_vm0, 0, %v2722_v9  ;;  %v2770_v2 = vsel %vm1586_vm0, %v2769_v4, %v2697_v30  ;;  %v2768_v20 = vperm.slane %v2764_v40, %v6233_v7  ;;  %v5608_v59 = vld [vmem:[%s7339_s14 + $0x8] sm:$0xff]  ;;  %v5607_v4 = vld [vmem:[%s7339_s14] sm:$0xff] }
 0x6b8   : > { %v2774_v14 = vperm.slane %v2770_v2, %v6233_v7  ;;  %v2762_v17 = vrot.slane %v2761_v19, 4  ;;  %v2804_v11 = vpack.i.b16 %v2761_v19, %v2742_v12  ;;  %v2743_v57 = vrot.slane %v2742_v12, 4  ;;  %2876 = vmatpush.bf16.msra.mxu2 %v5608_v59  ;;  %v5618_v59 = vld [vmem:[%s7345_s20 + $0x38] sm:$0xff] }
 0x6b9   : > { %v2789_v15 = vsel %vm1586_vm0, %v2788_v43, %v2723_v13  ;;  %v2787_v44 = vperm.slane %v2783_v58, %v6233_v7  ;;  %v2806_v23 = vshrl.u32 %v2761_v19, 16  ;;  %v2805_v8 = vshrl.u32 %v2742_v12, 16  ;;  %3069 = vmatpush.bf16.msra.mxu1 %v5618_v59  ;;  %v5624_v59 = vld [vmem:[%s7337_s12 + $0x58] sm:$0xff] }
 0x6ba   : > { %v2793_v18 = vperm.slane %v2789_v15, %v6233_v7  ;;  %v2775_v22 = vrot.slane %v2774_v14, 4  ;;  %v2763_v49 = vsel %vm1586_vm0, 0, %v2762_v17  ;;  %v2744_v33 = vsel %vm1586_vm0, 0, %v2743_v57  ;;  %v5681_v14 = vld [vmem:[%s7340_s15] ss:$0 sm:$0xff] }
 0x6bb   : > { %v2807_v36 = vpack.i.b16 %v2806_v23, %v2805_v8  ;;  %v2812_v27 = vshrl.u32 %v2763_v49, 16  ;;  %v2810_v47 = vpack.i.b16 %v2763_v49, %v2744_v33  ;;  %v2811_v28 = vshrl.u32 %v2744_v33, 16 }
 0x6bc   : > { %v2794_v5 = vrot.slane %v2793_v18, 4  ;;  %v2776_v62 = vsel %vm1586_vm0, %v2775_v22, %v2768_v20  ;;  %v2826_v1 = vunpack.c.l.b16 %v2804_v11  ;;  %2877 = vmatpush.bf16.msra.mxu2 %v5607_v4  ;;  %v5617_v4 = vld [vmem:[%s7345_s20 + $0x30] sm:$0xff] }
 0x6bd   : > { %v2780_v6 = vperm.slane %v2776_v62, %v6237_v21  ;;  %v2813_v54 = vpack.i.b16 %v2812_v27, %v2811_v28  ;;  %v2829_v10 = vunpack.c.l.b16 %v2807_v36  ;;  %v2834_v0 = vunpack.c.l.b16 %v2810_v47  ;;  %v5609_v27 = vld [vmem:[%s7343_s18] sm:$0xff]  ;;  %3070 = vmatpush.bf16.msra.mxu1 %v5617_v4 }
 0x6be   : > { %v2795_v46 = vsel %vm1586_vm0, %v2794_v5, %v2787_v44 }
 0x6bf   : > { %v2799_v32 = vperm.slane %v2795_v46, %v6237_v21  ;;  %v2781_v29 = vrot.slane %v2780_v6, 4  ;;  %v2817_v24 = vshrl.u32 %v2780_v6, 16  ;;  %v2839_v16 = vunpack.c.l.b16 %v2813_v54 }
 0x6c1   : > { %v2818_v50 = vshrl.u32 %v2799_v32, 16  ;;  %v2800_v25 = vrot.slane %v2799_v32, 4  ;;  %v2816_v48 = vpack.i.b16 %v2799_v32, %v2780_v6  ;;  %v2782_v39 = vsel %vm1586_vm0, 0, %v2781_v29  ;;  %v5610_v29 = vld [vmem:[%s7343_s18 + $0x8] sm:$0xff] }
 0x6c2   : > { %v2823_v42 = vshrl.u32 %v2782_v39, 16  ;;  %2978 = vmatpush.bf16.msra.mxu3 %v5610_v29 }
 0x6c3   : > { %v2819_v34 = vpack.i.b16 %v2818_v50, %v2817_v24  ;;  %v2801_v61 = vsel %vm1586_vm0, 0, %v2800_v25  ;;  %v2827_v52 = vunpack.c.l.b16 %v2816_v48 }
 0x6c4   : > { %v2822_v53 = vpack.i.b16 %v2801_v61, %v2782_v39  ;;  %v2824_v38 = vshrl.u32 %v2801_v61, 16 }
 0x6c5   : > { %v2830_v55 = vunpack.c.l.b16 %v2819_v34  ;;  %v2828_v63 = vpack.c.b16 %v2827_v52, %v2826_v1 }
 0x6c6   : > { %v2835_v56 = vunpack.c.l.b16 %v2822_v53  ;;  %v2825_v3 = vpack.i.b16 %v2824_v38, %v2823_v42  ;;  %2979 = vmatpush.bf16.msra.mxu3 %v5609_v27 }
 0x6c7   : > { %v2831_v45 = vpack.c.b16 %v2830_v55, %v2829_v10  ;;  %v5682_v10 = vld [vmem:[%s7341_s16] ss:$0 sm:$0xff] }
 0x6c8   : > { %v2836_v31 = vpack.c.b16 %v2835_v56, %v2834_v0  ;;  %v2840_v19 = vunpack.c.l.b16 %v2825_v3  ;;  %v5683_v56 = vld [vmem:[%s7342_s17] ss:$0 sm:$0xff] }
 0x6c9   : > { %2832 = vrot.lane.b32.xlu0 %v2831_v45, %s7362_s1  ;;  %s7390_s1 = smov 8  }
 0x6ca   : > { %2837 = vrot.lane.b32.xlu2 %v2836_v31, %s7361_s8  ;;  %v2841_v9 = vpack.c.b16 %v2840_v19, %v2839_v16  ;;  %s7389_s8 = smov 104  }
 0x6cc   : > { %2842 = vrot.lane.b32.xlu1 %v2841_v9, %s7360_s4  ;;  %s7387_s4 = smov 112  }
 0x724   : > { %v2838_v43 = vpop.permute.xlu2 %2837 }
 0x73b   : > { %v2833_v30 = vpop.permute.xlu0 %2832 }
 0x73c   : > { %v2846_v12 = vsel %vm2274_vm1, %v2828_v63, %v2833_v30  ;;  %v5616_v30 = vld [vmem:[%s7345_s20 + $0x28] sm:$0xff] }
 0x73d   : > { %v2848_v13 = vsel %vm2389_vm3, %v2846_v12, %v2838_v43  ;;  %3071 = vmatpush.bf16.msra.mxu1 %v5616_v30  ;;  %v5615_v43 = vld [vmem:[%s7345_s20 + $0x20] sm:$0xff] }
 0x73e   : > { %v2843_v40 = vpop.permute.xlu1 %2842  ;;  %v5684_v12 = vld [vmem:[%s7344_s19] ss:$0 sm:$0xff] }
 0x73f   : > { %v2851_v2 = vsel %vm2849_vm5, %v2848_v13, %v2843_v40  ;;  %v5614_v13 = vld [vmem:[%s7345_s20 + $0x18] sm:$0xff] }
 0x740   : > { %5362 = vmatmul.msk.bf16.vlgmr.msra.gmra.mxu2 %vm1363_vm8, %v2851_v2  ;;  %v5613_v2 = vld [vmem:[%s7345_s20 + $0x10] sm:$0xff] }
 0x741   : > { %3072 = vmatpush.bf16.msra.mxu1 %v5615_v43  ;;  %v5623_v43 = vld [vmem:[%s7337_s12 + $0x50] sm:$0xff] }
 0x745   : > { %3073 = vmatpush.bf16.msra.mxu1 %v5614_v13 }
 0x749   : > { %3074 = vmatpush.bf16.msra.mxu1 %v5613_v2 }
 0x7c3   : > { %v2879_v58 = vpop.f32.mrf.mxu2 }
 0x7c4   : > { %v2884_v15 = vadd.f32 %v2879_v58, %v6144_v37 }
 0x7c6   : > { %v6643_v17 = vadd.f32 %v5681_v14, %v2884_v15  ;;  %v5612_v15 = vld [vmem:[%s7345_s20 + $0x8] sm:$0xff] }
 0x7c7   : > { %3075 = vmatpush.bf16.msra.mxu1 %v5612_v15 }
 0x7c8   : > { %v2894_v18 = vsel %vm1363_vm8, %v6643_v17, 0.0 }
 0x7c9   : > { %2895 = vadd.xlane.f32.xlu0 %v2894_v18 }
 0x7cb   : > { %v2881_v11 = vpop.f32.mrf.mxu2 }
 0x7cc   : > { %v2885_v20 = vadd.f32 %v2881_v11, %v6151_v41 }
 0x7ce   : > { %v6648_v22 = vadd.f32 %v5681_v14, %v2885_v20  ;;  %v5611_v20 = vld [vmem:[%s7345_s20] sm:$0xff] }
 0x7cf   : > { %3076 = vmatpush.bf16.msra.mxu1 %v5611_v20 }
 0x7d0   : > { %v2897_v57 = vsel %vm1363_vm8, %v6648_v22, 0.0 }
 0x7d1   : > { %2898 = vadd.xlane.f32.xlu2 %v2897_v57 }
 0x83c   : > { %v2896_v44 = vpop.xlane.xlu0 %2895 }
 0x83d   : > { %v2900_v5 = vmul.f32 %v2896_v44, %v6155_v51 }
 0x83f   : > { %v2902_v37 = vsub.f32 %v6643_v17, %v2900_v5 }
 0x841   : > { %v2904_v23 = vmul.f32 %v2902_v37, %v2902_v37 }
 0x843   : > { %v2906_v62 = vsel %vm1363_vm8, %v2904_v23, 0.0 }
 0x844   : > { %2907 = vadd.xlane.f32.xlu1 %v2906_v62  ;;  %v2899_v49 = vpop.xlane.xlu2 %2898 }
 0x845   : > { %v2901_v6 = vmul.f32 %v2899_v49, %v6155_v51 }
 0x847   : > { %v2903_v41 = vsub.f32 %v6648_v22, %v2901_v6 }
 0x849   : > { %v2905_v46 = vmul.f32 %v2903_v41, %v2903_v41 }
 0x84b   : > { %v2909_v8 = vsel %vm1363_vm8, %v2905_v46, 0.0 }
 0x84c   : > { %2910 = vadd.xlane.f32.xlu0 %v2909_v8 }
 0x8b7   : > { %v2908_v32 = vpop.xlane.xlu1 %2907 }
 0x8b8   : > { %v2912_v33 = vmul.f32 %v2908_v32, %v6155_v51 }
 0x8ba   : > { %v2914_v36 = vadd.f32 1e-05, %v2912_v33 }
 0x8bc   : > { %5739 = vrsqrt.f32 %v2914_v36  ;;  %vm2922_vm7 = vweird.f32 %v2914_v36 }
 0x8bf   : > { %v2911_v24 = vpop.xlane.xlu0 %2910 }
 0x8c0   : > { %v2913_v50 = vmul.f32 %v2911_v24, %v6155_v51 }
 0x8c2   : > { %v5740_v25 = vpop.eup %5739  ;;  %v2915_v48 = vadd.f32 1e-05, %v2913_v50 }
 0x8c3   : > { %v2917_v39 = vmul.f32 %v5740_v25, %v2914_v36  ;;  %vm2923_vm6 = vweird.f32 %v5740_v25 }
 0x8c4   : > { %5741 = vrsqrt.f32 %v2915_v48  ;;  %vm2924_vm9 = vmor %vm2922_vm7, %vm2923_vm6  ;;  %vm2932_vm11 = vweird.f32 %v2915_v48 }
 0x8c5   : > { %v2918_v47 = vmul.f32 %v5740_v25, %v2917_v39 }
 0x8c7   : > { %v2919_v28 = vmul.f32 0.5, %v2918_v47 }
 0x8c9   : > { %v2920_v34 = vsub.f32 1.5, %v2919_v28 }
 0x8ca   : > { %v5742_v61 = vpop.eup %5741 }
 0x8cb   : > { %v2921_v1 = vmul.f32 %v5740_v25, %v2920_v34  ;;  %v2927_v52 = vmul.f32 %v5742_v61, %v2915_v48  ;;  %vm2933_vm10 = vweird.f32 %v5742_v61 }
 0x8cc   : > { %vm2934_vm12 = vmor %vm2932_vm11, %vm2933_vm10 }
 0x8cd   : > { %v2928_v53 = vmul.f32 %v5742_v61, %v2927_v52  ;;  %v2925_v54 = vsel %vm2924_vm9, %v5740_v25, %v2921_v1  ;;  %v5685_v25 = vld [vmem:[%s7346_s21] ss:$0 sm:$0xff] }
 0x8ce   : > { %v2936_v55 = vmul.f32 %v2925_v54, %v2902_v37 }
 0x8cf   : > { %v2929_v42 = vmul.f32 0.5, %v2928_v53 }
 0x8d0   : > { %v2941_v3 = vmul.f32 %v5682_v10, %v2936_v55 }
 0x8d1   : > { %v2930_v38 = vsub.f32 1.5, %v2929_v42 }
 0x8d2   : > { %v2946_v16 = vadd.f32 %v5683_v56, %v2941_v3 }
 0x8d3   : > { %v2931_v63 = vmul.f32 %v5742_v61, %v2930_v38 }
 0x8d5   : > { %v2935_v0 = vsel %vm2934_vm12, %v5742_v61, %v2931_v63 }
 0x8d6   : > { %v2937_v45 = vmul.f32 %v2935_v0, %v2903_v41 }
 0x8d8   : > { %v2942_v31 = vmul.f32 %v5682_v10, %v2937_v45 }
 0x8da   : > { %v2947_v19 = vadd.f32 %v5683_v56, %v2942_v31  ;;  %v5620_v31 = vld [vmem:[%s7337_s12 + $0x38] sm:$0xff] }
 0x8db   : > { %3181 = vmatpush.bf16.msrb.mxu2 %v5620_v31 }
 0x8dc   : > { %v2952_v9 = vpack.c.bf16 %v2947_v19, %v2946_v16  ;;  %v5622_v16 = vld [vmem:[%s7337_s12 + $0x48] sm:$0xff]  ;;  %v5619_v19 = vld [vmem:[%s7337_s12 + $0x30] sm:$0xff] }
 0x8dd   : > { %3217 = vmatpush.bf16.msrb.mxu3 %v5622_v16 }
 0x8de   : > { %5371 = vmatmul.msk.bf16.vlgmr.msra.gmra.mxu3 %vm1363_vm8, %v2952_v9  ;;  %v5621_v9 = vld [vmem:[%s7337_s12 + $0x40] sm:$0xff] }
 0x8df   : > { %3182 = vmatpush.bf16.msrb.mxu2 %v5619_v19 }
 0x8e1   : > { %3218 = vmatpush.bf16.msrb.mxu3 %v5621_v9 }
 0x8e3   : > { %3253 = vmatpush.bf16.msra.mxu2 %v5624_v59 }
 0x8e7   : > { %3254 = vmatpush.bf16.msra.mxu2 %v5623_v43 }
 0x961   : > { %v2981_v40 = vpop.f32.mrf.mxu3 }
 0x962   : > { %v2982_v14 = vadd.f32 %v5684_v12, %v2981_v40 }
 0x964   : > { %v2986_v58 = vmul.f32 %v2982_v14, %v2982_v14 }
 0x966   : > { %v2988_v18 = vmul.f32 %v2986_v58, %v2982_v14 }
 0x968   : > { %v2990_v11 = vmul.f32 0.044715, %v2988_v18 }
 0x969   : > { %v2983_v57 = vpop.f32.mrf.mxu3 }
 0x96a   : > { %v2992_v44 = vadd.f32 %v2990_v11, %v2982_v14  ;;  %v2984_v5 = vadd.f32 %v5684_v12, %v2983_v57 }
 0x96c   : > { %v2994_v37 = vmul.f32 0.7978846, %v2992_v44  ;;  %v2987_v23 = vmul.f32 %v2984_v5, %v2984_v5 }
 0x96e   : > { %v2989_v62 = vmul.f32 %v2987_v23, %v2984_v5  ;;  %5743 = vtanh.f32 %v2994_v37  ;;  %v5686_v37 = vld [vmem:[%s7335_s10 + $0x1] ss:$0 sm:$0xff] }
 0x970   : > { %v2991_v49 = vmul.f32 0.044715, %v2989_v62 }
 0x972   : > { %v2993_v6 = vadd.f32 %v2991_v49, %v2984_v5 }
 0x974   : > { %v2995_v41 = vmul.f32 0.7978846, %v2993_v6  ;;  %v5744_v46 = vpop.eup %5743  ;;  %v5687_v6 = vld [vmem:[%s7336_s11 + $0x1] ss:$0 sm:$0xff] }
 0x975   : > { %v2998_v8 = vadd.f32 1.0, %v5744_v46 }
 0x976   : > { %5745 = vtanh.f32 %v2995_v41 }
 0x977   : > { %v3000_v33 = vmul.f32 0.5, %v2998_v8 }
 0x979   : > { %v3002_v27 = vmul.f32 %v3000_v33, %v2982_v14 }
 0x97c   : > { %v5746_v32 = vpop.eup %5745 }
 0x97d   : > { %v2999_v36 = vadd.f32 1.0, %v5746_v32 }
 0x97f   : > { %v3001_v29 = vmul.f32 0.5, %v2999_v36 }
 0x981   : > { %v3003_v24 = vmul.f32 %v3001_v29, %v2984_v5  ;;  %v5688_v29 = vld [vmem:[%s7338_s13 + $0x3] ss:$0 sm:$0xff] }
 0x983   : > { %v3020_v50 = vpack.c.bf16 %v3003_v24, %v3002_v27  ;;  %v5689_v27 = vld [vmem:[%s7338_s13 + $0x4] ss:$0 sm:$0xff] }
 0x985   : > { %3077 = vmatmul.bf16.vlgmr.msra.gmra.mxu1 %v3020_v50 }
 0xa02   : > { %v3078_v48 = vpop.f32.mrf.mxu1 }
 0xa03   : > { %v3083_v39 = vadd.f32 %v3078_v48, %v6643_v17 }
 0xa05   : > { %v6704_v47 = vadd.f32 %v5685_v25, %v3083_v39 }
 0xa07   : > { %v3095_v28 = vsel %vm1363_vm8, %v6704_v47, 0.0 }
 0xa08   : > { %3096 = vadd.xlane.f32.xlu2 %v3095_v28 }
 0xa0a   : > { %v3080_v34 = vpop.f32.mrf.mxu1 }
 0xa0b   : > { %v3084_v61 = vadd.f32 %v3080_v34, %v6648_v22 }
 0xa0d   : > { %v6709_v1 = vadd.f32 %v5685_v25, %v3084_v61 }
 0xa0f   : > { %v3098_v52 = vsel %vm1363_vm8, %v6709_v1, 0.0 }
 0xa10   : > { %3099 = vadd.xlane.f32.xlu0 %v3098_v52 }
 0xa7b   : > { %v3097_v53 = vpop.xlane.xlu2 %3096 }
 0xa7c   : > { %v3101_v54 = vmul.f32 %v3097_v53, %v6155_v51 }
 0xa7e   : > { %v3103_v17 = vsub.f32 %v6704_v47, %v3101_v54 }
 0xa80   : > { %v3105_v42 = vmul.f32 %v3103_v17, %v3103_v17 }
 0xa82   : > { %v3107_v38 = vsel %vm1363_vm8, %v3105_v42, 0.0 }
 0xa83   : > { %3108 = vadd.xlane.f32.xlu1 %v3107_v38  ;;  %v3100_v10 = vpop.xlane.xlu0 %3099  ;;  %v5690_v38 = vld [vmem:[%s7338_s13 + $0x5] ss:$0 sm:$0xff] }
 0xa84   : > { %v3102_v55 = vmul.f32 %v3100_v10, %v6155_v51 }
 0xa86   : > { %v3104_v22 = vsub.f32 %v6709_v1, %v3102_v55 }
 0xa88   : > { %v3106_v63 = vmul.f32 %v3104_v22, %v3104_v22 }
 0xa8a   : > { %v3110_v0 = vsel %vm1363_vm8, %v3106_v63, 0.0 }
 0xa8b   : > { %3111 = vadd.xlane.f32.xlu2 %v3110_v0 }
 0xaf6   : > { %v3109_v56 = vpop.xlane.xlu1 %3108 }
 0xaf7   : > { %v3113_v3 = vmul.f32 %v3109_v56, %v6155_v51 }
 0xaf9   : > { %v3115_v45 = vadd.f32 1e-05, %v3113_v3 }
 0xafb   : > { %5747 = vrsqrt.f32 %v3115_v45  ;;  %vm3123_vm14 = vweird.f32 %v3115_v45 }
 0xafe   : > { %v3112_v4 = vpop.xlane.xlu2 %3111 }
 0xaff   : > { %v3114_v30 = vmul.f32 %v3112_v4, %v6155_v51 }
 0xb01   : > { %v5748_v12 = vpop.eup %5747  ;;  %v3116_v13 = vadd.f32 1e-05, %v3114_v30 }
 0xb02   : > { %v3118_v40 = vmul.f32 %v5748_v12, %v3115_v45  ;;  %vm3124_vm13 = vweird.f32 %v5748_v12 }
 0xb03   : > { %5749 = vrsqrt.f32 %v3116_v13  ;;  %vm3125_vm15 = vmor %vm3123_vm14, %vm3124_vm13  ;;  %vm3133_vm4 = vweird.f32 %v3116_v13 }
 0xb04   : > { %v3119_v2 = vmul.f32 %v5748_v12, %v3118_v40 }
 0xb06   : > { %v3120_v14 = vmul.f32 0.5, %v3119_v2 }
 0xb08   : > { %v3121_v58 = vsub.f32 1.5, %v3120_v14 }
 0xb09   : > { %v5750_v15 = vpop.eup %5749 }
 0xb0a   : > { %v3122_v18 = vmul.f32 %v5748_v12, %v3121_v58  ;;  %v3128_v11 = vmul.f32 %v5750_v15, %v3116_v13  ;;  %vm3134_vm2 = vweird.f32 %v5750_v15 }
 0xb0b   : > { %vm3135_vm6 = vmor %vm3133_vm4, %vm3134_vm2 }
 0xb0c   : > { %v3129_v20 = vmul.f32 %v5750_v15, %v3128_v11  ;;  %v3126_v57 = vsel %vm3125_vm15, %v5748_v12, %v3122_v18 }
 0xb0d   : > { %v3137_v23 = vmul.f32 %v3126_v57, %v3103_v17 }
 0xb0e   : > { %v3130_v44 = vmul.f32 0.5, %v3129_v20 }
 0xb0f   : > { %v3142_v41 = vmul.f32 %v5686_v37, %v3137_v23 }
 0xb10   : > { %v3131_v5 = vsub.f32 1.5, %v3130_v44 }
 0xb11   : > { %v3147_v32 = vadd.f32 %v5687_v6, %v3142_v41 }
 0xb12   : > { %v3132_v62 = vmul.f32 %v5750_v15, %v3131_v5 }
 0xb14   : > { %v3136_v49 = vsel %vm3135_vm6, %v5750_v15, %v3132_v62 }
 0xb15   : > { %v3138_v46 = vmul.f32 %v3136_v49, %v3104_v22 }
 0xb17   : > { %v3143_v8 = vmul.f32 %v5686_v37, %v3138_v46 }
 0xb19   : > { %v3148_v33 = vadd.f32 %v5687_v6, %v3143_v8 }
 0xb1b   : > { %v3154_v36 = vpack.c.bf16 %v3148_v33, %v3147_v32 }
 0xb1d   : > { %5419 = vmatmul.msk.bf16.vlgmr.msrb.gmra.mxu2 %vm1363_vm8, %v3154_v36  ;;  %5433 = vmatmul.msk.bf16.vlgmr.msrb.gmra.mxu3 %vm1363_vm8, %v3154_v36 }
 0xb2d   : > { %5447 = vmatmul.msk.bf16.vlgmr.msra.gmra.mxu2 %vm1363_vm8, %v3154_v36 }
 0xba0   : > { %v3184_v24 = vpop.f32.mrf.mxu2  ;;  %v3220_v50 = vpop.f32.mrf.mxu3 }
 0xba1   : > { %v3185_v25 = vadd.f32 %v5688_v29, %v3184_v24  ;;  %v3221_v48 = vadd.f32 %v5689_v27, %v3220_v50 }
 0xba3   : > { %v3261_v39 = vpack.c.bf16 %v3185_v25, %v3185_v25  ;;  %v3505_v28 = vpack.c.bf16 %v3221_v48, %v3221_v48 }
 0xba5   : > { %3513 = vrot.lane.b32.xlu2 %v3505_v28, %s7387_s4  ;;  %3509 = vrot.lane.b32.xlu0 %v3505_v28, %s7388_s0  ;;  %v3524_v16 = vshrl.u32 %v3505_v28, 16  ;;  %v3280_v58 = vshrl.u32 %v3261_v39, 16 }
 0xba6   : > { %3269 = vrot.lane.b32.xlu1 %v3261_v39, %s7387_s4 }
 0xba8   : > { %v3186_v34 = vpop.f32.mrf.mxu2  ;;  %v3222_v61 = vpop.f32.mrf.mxu3 }
 0xba9   : > { %v3223_v52 = vadd.f32 %v5689_v27, %v3222_v61  ;;  %v3187_v54 = vadd.f32 %v5688_v29, %v3186_v34 }
 0xbab   : > { %v6757_v53 = vpack.c.bf16 %v3223_v52, %v3223_v52  ;;  %v6763_v42 = vpack.c.bf16 %v3187_v54, %v3187_v54 }
 0xbad   : > { %3517 = vrot.lane.b32.xlu0 %v3505_v28, %s7389_s8  ;;  %3265 = vrot.lane.b32.xlu2 %v3261_v39, %s7388_s0  ;;  %v3536_v15 = vshrl.u32 %v6757_v53, 16 }
 0xbae   : > { %3511 = vrot.lane.b32.xlu1 %v6757_v53, %s7388_s0 }
 0xbb0   : > { %v3256_v17 = vpop.f32.mrf.mxu2 }
 0xbb1   : > { %v3257_v63 = vadd.f32 %v5690_v38, %v3256_v17 }
 0xbb3   : > { %v6782_v0 = vpack.c.bf16 %v3257_v63, %v3257_v63 }
 0xbb5   : > { %3515 = vrot.lane.b32.xlu0 %v6757_v53, %s7387_s4  ;;  %3271 = vrot.lane.b32.xlu2 %v6763_v42, %s7387_s4 }
 0xbb6   : > { %3519 = vrot.lane.b32.xlu1 %v6757_v53, %s7389_s8 }
 0xbb8   : > { %v3258_v10 = vpop.f32.mrf.mxu2 }
 0xbb9   : > { %v3259_v55 = vadd.f32 %v5690_v38, %v3258_v10 }
 0xbbb   : > { %v6774_v22 = vpack.c.bf16 %v3259_v55, %v3259_v55 }
 0xbbd   : > { %3267 = vrot.lane.b32.xlu0 %v6763_v42, %s7388_s0  ;;  %3755 = vrot.lane.b32.xlu2 %v6774_v22, %s7388_s0 }
 0xbbe   : > { %3275 = vrot.lane.b32.xlu1 %v6763_v42, %s7389_s8 }
 0xbc5   : > { %3273 = vrot.lane.b32.xlu0 %v3261_v39, %s7389_s8 }
 0xbc6   : > { %3753 = vrot.lane.b32.xlu1 %v6782_v0, %s7388_s0 }
 0xbcd   : > { %3757 = vrot.lane.b32.xlu0 %v6782_v0, %s7387_s4 }
 0xbff   : > { %v3514_v56 = vpop.permute.xlu2 %3513 }
 0xc00   : > { %v3530_v13 = vshrl.u32 %v3514_v56, 16 }
 0xc07   : > { %v3266_v59 = vpop.permute.xlu2 %3265 }
 0xc08   : > { %v3281_v30 = vshrl.u32 %v3266_v59, 16  ;;  %v3279_v11 = vpack.i.b16 %v3266_v59, %v3261_v39 }
 0xc0a   : > { %v3282_v5 = vpack.i.b16 %v3281_v30, %v3280_v58  ;;  %v6800_v8 = vperm.slane %v3279_v11, %v6233_v7 }
 0xc0c   : > { %v6805_v29 = vperm.slane %v3282_v5, %v6233_v7 }
 0xc17   : > { %v3510_v3 = vpop.permute.xlu0 %3509 }
 0xc18   : > { %v3525_v45 = vshrl.u32 %v3510_v3, 16  ;;  %v6789_v31 = vpop.permute.xlu1 %3269  ;;  %v3523_v19 = vpack.i.b16 %v3510_v3, %v3505_v28  ;;  %v3313_v3 = vrot.slane %v6800_v8, 4 }
 0xc1a   : > { %v3526_v9 = vpack.i.b16 %v3525_v45, %v3524_v16  ;;  %v3549_v4 = vperm.slane %v3523_v19, %v6233_v7  ;;  %v3292_v19 = vshrl.u32 %v6763_v42, 16 }
 0xc1c   : > { %v3575_v43 = vperm.slane %v3526_v9, %v6233_v7  ;;  %v3557_v20 = vrot.slane %v3549_v4, 4  ;;  %v3339_v9 = vrot.slane %v6805_v29, 4 }
 0xc1e   : > { %v3583_v37 = vrot.slane %v3575_v43, 4 }
 0xc1f   : > { %v3518_v12 = vpop.permute.xlu0 %3517 }
 0xc20   : > { %v3529_v40 = vpack.i.b16 %v3518_v12, %v3514_v56  ;;  %v3531_v2 = vshrl.u32 %v3518_v12, 16  ;;  %v3512_v14 = vpop.permute.xlu1 %3511 }
 0xc21   : > { %v3537_v18 = vshrl.u32 %v3512_v14, 16  ;;  %v3535_v23 = vpack.i.b16 %v3512_v14, %v6757_v53 }
 0xc22   : > { %v3532_v57 = vpack.i.b16 %v3531_v2, %v3530_v13  ;;  %v3554_v44 = vperm.slane %v3529_v40, %v6233_v7 }
 0xc23   : > { %v3538_v41 = vpack.i.b16 %v3537_v18, %v3536_v15  ;;  %v3601_v39 = vperm.slane %v3535_v23, %v6233_v7 }
 0xc24   : > { %v3555_v62 = vrot.slane %v3554_v44, 4  ;;  %v3558_v49 = vsel %vm1586_vm0, %v3554_v44, %v3557_v20  ;;  %v3580_v6 = vperm.slane %v3532_v57, %v6233_v7 }
 0xc25   : > { %v3566_v46 = vperm.slane %v3558_v49, %v6237_v21  ;;  %v3627_v28 = vperm.slane %v3538_v41, %v6233_v7  ;;  %v3609_v59 = vrot.slane %v3601_v39, 4 }
 0xc26   : > { %v3556_v32 = vsel %vm1586_vm0, %v3555_v62, %v3549_v4  ;;  %v3581_v33 = vrot.slane %v3580_v6, 4  ;;  %v3584_v36 = vsel %vm1586_vm0, %v3580_v6, %v3583_v37  ;;  %v3272_v37 = vpop.permute.xlu2 %3271 }
 0xc27   : > { %v3562_v27 = vperm.slane %v3556_v32, %v6237_v21  ;;  %v3569_v24 = vrot.slane %v3566_v46, 4  ;;  %v3592_v50 = vperm.slane %v3584_v36, %v6237_v21  ;;  %v3516_v25 = vpop.permute.xlu0 %3515  ;;  %v3635_v4 = vrot.slane %v3627_v28, 4 }
 0xc28   : > { %v3582_v48 = vsel %vm1586_vm0, %v3581_v33, %v3575_v43  ;;  %v3542_v34 = vshrl.u32 %v3516_v25, 16  ;;  %v3520_v61 = vpop.permute.xlu1 %3519 }
 0xc29   : > { %v3567_v52 = vrot.slane %v3562_v27, 4  ;;  %v3570_v53 = vsel %vm1586_vm0, 0, %v3569_v24  ;;  %v3588_v54 = vperm.slane %v3582_v48, %v6237_v21  ;;  %v3595_v17 = vrot.slane %v3592_v50, 4 }
 0xc2a   : > { %v3654_v38 = vrot.slane %v3570_v53, 4  ;;  %v3541_v10 = vpack.i.b16 %v3520_v61, %v3516_v25  ;;  %v3543_v55 = vshrl.u32 %v3520_v61, 16  ;;  %v6821_v43 = vsel %vm1586_vm0, %v3569_v24, %v3562_v27 }
 0xc2b   : > { %v3568_v63 = vsel %vm1586_vm0, 0, %v3567_v52  ;;  %v3593_v56 = vrot.slane %v3588_v54, 4  ;;  %v3596_v45 = vsel %vm1586_vm0, 0, %v3595_v17  ;;  %v6825_v13 = vsel %vm1586_vm0, %v3595_v17, %v3588_v54 }
 0xc2c   : > { %v3544_v16 = vpack.i.b16 %v3543_v55, %v3542_v34  ;;  %v3606_v30 = vperm.slane %v3541_v10, %v6233_v7  ;;  %v3655_v12 = vsel %vm1586_vm0, %v3654_v38, %v3568_v63  ;;  %v3673_v14 = vrot.slane %v3596_v45, 4 }
 0xc2d   : > { %v3594_v2 = vsel %vm1586_vm0, 0, %v3593_v56  ;;  %v3659_v23 = vperm.slane %v3655_v12, %v6233_v7  ;;  %v3298_v50 = vshrl.u32 %v3272_v37, 16  ;;  %v3286_v25 = vshrl.u32 %v6789_v31, 16 }
 0xc2e   : > { %v3632_v40 = vperm.slane %v3544_v16, %v6233_v7  ;;  %v3607_v58 = vrot.slane %v3606_v30, 4  ;;  %v3610_v15 = vsel %vm1586_vm0, %v3606_v30, %v3609_v59  ;;  %v6842_v48 = vsel %vm1586_vm0, %v3673_v14, %v3594_v2 }
 0xc2f   : > { %v3268_v18 = vpop.permute.xlu0 %3267  ;;  %v3618_v11 = vperm.slane %v3610_v15, %v6237_v21  ;;  %v3653_v34 = vperm.slane %v6821_v43, %v6233_v7  ;;  %v3672_v53 = vperm.slane %v6825_v13, %v6233_v7  ;;  %v6853_v38 = vrot.slane %v3659_v23, 4 }
 0xc30   : > { %v3633_v20 = vrot.slane %v3632_v40, 4  ;;  %v3636_v57 = vsel %vm1586_vm0, %v3632_v40, %v3635_v4  ;;  %v3291_v44 = vpack.i.b16 %v3268_v18, %v6763_v42  ;;  %v3276_v5 = vpop.permute.xlu1 %3275  ;;  %v3608_v62 = vsel %vm1586_vm0, %v3607_v58, %v3601_v39 }
 0xc31   : > { %v3644_v49 = vperm.slane %v3636_v57, %v6237_v21  ;;  %v3293_v6 = vshrl.u32 %v3268_v18, 16  ;;  %v3614_v41 = vperm.slane %v3608_v62, %v6237_v21  ;;  %v3621_v46 = vrot.slane %v3618_v11, 4 }
 0xc32   : > { %v3634_v32 = vsel %vm1586_vm0, %v3633_v20, %v3627_v28  ;;  %v3357_v33 = vperm.slane %v3291_v44, %v6233_v7  ;;  %v3299_v24 = vshrl.u32 %v3276_v5, 16  ;;  %v3297_v39 = vpack.i.b16 %v3276_v5, %v3272_v37 }
 0xc33   : > { %v3640_v36 = vperm.slane %v3634_v32, %v6237_v21  ;;  %v3647_v27 = vrot.slane %v3644_v49, 4  ;;  %v3294_v42 = vpack.i.b16 %v3293_v6, %v3292_v19  ;;  %v3619_v61 = vrot.slane %v3614_v41, 4 }
 0xc34   : > { %v3622_v28 = vsel %vm1586_vm0, 0, %v3621_v46  ;;  %v6848_v52 = vsel %vm1586_vm0, %v3621_v46, %v3614_v41  ;;  %v3365_v54 = vrot.slane %v3357_v33, 4  ;;  %v3300_v63 = vpack.i.b16 %v3299_v24, %v3298_v50 }
 0xc35   : > { %v3383_v17 = vperm.slane %v3294_v42, %v6233_v7  ;;  %v3645_v10 = vrot.slane %v3640_v36, 4  ;;  %v6856_v55 = vsel %vm1586_vm0, 0, %v3647_v27  ;;  %v3678_v45 = vperm.slane %v6842_v48, %v6233_v7 }
 0xc36   : > { %v3691_v16 = vperm.slane %v6848_v52, %v6233_v7  ;;  %v3692_v19 = vrot.slane %v3622_v28, 4  ;;  %v3362_v4 = vperm.slane %v3297_v39, %v6233_v7  ;;  %v3620_v30 = vsel %vm1586_vm0, 0, %v3619_v61 }
 0xc37   : > { %v3274_v56 = vpop.permute.xlu0 %3273  ;;  %v3391_v59 = vrot.slane %v3383_v17, 4  ;;  %v3388_v12 = vperm.slane %v3300_v63, %v6233_v7  ;;  %v6867_v14 = vsel %vm1586_vm0, %v3647_v27, %v3640_v36  ;;  %v3711_v58 = vrot.slane %v6856_v55, 4 }
 0xc38   : > { %v3285_v40 = vpack.i.b16 %v3274_v56, %v6789_v31  ;;  %v3287_v2 = vshrl.u32 %v3274_v56, 16  ;;  %v3363_v15 = vrot.slane %v3362_v4, 4  ;;  %v3366_v18 = vsel %vm1586_vm0, %v3362_v4, %v3365_v54 }
 0xc39   : > { %v3374_v11 = vperm.slane %v3366_v18, %v6237_v21  ;;  %v3389_v20 = vrot.slane %v3388_v12, 4  ;;  %v3392_v57 = vsel %vm1586_vm0, %v3388_v12, %v3391_v59  ;;  %v3646_v5 = vsel %vm1586_vm0, 0, %v3645_v10 }
 0xc3a   : > { %v3288_v44 = vpack.i.b16 %v3287_v2, %v3286_v25  ;;  %v3364_v37 = vsel %vm1586_vm0, %v3363_v15, %v3357_v33  ;;  %v3400_v31 = vperm.slane %v3392_v57, %v6237_v21  ;;  %v3310_v23 = vperm.slane %v3285_v40, %v6233_v7 }
 0xc3b   : > { %v3693_v62 = vsel %vm1586_vm0, %v3692_v19, %v3620_v30  ;;  %v3370_v49 = vperm.slane %v3364_v37, %v6237_v21  ;;  %v3377_v6 = vrot.slane %v3374_v11, 4  ;;  %v3390_v41 = vsel %vm1586_vm0, %v3389_v20, %v3383_v17 }
 0xc3c   : > { %v3396_v46 = vperm.slane %v3390_v41, %v6237_v21  ;;  %v3403_v32 = vrot.slane %v3400_v31, 4  ;;  %v3311_v36 = vrot.slane %v3310_v23, 4  ;;  %v3314_v27 = vsel %vm1586_vm0, %v3310_v23, %v3313_v3 }
 0xc3d   : > { %v3375_v33 = vrot.slane %v3370_v49, 4  ;;  %v3378_v42 = vsel %vm1586_vm0, 0, %v3377_v6  ;;  %v3322_v24 = vperm.slane %v3314_v27, %v6237_v21  ;;  %v3336_v50 = vperm.slane %v3288_v44, %v6233_v7 }
 0xc3e   : > { %v3710_v25 = vperm.slane %v6867_v14, %v6233_v7  ;;  %v3401_v39 = vrot.slane %v3396_v46, 4  ;;  %v3404_v61 = vsel %vm1586_vm0, 0, %v3403_v32  ;;  %v3448_v28 = vrot.slane %v3378_v42, 4 }
 0xc3f   : > { %v3697_v54 = vperm.slane %v3693_v62, %v6233_v7  ;;  %v3376_v17 = vsel %vm1586_vm0, 0, %v3375_v33  ;;  %v3467_v10 = vrot.slane %v3404_v61, 4  ;;  %v3312_v3 = vsel %vm1586_vm0, %v3311_v36, %v6800_v8 }
 0xc40   : > { %v3402_v55 = vsel %vm1586_vm0, 0, %v3401_v39  ;;  %v3443_v63 = vsel %vm1586_vm0, %v3377_v6, %v3370_v49  ;;  %v3449_v56 = vsel %vm1586_vm0, %v3448_v28, %v3376_v17  ;;  %v3318_v19 = vperm.slane %v3312_v3, %v6237_v21 }
 0xc41   : > { %v3453_v59 = vperm.slane %v3449_v56, %v6233_v7  ;;  %v3468_v4 = vsel %vm1586_vm0, %v3467_v10, %v3402_v55  ;;  %v3325_v30 = vrot.slane %v3322_v24, 4  ;;  %v3337_v12 = vrot.slane %v3336_v50, 4 }
 0xc42   : > { %v6901_v40 = vsel %vm1586_vm0, %v3403_v32, %v3396_v46  ;;  %v3472_v2 = vperm.slane %v3468_v4, %v6233_v7  ;;  %v3323_v8 = vrot.slane %v3318_v19, 4  ;;  %v3340_v14 = vsel %vm1586_vm0, %v3336_v50, %v3339_v9 }
 0xc43   : > { %v3454_v15 = vrot.slane %v3453_v59, 4  ;;  %v3326_v18 = vsel %vm1586_vm0, 0, %v3325_v30  ;;  %v3338_v11 = vsel %vm1586_vm0, %v3337_v12, %v6805_v29  ;;  %v3348_v20 = vperm.slane %v3340_v14, %v6237_v21 }
 0xc44   : > { %v3447_v57 = vperm.slane %v3443_v63, %v6233_v7  ;;  %v3324_v44 = vsel %vm1586_vm0, 0, %v3323_v8  ;;  %v3344_v37 = vperm.slane %v3338_v11, %v6237_v21  ;;  %v3661_v9 = vsel %vm1586_vm0, %v6853_v38, %v3653_v34 }
 0xc45   : > { %v3712_v31 = vsel %vm1586_vm0, %v3711_v58, %v3646_v5  ;;  %v3351_v23 = vrot.slane %v3348_v20, 4  ;;  %v3405_v62 = vsel %vm1586_vm0, %v3325_v30, %v3318_v19  ;;  %v3410_v29 = vrot.slane %v3326_v18, 4 }
 0xc46   : > { %v3455_v49 = vsel %vm1586_vm0, %v3454_v15, %v3447_v57  ;;  %v3466_v6 = vperm.slane %v6901_v40, %v6233_v7  ;;  %v3473_v41 = vrot.slane %v3472_v2, 4  ;;  %v3349_v46 = vrot.slane %v3344_v37, 4 }
 0xc47   : > { %v3352_v32 = vsel %vm1586_vm0, 0, %v3351_v23  ;;  %v3411_v43 = vsel %vm1586_vm0, %v3410_v29, %v3324_v44  ;;  %v3424_v36 = vsel %vm1586_vm0, %v3351_v23, %v3344_v37  ;;  %v3665_v34 = vperm.slane %v3661_v9, %v6237_v21 }
 0xc48   : > { %v3350_v38 = vsel %vm1586_vm0, 0, %v3349_v46  ;;  %v3409_v58 = vperm.slane %v3405_v62, %v6233_v7  ;;  %v3415_v5 = vperm.slane %v3411_v43, %v6233_v7  ;;  %v3429_v27 = vrot.slane %v3352_v32, 4 }
 0xc49   : > { %v3428_v33 = vperm.slane %v3424_v36, %v6233_v7  ;;  %v3679_v42 = vrot.slane %v3678_v45, 4  ;;  %v3698_v24 = vrot.slane %v3697_v54, 4  ;;  %v3716_v50 = vperm.slane %v3712_v31, %v6233_v7 }
 0xc4a   : > { %v3416_v39 = vrot.slane %v3415_v5, 4  ;;  %v3430_v61 = vsel %vm1586_vm0, %v3429_v27, %v3350_v38  ;;  %v3728_v28 = vshrl.u32 %v3665_v34, 16  ;;  %v3666_v17 = vrot.slane %v3665_v34, 4 }
 0xc4b   : > { %v3434_v10 = vperm.slane %v3430_v61, %v6233_v7  ;;  %v3680_v3 = vsel %vm1586_vm0, %v3679_v42, %v3672_v53  ;;  %v3699_v48 = vsel %vm1586_vm0, %v3698_v24, %v3691_v16  ;;  %v3717_v45 = vrot.slane %v3716_v50, 4 }
 0xc4c   : > { %v3417_v54 = vsel %vm1586_vm0, %v3416_v39, %v3409_v58  ;;  %v3684_v55 = vperm.slane %v3680_v3, %v6237_v21  ;;  %v3703_v63 = vperm.slane %v3699_v48, %v6237_v21  ;;  %v3667_v56 = vsel %vm1586_vm0, 0, %v3666_v17 }
 0xc4d   : > { %v3435_v19 = vrot.slane %v3434_v10, 4  ;;  %v3718_v59 = vsel %vm1586_vm0, %v3717_v45, %v3710_v25  ;;  %v3734_v13 = vshrl.u32 %v3667_v56, 16  ;;  %v3421_v53 = vperm.slane %v3417_v54, %v6237_v21 }
 0xc4e   : > { %v3722_v4 = vperm.slane %v3718_v59, %v6237_v21  ;;  %v3727_v52 = vpack.i.b16 %v3684_v55, %v3665_v34  ;;  %v3729_v30 = vshrl.u32 %v3684_v55, 16  ;;  %v3740_v16 = vshrl.u32 %v3703_v63, 16 }
 0xc4f   : > { %v3685_v12 = vrot.slane %v3684_v55, 4  ;;  %v3704_v40 = vrot.slane %v3703_v63, 4  ;;  %v3436_v2 = vsel %vm1586_vm0, %v3435_v19, %v3428_v33  ;;  %v3459_v8 = vperm.slane %v3455_v49, %v6237_v21 }
 0xc50   : > { %v3739_v14 = vpack.i.b16 %v3722_v4, %v3703_v63  ;;  %v3996_v15 = vunpack.c.l.b16 %v3727_v52  ;;  %v3730_v18 = vpack.i.b16 %v3729_v30, %v3728_v28  ;;  %v3741_v11 = vshrl.u32 %v3722_v4, 16 }
 0xc51   : > { %v3686_v25 = vsel %vm1586_vm0, 0, %v3685_v12  ;;  %v3705_v20 = vsel %vm1586_vm0, 0, %v3704_v40  ;;  %v3723_v57 = vrot.slane %v3722_v4, 4  ;;  %v3440_v44 = vperm.slane %v3436_v2, %v6237_v21 }
 0xc52   : > { %v3997_v37 = vunpack.c.l.b16 %v3739_v14  ;;  %v3742_v9 = vpack.i.b16 %v3741_v11, %v3740_v16  ;;  %v4022_v31 = vunpack.c.l.b16 %v3730_v18  ;;  %v3733_v23 = vpack.i.b16 %v3686_v25, %v3667_v56 }
 0xc53   : > { %v3724_v62 = vsel %vm1586_vm0, 0, %v3723_v57  ;;  %v3735_v29 = vshrl.u32 %v3686_v25, 16  ;;  %v3746_v46 = vshrl.u32 %v3705_v20, 16  ;;  %v3474_v49 = vsel %vm1586_vm0, %v3473_v41, %v3466_v6 }
 0xc54   : > { %v3998_v32 = vpack.c.b16 %v3997_v37, %v3996_v15  ;;  %v4023_v43 = vunpack.c.l.b16 %v3742_v9  ;;  %v3745_v36 = vpack.i.b16 %v3724_v62, %v3705_v20  ;;  %v4048_v34 = vunpack.c.l.b16 %v3733_v23 }
 0xc55   : > { %v3736_v38 = vpack.i.b16 %v3735_v29, %v3734_v13  ;;  %v3747_v58 = vshrl.u32 %v3724_v62, 16  ;;  %v3478_v5 = vperm.slane %v3474_v49, %v6237_v21  ;;  %v3483_v27 = vpack.i.b16 %v3440_v44, %v3421_v53 }
 0xc56   : > { %v4003_v33 = vsel %vm2274_vm1, %v3998_v32, 0  ;;  %v4024_v42 = vpack.c.b16 %v4023_v43, %v4022_v31  ;;  %v4049_v24 = vunpack.c.l.b16 %v3745_v36  ;;  %v3484_v50 = vshrl.u32 %v3421_v53, 16 }
 0xc57   : > { %4012 = vmatpush.bf16.xpose.msra.mxu3 %v4003_v33  ;;  %v3748_v39 = vpack.i.b16 %v3747_v58, %v3746_v46  ;;  %v4074_v61 = vunpack.c.l.b16 %v3736_v38  ;;  %v3495_v28 = vpack.i.b16 %v3478_v5, %v3459_v8  ;;  %v3993_v17 = vunpack.c.l.b16 %v3483_v27 }
 0xc58   : > { %v4029_v6 = vsel %vm2274_vm1, %v4024_v42, 0  ;;  %v4050_v41 = vpack.c.b16 %v4049_v24, %v4048_v34  ;;  %v3485_v10 = vshrl.u32 %v3440_v44, 16  ;;  %v3496_v3 = vshrl.u32 %v3459_v8, 16 }
 0xc59   : > { %4038 = vmatpush.bf16.xpose.msrb.mxu1 %v4029_v6  ;;  %v4075_v48 = vunpack.c.l.b16 %v3748_v39  ;;  %v3994_v45 = vunpack.c.l.b16 %v3495_v28  ;;  %v3497_v54 = vshrl.u32 %v3478_v5, 16  ;;  %v3422_v55 = vrot.slane %v3421_v53, 4 }
 0xc5a   : > { %v4055_v63 = vsel %vm2274_vm1, %v4050_v41, 0  ;;  %v3486_v56 = vpack.i.b16 %v3485_v10, %v3484_v50  ;;  %v3441_v19 = vrot.slane %v3440_v44, 4  ;;  %v3460_v59 = vrot.slane %v3459_v8, 4 }
 0xc5b   : > { %4064 = vmatpush.bf16.xpose.msrb.mxu2 %v4055_v63  ;;  %v4076_v13 = vpack.c.b16 %v4075_v48, %v4074_v61  ;;  %v3995_v4 = vpack.c.b16 %v3994_v45, %v3993_v17  ;;  %v3498_v52 = vpack.i.b16 %v3497_v54, %v3496_v3  ;;  %v3423_v16 = vsel %vm1586_vm0, 0, %v3422_v55 }
 0xc5c   : > { %v4019_v30 = vunpack.c.l.b16 %v3486_v56  ;;  %v3442_v12 = vsel %vm1586_vm0, 0, %v3441_v19  ;;  %v3479_v40 = vrot.slane %v3478_v5, 4  ;;  %v3461_v53 = vsel %vm1586_vm0, 0, %v3460_v59 }
 0xc5d   : > { %v4081_v2 = vsel %vm2274_vm1, %v4076_v13, 0  ;;  %v4020_v14 = vunpack.c.l.b16 %v3498_v52  ;;  %v3489_v15 = vpack.i.b16 %v3442_v12, %v3423_v16  ;;  %v3491_v57 = vshrl.u32 %v3442_v12, 16 }
 0xc5e   : > { %v3480_v18 = vsel %vm1586_vm0, 0, %v3479_v40  ;;  %5448 = vmatmul.msk.bf16.vlgmr.msra.gmra.mxu3 %vm2274_vm1, %v3995_v4  ;;  %v3490_v37 = vshrl.u32 %v3423_v16, 16  ;;  %v3502_v23 = vshrl.u32 %v3461_v53, 16  ;;  %v6998_v16 = vpop.permute.xlu2 %3755 }
 0xc5f   : > { %4090 = vmatpush.bf16.xpose.msrb.mxu3 %v4081_v2  ;;  %v4021_v8 = vpack.c.b16 %v4020_v14, %v4019_v30  ;;  %v3501_v11 = vpack.i.b16 %v3480_v18, %v3461_v53  ;;  %v4045_v25 = vunpack.c.l.b16 %v3489_v15  ;;  %v3503_v9 = vshrl.u32 %v3480_v18, 16  ;;  %v7000_v2 = vpop.permute.xlu0 %3757 }
 0xc60   : > { %v3492_v31 = vpack.i.b16 %v3491_v57, %v3490_v37 }
 0xc61   : > { %5449 = vmatmul.msk.bf16.vlgmr.msrb.gmra.mxu1 %vm2274_vm1, %v4021_v8  ;;  %v4046_v20 = vunpack.c.l.b16 %v3501_v11  ;;  %v3504_v62 = vpack.i.b16 %v3503_v9, %v3502_v23 }
 0xc62   : > { %v4071_v29 = vunpack.c.l.b16 %v3492_v31 }
 0xc63   : > { %v4047_v44 = vpack.c.b16 %v4046_v20, %v4045_v25  ;;  %v4072_v46 = vunpack.c.l.b16 %v3504_v62 }
 0xc65   : > { %5450 = vmatmul.msk.bf16.vlgmr.msrb.gmra.mxu2 %vm2274_vm1, %v4047_v44  ;;  %v4073_v49 = vpack.c.b16 %v4072_v46, %v4071_v29 }
 0xc6e   : > { %5451 = vmatmul.msk.bf16.vlgmr.msrb.gmra.mxu3 %vm2274_vm1, %v4073_v49 }
 0xcde   : > { %v4040_v32 = vpop.f32.mrf.mxu1 }
 0xcdf   : > { %v4099_v43 = vmul.f32 0.35355338, %v4040_v32 }
 0xce1   : > { %v4107_v36 = vadd.f32 %v4099_v43, %v6424_v26  ;;  %v4014_v34 = vpop.f32.mrf.mxu3 }
 0xce2   : > { %v4097_v38 = vmul.f32 0.35355338, %v4014_v34 }
 0xce3   : > { %v4119_v58 = vsel %vm2389_vm3, %v4107_v36, -inf }
 0xce4   : > { %4120 = vmax.xlane.f32.xlu1 %v4119_v58  ;;  %v4105_v5 = vadd.f32 %v4097_v38, %v6424_v26 }
 0xce6   : > { %v4042_v27 = vpop.f32.mrf.mxu1  ;;  %v4113_v42 = vsel %vm2389_vm3, %v4105_v5, -inf }
 0xce7   : > { %v4100_v33 = vmul.f32 0.35355338, %v4042_v27  ;;  %4114 = vmax.xlane.f32.xlu2 %v4113_v42 }
 0xce8   : > { %v4066_v24 = vpop.f32.mrf.mxu2 }
 0xce9   : > { %v4101_v50 = vmul.f32 0.35355338, %v4066_v24  ;;  %v4016_v39 = vpop.f32.mrf.mxu3  ;;  %v4108_v28 = vadd.f32 %v4100_v33, %v6432_v35 }
 0xcea   : > { %v4098_v17 = vmul.f32 0.35355338, %v4016_v39 }
 0xceb   : > { %v6978_v61 = vadd.f32 %v4101_v50, %v6424_v26  ;;  %v4122_v41 = vsel %vm2389_vm3, %v4108_v28, -inf }
 0xcec   : > { %v4106_v48 = vadd.f32 %v4098_v17, %v6432_v35 }
 0xced   : > { %v4125_v6 = vsel %vm2389_vm3, %v6978_v61, -inf }
 0xcee   : > { %4126 = vmax.xlane.f32.xlu0 %v4125_v6  ;;  %v4116_v63 = vsel %vm2389_vm3, %v4106_v48, -inf }
 0xcef   : > { %4123 = vmax.xlane.f32.xlu2 %v4122_v41  ;;  %v3768_v41 = vshrl.u32 %v6782_v0, 16 }
 0xcf0   : > { %v4068_v10 = vpop.f32.mrf.mxu2 }
 0xcf1   : > { %v4102_v3 = vmul.f32 0.35355338, %v4068_v10  ;;  %v4092_v45 = vpop.f32.mrf.mxu3 }
 0xcf2   : > { %v4103_v54 = vmul.f32 0.35355338, %v4092_v45 }
 0xcf3   : > { %v4110_v55 = vadd.f32 %v4102_v3, %v6432_v35 }
 0xcf4   : > { %v4111_v19 = vadd.f32 %v4103_v54, %v6424_v26  ;;  %v3754_v26 = vpop.permute.xlu1 %3753  ;;  %v3779_v54 = vpack.i.b16 %v6998_v16, %v6774_v22 }
 0xcf5   : > { %v4128_v56 = vsel %vm2389_vm3, %v4110_v55, -inf  ;;  %v3769_v6 = vshrl.u32 %v3754_v26, 16  ;;  %v3767_v10 = vpack.i.b16 %v3754_v26, %v6782_v0 }
 0xcf6   : > { %4117 = vmax.xlane.f32.xlu0 %v4116_v63  ;;  %4129 = vmax.xlane.f32.xlu1 %v4128_v56  ;;  %v4131_v59 = vsel %vm2389_vm3, %v4111_v19, -inf }
 0xcf7   : > { %4132 = vmax.xlane.f32.xlu2 %v4131_v59  ;;  %v3793_v45 = vperm.slane %v3767_v10, %v6233_v7 }
 0xcf9   : > { %v4094_v13 = vpop.f32.mrf.mxu3 }
 0xcfa   : > { %v4104_v4 = vmul.f32 0.35355338, %v4094_v13 }
 0xcfc   : > { %v4112_v52 = vadd.f32 %v4104_v4, %v6432_v35  ;;  %v3780_v4 = vshrl.u32 %v6774_v22, 16 }
 0xcfe   : > { %v4134_v30 = vsel %vm2389_vm3, %v4112_v52, -inf }
 0xcff   : > { %4135 = vmax.xlane.f32.xlu0 %v4134_v30 }
 0xd0f   : > { %3761 = vrot.lane.b32.xlu1 %v6782_v0, %s7389_s8  ;;  %3759 = vrot.lane.b32.xlu2 %v6774_v22, %s7387_s4  ;;  %v3774_v0 = vshrl.u32 %v7000_v2, 16 }
 0xd13   : > { %3763 = vrot.lane.b32.xlu0 %v6774_v22, %s7389_s8  ;;  %s7393_s8 = sld [smem:[#allocation4_spill]] }
 0xd19   : > { %s804_s26 = scalar_lea.vmem %s7393_s8, %s7395_s2 }
 0xd57   : > { %v4121_v12 = vpop.xlane.xlu1 %4120 }
 0xd58   : > { %v4139_v40 = vsub.f32 %v4107_v36, %v4121_v12 }
 0xd5a   : > { %v4149_v35 = vmul.f32 1.442695, %v4139_v40  ;;  %v4115_v14 = vpop.xlane.xlu2 %4114  ;;  %v3845_v40 = vperm.slane %v3779_v54, %v6233_v7 }
 0xd5b   : > { %v4137_v15 = vsub.f32 %v4105_v5, %v4115_v14 }
 0xd5c   : > { %5751 = vpow2.f32 %v4149_v35 }
 0xd5d   : > { %v4145_v53 = vmul.f32 1.442695, %v4137_v15 }
 0xd5f   : > { %5753 = vpow2.f32 %v4145_v53 }
 0xd61   : > { %v4127_v18 = vpop.xlane.xlu0 %4126 }
 0xd62   : > { %v7002_v8 = vpop.eup %5751  ;;  %v4124_v11 = vpop.xlane.xlu2 %4123  ;;  %v4141_v46 = vsub.f32 %v6978_v61, %v4127_v18 }
 0xd63   : > { %v4167_v25 = vsel %vm2389_vm3, %v7002_v8, 0.0  ;;  %v4140_v20 = vsub.f32 %v4108_v28, %v4124_v11 }
 0xd64   : > { %4168 = vadd.xlane.f32.xlu0 %v4167_v25  ;;  %v4153_v58 = vmul.f32 1.442695, %v4141_v46 }
 0xd65   : > { %v7006_v57 = vpop.eup %5753  ;;  %v4151_v44 = vmul.f32 1.442695, %v4140_v20 }
 0xd66   : > { %v4161_v37 = vsel %vm2389_vm3, %v7006_v57, 0.0 }
 0xd67   : > { %5755 = vpow2.f32 %v4151_v44  ;;  %4162 = vadd.xlane.f32.xlu2 %v4161_v37 }
 0xd69   : > { %v4118_v9 = vpop.xlane.xlu0 %4117  ;;  %v4130_v31 = vpop.xlane.xlu1 %4129 }
 0xd6a   : > { %v4138_v23 = vsub.f32 %v4106_v48, %v4118_v9  ;;  %v4142_v62 = vsub.f32 %v4110_v55, %v4130_v31  ;;  %v4133_v29 = vpop.xlane.xlu2 %4132  ;;  %v3770_v48 = vpack.i.b16 %v3769_v6, %v3768_v41  ;;  %v3781_v55 = vshrl.u32 %v6998_v16, 16 }
 0xd6b   : > { %v4143_v43 = vsub.f32 %v4111_v19, %v4133_v29  ;;  %v3853_v9 = vrot.slane %v3845_v40, 4 }
 0xd6c   : > { %v4147_v49 = vmul.f32 1.442695, %v4138_v23  ;;  %v4155_v32 = vmul.f32 1.442695, %v4142_v62  ;;  %v3819_v19 = vperm.slane %v3770_v48, %v6233_v7  ;;  %v3782_v12 = vpack.i.b16 %v3781_v55, %v3780_v4 }
 0xd6d   : > { %v7011_v36 = vpop.eup %5755  ;;  %v4157_v34 = vmul.f32 1.442695, %v4143_v43 }
 0xd6e   : > { %5757 = vpow2.f32 %v4147_v49  ;;  %v4170_v38 = vsel %vm2389_vm3, %v7011_v36, 0.0  ;;  %v3827_v35 = vrot.slane %v3819_v19, 4  ;;  %v3871_v29 = vperm.slane %v3782_v12, %v6233_v7 }
 0xd6f   : > { %5759 = vpow2.f32 %v4155_v32  ;;  %4171 = vadd.xlane.f32.xlu2 %v4170_v38 }
 0xd70   : > { %5761 = vpow2.f32 %v4157_v34  ;;  %v3879_v48 = vrot.slane %v3871_v29, 4 }
 0xd71   : > { %5763 = vpow2.f32 %v4153_v58 }
 0xd72   : > { %v4136_v5 = vpop.xlane.xlu0 %4135  ;;  %v3760_v14 = vpop.permute.xlu2 %3759 }
 0xd73   : > { %v4144_v33 = vsub.f32 %v4112_v52, %v4136_v5  ;;  %v3801_v52 = vrot.slane %v3793_v45, 4  ;;  %v3786_v46 = vshrl.u32 %v3760_v14, 16 }
 0xd74   : > { %v7015_v27 = vpop.eup %5757 }
 0xd75   : > { %v7017_v42 = vpop.eup %5759  ;;  %v4164_v24 = vsel %vm2389_vm3, %v7015_v27, 0.0  ;;  %v4159_v28 = vmul.f32 1.442695, %v4144_v33 }
 0xd76   : > { %v7021_v50 = vpop.eup %5761  ;;  %4165 = vadd.xlane.f32.xlu1 %v4164_v24  ;;  %v4176_v39 = vsel %vm2389_vm3, %v7017_v42, 0.0 }
 0xd77   : > { %4177 = vadd.xlane.f32.xlu0 %v4176_v39  ;;  %v4179_v61 = vsel %vm2389_vm3, %v7021_v50, 0.0  ;;  %v7027_v17 = vpop.eup %5763  ;;  %5765 = vpow2.f32 %v4159_v28 }
 0xd78   : > { %4180 = vadd.xlane.f32.xlu2 %v4179_v61  ;;  %v4173_v3 = vsel %vm2389_vm3, %v7027_v17, 0.0 }
 0xd7d   : > { %v7037_v56 = vpop.eup %5765 }
 0xd7e   : > { %4174 = vadd.xlane.f32.xlu1 %v4173_v3  ;;  %v4182_v16 = vsel %vm2389_vm3, %v7037_v56, 0.0 }
 0xd81   : > { %v3762_v63 = vpop.permute.xlu1 %3761 }
 0xd82   : > { %v3773_v59 = vpack.i.b16 %v3762_v63, %v7000_v2  ;;  %v3775_v13 = vshrl.u32 %v3762_v63, 16 }
 0xd84   : > { %v3776_v30 = vpack.i.b16 %v3775_v13, %v3774_v0  ;;  %v3798_v26 = vperm.slane %v3773_v59, %v6233_v7 }
 0xd85   : > { %v3764_v18 = vpop.permute.xlu0 %3763 }
 0xd86   : > { %v3799_v15 = vrot.slane %v3798_v26, 4  ;;  %v3802_v53 = vsel %vm1586_vm0, %v3798_v26, %v3801_v52  ;;  %v3824_v2 = vperm.slane %v3776_v30, %v6233_v7  ;;  %4183 = vadd.xlane.f32.xlu1 %v4182_v16  ;;  %v3785_v11 = vpack.i.b16 %v3764_v18, %v3760_v14 }
 0xd87   : > { %v3810_v22 = vperm.slane %v3802_v53, %v6237_v21  ;;  %v3787_v37 = vshrl.u32 %v3764_v18, 16 }
 0xd88   : > { %v3800_v25 = vsel %vm1586_vm0, %v3799_v15, %v3793_v45  ;;  %v3825_v20 = vrot.slane %v3824_v2, 4  ;;  %v3828_v44 = vsel %vm1586_vm0, %v3824_v2, %v3827_v35  ;;  %v3850_v32 = vperm.slane %v3785_v11, %v6233_v7 }
 0xd89   : > { %v3806_v31 = vperm.slane %v3800_v25, %v6237_v21  ;;  %v3813_v23 = vrot.slane %v3810_v22, 4  ;;  %v3836_v62 = vperm.slane %v3828_v44, %v6237_v21  ;;  %v3788_v33 = vpack.i.b16 %v3787_v37, %v3786_v46 }
 0xd8a   : > { %v3826_v49 = vsel %vm1586_vm0, %v3825_v20, %v3819_v19  ;;  %v3851_v24 = vrot.slane %v3850_v32, 4  ;;  %v3854_v6 = vsel %vm1586_vm0, %v3850_v32, %v3853_v9 }
 0xd8b   : > { %v3811_v43 = vrot.slane %v3806_v31, 4  ;;  %v3814_v34 = vsel %vm1586_vm0, 0, %v3813_v23  ;;  %v3832_v38 = vperm.slane %v3826_v49, %v6237_v21  ;;  %v3839_v58 = vrot.slane %v3836_v62, 4 }
 0xd8c   : > { %v3898_v5 = vrot.slane %v3814_v34, 4  ;;  %v3852_v3 = vsel %vm1586_vm0, %v3851_v24, %v3845_v40  ;;  %v3893_v63 = vsel %vm1586_vm0, %v3813_v23, %v3806_v31  ;;  %v3862_v0 = vperm.slane %v3854_v6, %v6237_v21 }
 0xd8d   : > { %v3812_v39 = vsel %vm1586_vm0, 0, %v3811_v43  ;;  %v3837_v61 = vrot.slane %v3832_v38, 4  ;;  %v3840_v28 = vsel %vm1586_vm0, 0, %v3839_v58  ;;  %v3858_v55 = vperm.slane %v3852_v3, %v6237_v21 }
 0xd8e   : > { %v3899_v41 = vsel %vm1586_vm0, %v3898_v5, %v3812_v39  ;;  %v3917_v10 = vrot.slane %v3840_v28, 4  ;;  %v3876_v59 = vperm.slane %v3788_v33, %v6233_v7  ;;  %v3912_v4 = vsel %vm1586_vm0, %v3839_v58, %v3832_v38 }
 0xd8f   : > { %v3838_v45 = vsel %vm1586_vm0, 0, %v3837_v61  ;;  %v3903_v54 = vperm.slane %v3899_v41, %v6233_v7  ;;  %v3863_v30 = vrot.slane %v3858_v55, 4  ;;  %v3865_v26 = vrot.slane %v3862_v0, 4 }
 0xd90   : > { %v3918_v19 = vsel %vm1586_vm0, %v3917_v10, %v3838_v45  ;;  %v3877_v12 = vrot.slane %v3876_v59, 4  ;;  %v3880_v40 = vsel %vm1586_vm0, %v3876_v59, %v3879_v48  ;;  %v3897_v16 = vperm.slane %v3893_v63, %v6233_v7 }
 0xd91   : > { %v3904_v13 = vrot.slane %v3903_v54, 4  ;;  %v3922_v52 = vperm.slane %v3918_v19, %v6233_v7  ;;  %v3888_v35 = vperm.slane %v3880_v40, %v6237_v21  ;;  %v3916_v15 = vperm.slane %v3912_v4, %v6233_v7 }
 0xd92   : > { %v3864_v53 = vsel %vm1586_vm0, 0, %v3863_v30  ;;  %v3866_v2 = vsel %vm1586_vm0, 0, %v3865_v26  ;;  %v3878_v18 = vsel %vm1586_vm0, %v3877_v12, %v3871_v29  ;;  %v3931_v31 = vsel %vm1586_vm0, %v3865_v26, %v3858_v55 }
 0xd93   : > { %v3923_v14 = vrot.slane %v3922_v52, 4  ;;  %v3884_v22 = vperm.slane %v3878_v18, %v6237_v21  ;;  %v3891_v11 = vrot.slane %v3888_v35, 4  ;;  %v3936_v25 = vrot.slane %v3866_v2, 4 }
 0xd94   : > { %v3905_v20 = vsel %vm1586_vm0, %v3904_v13, %v3897_v16  ;;  %v3935_v43 = vperm.slane %v3931_v31, %v6233_v7 }
 0xd95   : > { %v3924_v44 = vsel %vm1586_vm0, %v3923_v14, %v3916_v15  ;;  %v3889_v37 = vrot.slane %v3884_v22, 4  ;;  %v3892_v9 = vsel %vm1586_vm0, 0, %v3891_v11  ;;  %v3937_v23 = vsel %vm1586_vm0, %v3936_v25, %v3864_v53 }
 0xd96   : > { %v3941_v62 = vperm.slane %v3937_v23, %v6233_v7  ;;  %v3955_v46 = vrot.slane %v3892_v9, 4  ;;  %v3909_v29 = vperm.slane %v3905_v20, %v6237_v21  ;;  %v3928_v49 = vperm.slane %v3924_v44, %v6237_v21 }
 0xd97   : > { %v3890_v32 = vsel %vm1586_vm0, 0, %v3889_v37  ;;  %v3950_v38 = vsel %vm1586_vm0, %v3891_v11, %v3884_v22 }
 0xd98   : > { %v3942_v34 = vrot.slane %v3941_v62, 4  ;;  %v3956_v58 = vsel %vm1586_vm0, %v3955_v46, %v3890_v32  ;;  %v3929_v33 = vrot.slane %v3928_v49, 4  ;;  %v3910_v39 = vrot.slane %v3909_v29, 4 }
 0xd99   : > { %v3960_v5 = vperm.slane %v3956_v58, %v6233_v7  ;;  %v3954_v61 = vperm.slane %v3950_v38, %v6233_v7  ;;  %v3973_v41 = vshrl.u32 %v3928_v49, 16  ;;  %v3972_v48 = vshrl.u32 %v3909_v29, 16 }
 0xd9a   : > { %v3943_v24 = vsel %vm1586_vm0, %v3942_v34, %v3935_v43  ;;  %v3930_v10 = vsel %vm1586_vm0, 0, %v3929_v33  ;;  %v3971_v55 = vpack.i.b16 %v3928_v49, %v3909_v29  ;;  %v3911_v63 = vsel %vm1586_vm0, 0, %v3910_v39 }
 0xd9b   : > { %v3947_v28 = vperm.slane %v3943_v24, %v6237_v21  ;;  %v3961_v6 = vrot.slane %v3960_v5, 4  ;;  %v3974_v19 = vpack.i.b16 %v3973_v41, %v3972_v48  ;;  %v3979_v59 = vshrl.u32 %v3930_v10, 16 }
 0xd9c   : > { %v3977_v26 = vpack.i.b16 %v3930_v10, %v3911_v63  ;;  %v3978_v12 = vshrl.u32 %v3911_v63, 16  ;;  %v4214_v40 = vunpack.c.l.b16 %v3971_v55 }
 0xd9d   : > { %v3962_v3 = vsel %vm1586_vm0, %v3961_v6, %v3954_v61  ;;  %v3948_v45 = vrot.slane %v3947_v28, 4  ;;  %v3984_v0 = vshrl.u32 %v3947_v28, 16  ;;  %v4240_v11 = vunpack.c.l.b16 %v3974_v19 }
 0xd9e   : > { %v3966_v54 = vperm.slane %v3962_v3, %v6237_v21  ;;  %v3980_v53 = vpack.i.b16 %v3979_v59, %v3978_v12  ;;  %v4266_v20 = vunpack.c.l.b16 %v3977_v26 }
 0xd9f   : > { %v3949_v52 = vsel %vm1586_vm0, 0, %v3948_v45 }
 0xda0   : > { %v3983_v13 = vpack.i.b16 %v3966_v54, %v3947_v28  ;;  %v3985_v4 = vshrl.u32 %v3966_v54, 16  ;;  %v3967_v30 = vrot.slane %v3966_v54, 4  ;;  %v3990_v2 = vshrl.u32 %v3949_v52, 16 }
 0xda1   : > { %v4292_v23 = vunpack.c.l.b16 %v3980_v53 }
 0xda2   : > { %v4215_v16 = vunpack.c.l.b16 %v3983_v13  ;;  %v3986_v35 = vpack.i.b16 %v3985_v4, %v3984_v0  ;;  %v3968_v14 = vsel %vm1586_vm0, 0, %v3967_v30 }
 0xda3   : > { %v3989_v15 = vpack.i.b16 %v3968_v14, %v3949_v52  ;;  %v3991_v18 = vshrl.u32 %v3968_v14, 16 }
 0xda4   : > { %v4216_v22 = vpack.c.b16 %v4215_v16, %v4214_v40  ;;  %v4241_v25 = vunpack.c.l.b16 %v3986_v35 }
 0xda5   : > { %v4267_v44 = vunpack.c.l.b16 %v3989_v15  ;;  %v3992_v37 = vpack.i.b16 %v3991_v18, %v3990_v2 }
 0xda6   : > { %4228 = vmatpush.bf16.msra.mxu1 %v4216_v22  ;;  %v4242_v9 = vpack.c.b16 %v4241_v25, %v4240_v11 }
 0xda7   : > { %v4268_v31 = vpack.c.b16 %v4267_v44, %v4266_v20  ;;  %v4293_v62 = vunpack.c.l.b16 %v3992_v37 }
 0xda8   : > { %4254 = vmatpush.bf16.msra.mxu2 %v4242_v9 }
 0xda9   : > { %4280 = vmatpush.bf16.msra.mxu3 %v4268_v31  ;;  %v4294_v46 = vpack.c.b16 %v4293_v62, %v4292_v23 }
 0xdab   : > { %4306 = vmatpush.bf16.msrb.mxu1 %v4294_v46 }
 0xdd7   : > { %v4169_v29 = vpop.xlane.xlu0 %4168 }
 0xdd8   : > { %5767 = vrcp.f32 %v4169_v29 }
 0xdda   : > { %v4163_v49 = vpop.xlane.xlu2 %4162 }
 0xddb   : > { %5769 = vrcp.f32 %v4163_v49 }
 0xdde   : > { %v5768_v43 = vpop.eup %5767 }
 0xddf   : > { %v4195_v34 = vmul.f32 %v5768_v43, %v7002_v8 }
 0xde1   : > { %v5770_v38 = vpop.eup %5769  ;;  %v4203_v24 = vpack.c.bf16 %v4195_v34, %v4195_v34 }
 0xde2   : > { %v4172_v32 = vpop.xlane.xlu2 %4171  ;;  %v4193_v61 = vmul.f32 %v5770_v38, %v7006_v57 }
 0xde3   : > { %5771 = vrcp.f32 %v4172_v32  ;;  %v4237_v6 = vunpack.c.l.b16 %v4203_v24 }
 0xde4   : > { %v4201_v3 = vpack.c.bf16 %v4193_v61, %v4193_v61 }
 0xde9   : > { %v4166_v58 = vpop.xlane.xlu1 %4165  ;;  %v5772_v5 = vpop.eup %5771 }
 0xdea   : > { %v4178_v33 = vpop.xlane.xlu0 %4177  ;;  %5773 = vrcp.f32 %v4166_v58  ;;  %v4196_v39 = vmul.f32 %v5772_v5, %v7011_v36  ;;  %v4211_v36 = vunpack.c.l.b16 %v4201_v3 }
 0xdeb   : > { %5775 = vrcp.f32 %v4178_v33  ;;  %v4181_v8 = vpop.xlane.xlu2 %4180 }
 0xdec   : > { %v4204_v28 = vpack.c.bf16 %v4196_v39, %v4196_v39 }
 0xdee   : > { %v4238_v41 = vunpack.c.l.b16 %v4204_v28 }
 0xdf0   : > { %v5774_v10 = vpop.eup %5773  ;;  %v4239_v48 = vpack.c.b16 %v4238_v41, %v4237_v6 }
 0xdf1   : > { %v4194_v45 = vmul.f32 %v5774_v10, %v7015_v27  ;;  %v4175_v54 = vpop.xlane.xlu1 %4174  ;;  %v5776_v55 = vpop.eup %5775 }
 0xdf2   : > { %5777 = vrcp.f32 %v4175_v54  ;;  %5453 = vmatmul.msk.bf16.vlgmr.msra.gmra.mxu2 %vm2389_vm3, %v4239_v48  ;;  %v4198_v19 = vmul.f32 %v5776_v55, %v7017_v42 }
 0xdf3   : > { %v4202_v63 = vpack.c.bf16 %v4194_v45, %v4194_v45  ;;  %5779 = vrcp.f32 %v4181_v8 }
 0xdf4   : > { %v4206_v13 = vpack.c.bf16 %v4198_v19, %v4198_v19 }
 0xdf5   : > { %v4212_v57 = vunpack.c.l.b16 %v4202_v63 }
 0xdf6   : > { %v4264_v26 = vunpack.c.l.b16 %v4206_v13 }
 0xdf7   : > { %v4213_v0 = vpack.c.b16 %v4212_v57, %v4211_v36 }
 0xdf8   : > { %v5778_v59 = vpop.eup %5777 }
 0xdf9   : > { %v4197_v4 = vmul.f32 %v5778_v59, %v7027_v17  ;;  %5452 = vmatmul.msk.bf16.vlgmr.msra.gmra.mxu1 %vm2389_vm3, %v4213_v0  ;;  %v4184_v27 = vpop.xlane.xlu1 %4183  ;;  %v5780_v52 = vpop.eup %5779 }
 0xdfa   : > { %5781 = vrcp.f32 %v4184_v27  ;;  %v4199_v12 = vmul.f32 %v5780_v52, %v7021_v50 }
 0xdfb   : > { %v4205_v30 = vpack.c.bf16 %v4197_v4, %v4197_v4 }
 0xdfc   : > { %v4207_v14 = vpack.c.bf16 %v4199_v12, %v4199_v12 }
 0xdfd   : > { %v4263_v40 = vunpack.c.l.b16 %v4205_v30 }
 0xdfe   : > { %v4289_v53 = vunpack.c.l.b16 %v4207_v14 }
 0xdff   : > { %v4265_v16 = vpack.c.b16 %v4264_v26, %v4263_v40 }
 0xe00   : > { %v5782_v35 = vpop.eup %5781 }
 0xe01   : > { %v4200_v42 = vmul.f32 %v5782_v35, %v7037_v56  ;;  %5454 = vmatmul.msk.bf16.vlgmr.msra.gmra.mxu3 %vm2389_vm3, %v4265_v16 }
 0xe03   : > { %v4208_v15 = vpack.c.bf16 %v4200_v42, %v4200_v42 }
 0xe05   : > { %v4290_v17 = vunpack.c.l.b16 %v4208_v15 }
 0xe07   : > { %v4291_v2 = vpack.c.b16 %v4290_v17, %v4289_v53 }
 0xe09   : > { %5455 = vmatmul.msk.bf16.vlgmr.msrb.gmra.mxu1 %vm2389_vm3, %v4291_v2 }
 0xe75   : > { %v4256_v22 = vpop.f32.mrf.mxu2 }
 0xe76   : > { %v4230_v18 = vpop.f32.mrf.mxu1  ;;  %v4315_v11 = vpack.c.bf16 %v4256_v22, %v4256_v22 }
 0xe77   : > { %v4313_v25 = vpack.c.bf16 %v4230_v18, %v4230_v18 }
 0xe78   : > { %v4325_v50 = vshrl.u32 %v4315_v11, 16 }
 0xe79   : > { %v4324_v44 = vshrl.u32 %v4313_v25, 16  ;;  %v4323_v9 = vpack.i.b16 %v4315_v11, %v4313_v25 }
 0xe7b   : > { %v4326_v31 = vpack.i.b16 %v4325_v50, %v4324_v44  ;;  %v4349_v29 = vperm.slane %v4323_v9, %v6233_v7 }
 0xe7d   : > { %v4258_v37 = vpop.f32.mrf.mxu2  ;;  %v4375_v43 = vperm.slane %v4326_v31, %v6233_v7  ;;  %v4357_v33 = vrot.slane %v4349_v29, 4 }
 0xe7e   : > { %v4232_v20 = vpop.f32.mrf.mxu1  ;;  %v4316_v56 = vpack.c.bf16 %v4258_v37, %v4258_v37 }
 0xe7f   : > { %v4314_v49 = vpack.c.bf16 %v4232_v20, %v4232_v20  ;;  %v4383_v28 = vrot.slane %v4375_v43, 4 }
 0xe80   : > { %v4337_v34 = vshrl.u32 %v4316_v56, 16 }
 0xe81   : > { %v4336_v24 = vshrl.u32 %v4314_v49, 16  ;;  %v4335_v6 = vpack.i.b16 %v4316_v56, %v4314_v49 }
 0xe83   : > { %v4338_v10 = vpack.i.b16 %v4337_v34, %v4336_v24  ;;  %v4401_v4 = vperm.slane %v4335_v6, %v6233_v7 }
 0xe84   : > { %v4282_v23 = vpop.f32.mrf.mxu3 }
 0xe85   : > { %v4317_v62 = vpack.c.bf16 %v4282_v23, %v4282_v23  ;;  %v4427_v27 = vperm.slane %v4338_v10, %v6233_v7  ;;  %v4409_v2 = vrot.slane %v4401_v4, 4 }
 0xe86   : > { %v4308_v46 = vpop.f32.mrf.mxu1 }
 0xe87   : > { %v4319_v32 = vpack.c.bf16 %v4308_v46, %v4308_v46  ;;  %v4330_v38 = vshrl.u32 %v4317_v62, 16  ;;  %v4435_v37 = vrot.slane %v4427_v27, 4 }
 0xe89   : > { %v4329_v58 = vpack.i.b16 %v4319_v32, %v4317_v62  ;;  %v4331_v5 = vshrl.u32 %v4319_v32, 16 }
 0xe8b   : > { %v4332_v39 = vpack.i.b16 %v4331_v5, %v4330_v38  ;;  %v4354_v61 = vperm.slane %v4329_v58, %v6233_v7 }
 0xe8c   : > { %v4284_v41 = vpop.f32.mrf.mxu3 }
 0xe8d   : > { %v4355_v3 = vrot.slane %v4354_v61, 4  ;;  %v4358_v48 = vsel %vm1586_vm0, %v4354_v61, %v4357_v33  ;;  %v4380_v45 = vperm.slane %v4332_v39, %v6233_v7  ;;  %v4318_v19 = vpack.c.bf16 %v4284_v41, %v4284_v41 }
 0xe8e   : > { %v4366_v8 = vperm.slane %v4358_v48, %v6237_v21  ;;  %v4310_v54 = vpop.f32.mrf.mxu1 }
 0xe8f   : > { %v4356_v55 = vsel %vm1586_vm0, %v4355_v3, %v4349_v29  ;;  %v4381_v63 = vrot.slane %v4380_v45, 4  ;;  %v4384_v36 = vsel %vm1586_vm0, %v4380_v45, %v4383_v28  ;;  %v4320_v13 = vpack.c.bf16 %v4310_v54, %v4310_v54 }
 0xe90   : > { %v4362_v57 = vperm.slane %v4356_v55, %v6237_v21  ;;  %v4369_v0 = vrot.slane %v4366_v8, 4  ;;  %v4392_v59 = vperm.slane %v4384_v36, %v6237_v21  ;;  %v4342_v35 = vshrl.u32 %v4318_v19, 16 }
 0xe91   : > { %v4382_v52 = vsel %vm1586_vm0, %v4381_v63, %v4375_v43  ;;  %v4341_v14 = vpack.i.b16 %v4320_v13, %v4318_v19  ;;  %v4343_v42 = vshrl.u32 %v4320_v13, 16 }
 0xe92   : > { %v4367_v30 = vrot.slane %v4362_v57, 4  ;;  %v4370_v26 = vsel %vm1586_vm0, 0, %v4369_v0  ;;  %v4388_v12 = vperm.slane %v4382_v52, %v6237_v21  ;;  %v4395_v40 = vrot.slane %v4392_v59, 4 }
 0xe93   : > { %v4454_v16 = vrot.slane %v4370_v26, 4  ;;  %v4344_v11 = vpack.i.b16 %v4343_v42, %v4342_v35  ;;  %v4449_v20 = vsel %vm1586_vm0, %v4369_v0, %v4362_v57  ;;  %v4406_v44 = vperm.slane %v4341_v14, %v6233_v7 }
 0xe94   : > { %v4368_v15 = vsel %vm1586_vm0, 0, %v4367_v30  ;;  %v4393_v53 = vrot.slane %v4388_v12, 4  ;;  %v4396_v17 = vsel %vm1586_vm0, 0, %v4395_v40  ;;  %v4468_v9 = vsel %vm1586_vm0, %v4395_v40, %v4388_v12 }
 0xe95   : > { %v4455_v18 = vsel %vm1586_vm0, %v4454_v16, %v4368_v15  ;;  %v4473_v22 = vrot.slane %v4396_v17, 4  ;;  %v4432_v23 = vperm.slane %v4344_v11, %v6233_v7  ;;  %v4407_v56 = vrot.slane %v4406_v44, 4 }
 0xe96   : > { %v4394_v25 = vsel %vm1586_vm0, 0, %v4393_v53  ;;  %v4459_v50 = vperm.slane %v4455_v18, %v6233_v7  ;;  %v4410_v62 = vsel %vm1586_vm0, %v4406_v44, %v4409_v2  ;;  %v4453_v49 = vperm.slane %v4449_v20, %v6233_v7 }
 0xe97   : > { %v4474_v31 = vsel %vm1586_vm0, %v4473_v22, %v4394_v25  ;;  %v4418_v32 = vperm.slane %v4410_v62, %v6237_v21  ;;  %v4433_v43 = vrot.slane %v4432_v23, 4  ;;  %v4436_v34 = vsel %vm1586_vm0, %v4432_v23, %v4435_v37 }
 0xe98   : > { %v4460_v46 = vrot.slane %v4459_v50, 4  ;;  %v4478_v29 = vperm.slane %v4474_v31, %v6233_v7  ;;  %v4472_v38 = vperm.slane %v4468_v9, %v6233_v7  ;;  %v4408_v58 = vsel %vm1586_vm0, %v4407_v56, %v4401_v4 }
 0xe99   : > { %v4444_v5 = vperm.slane %v4436_v34, %v6237_v21  ;;  %v4414_v24 = vperm.slane %v4408_v58, %v6237_v21  ;;  %v4421_v39 = vrot.slane %v4418_v32, 4  ;;  %v4434_v61 = vsel %vm1586_vm0, %v4433_v43, %v4427_v27 }
 0xe9a   : > { %v4479_v33 = vrot.slane %v4478_v29, 4  ;;  %v4440_v28 = vperm.slane %v4434_v61, %v6237_v21  ;;  %v4461_v41 = vsel %vm1586_vm0, %v4460_v46, %v4453_v49 }
 0xe9b   : > { %v4447_v6 = vrot.slane %v4444_v5, 4  ;;  %v4419_v3 = vrot.slane %v4414_v24, 4  ;;  %v4422_v48 = vsel %vm1586_vm0, 0, %v4421_v39  ;;  %v4465_v19 = vperm.slane %v4461_v41, %v6237_v21 }
 0xe9c   : > { %v4480_v10 = vsel %vm1586_vm0, %v4479_v33, %v4472_v38  ;;  %v4445_v8 = vrot.slane %v4440_v28, 4  ;;  %v4492_v55 = vrot.slane %v4422_v48, 4  ;;  %v4487_v0 = vsel %vm1586_vm0, %v4421_v39, %v4414_v24  ;;  %v5625_v48 = vld [vmem:[%s7339_s14 + $0x10] sm:$0xff] }
 0xe9d   : > { %v4484_v45 = vperm.slane %v4480_v10, %v6237_v21  ;;  %v4448_v54 = vsel %vm1586_vm0, 0, %v4447_v6  ;;  %v4420_v63 = vsel %vm1586_vm0, 0, %v4419_v3  ;;  %v4506_v4 = vsel %vm1586_vm0, %v4447_v6, %v4440_v28  ;;  %v5626_v3 = vld [vmem:[%s7339_s14 + $0x18] sm:$0xff] }
 0xe9e   : > { %v4511_v36 = vrot.slane %v4448_v54, 4  ;;  %v4446_v57 = vsel %vm1586_vm0, 0, %v4445_v8  ;;  %v4493_v59 = vsel %vm1586_vm0, %v4492_v55, %v4420_v63  ;;  %v4491_v12 = vperm.slane %v4487_v0, %v6233_v7  ;;  %4599 = vmatpush.bf16.msrb.mxu2 %v5626_v3  ;;  %v5694_v3 = vld [vmem:[%s7344_s19 + $0x1] ss:$0 sm:$0xff] }
 0xe9f   : > { %v4497_v13 = vperm.slane %v4493_v59, %v6233_v7  ;;  %v4485_v52 = vrot.slane %v4484_v45, 4  ;;  %v4527_v26 = vpack.i.b16 %v4484_v45, %v4465_v19  ;;  %v4466_v16 = vrot.slane %v4465_v19, 4 }
 0xea0   : > { %v4512_v27 = vsel %vm1586_vm0, %v4511_v36, %v4446_v57  ;;  %v4510_v35 = vperm.slane %v4506_v4, %v6233_v7  ;;  %v4529_v42 = vshrl.u32 %v4484_v45, 16  ;;  %v4528_v18 = vshrl.u32 %v4465_v19, 16  ;;  %v5691_v19 = vld [vmem:[%s7340_s15 + $0x1] ss:$0 sm:$0xff] }
 0xea1   : > { %v4516_v30 = vperm.slane %v4512_v27, %v6233_v7  ;;  %v4498_v40 = vrot.slane %v4497_v13, 4  ;;  %v4486_v53 = vsel %vm1586_vm0, 0, %v4485_v52  ;;  %v4467_v11 = vsel %vm1586_vm0, 0, %v4466_v16 }
 0xea2   : > { %v4530_v25 = vpack.i.b16 %v4529_v42, %v4528_v18  ;;  %v4535_v50 = vshrl.u32 %v4486_v53, 16  ;;  %v4533_v23 = vpack.i.b16 %v4486_v53, %v4467_v11  ;;  %v4534_v56 = vshrl.u32 %v4467_v11, 16  ;;  %4600 = vmatpush.bf16.msrb.mxu2 %v5625_v48  ;;  %v5628_v18 = vld [vmem:[%s7343_s18 + $0x18] sm:$0xff] }
 0xea3   : > { %v4517_v14 = vrot.slane %v4516_v30, 4  ;;  %v4499_v15 = vsel %vm1586_vm0, %v4498_v40, %v4491_v12  ;;  %v4549_v29 = vunpack.c.l.b16 %v4527_v26  ;;  %4706 = vmatpush.bf16.msrb.mxu3 %v5628_v18  ;;  %v5632_v48 = vld [vmem:[%s7345_s20 + $0x58] sm:$0xff]  ;;  %v5695_v18 = vld [vmem:[%s7346_s21 + $0x1] ss:$0 sm:$0xff] }
 0xea4   : > { %v4503_v17 = vperm.slane %v4499_v15, %v6237_v21  ;;  %v4552_v38 = vunpack.c.l.b16 %v4530_v25  ;;  %v4557_v33 = vunpack.c.l.b16 %v4533_v23 }
 0xea5   : > { %v4518_v2 = vsel %vm1586_vm0, %v4517_v14, %v4510_v35 }
 0xea6   : > { %v4522_v22 = vperm.slane %v4518_v2, %v6237_v21  ;;  %v4504_v20 = vrot.slane %v4503_v17, 4  ;;  %v4540_v44 = vshrl.u32 %v4503_v17, 16  ;;  %v4536_v21 = vpack.i.b16 %v4535_v50, %v4534_v56 }
 0xea8   : > { %v4541_v7 = vshrl.u32 %v4522_v22, 16  ;;  %v4523_v37 = vrot.slane %v4522_v22, 4  ;;  %v4539_v9 = vpack.i.b16 %v4522_v22, %v4503_v17  ;;  %v4505_v31 = vsel %vm1586_vm0, 0, %v4504_v20  ;;  %v5627_v22 = vld [vmem:[%s7343_s18 + $0x10] sm:$0xff] }
 0xea9   : > { %v4546_v43 = vshrl.u32 %v4505_v31, 16  ;;  %v4562_v6 = vunpack.c.l.b16 %v4536_v21  ;;  %4707 = vmatpush.bf16.msrb.mxu3 %v5627_v22 }
 0xeaa   : > { %v4542_v62 = vpack.i.b16 %v4541_v7, %v4540_v44  ;;  %v4524_v46 = vsel %vm1586_vm0, 0, %v4523_v37  ;;  %v4550_v49 = vunpack.c.l.b16 %v4539_v9 }
 0xeab   : > { %v4545_v32 = vpack.i.b16 %v4524_v46, %v4505_v31  ;;  %v4547_v34 = vshrl.u32 %v4524_v46, 16 }
 0xeac   : > { %v4553_v58 = vunpack.c.l.b16 %v4542_v62  ;;  %v4551_v5 = vpack.c.b16 %v4550_v49, %v4549_v29 }
 0xead   : > { %v4558_v24 = vunpack.c.l.b16 %v4545_v32  ;;  %v4548_v39 = vpack.i.b16 %v4547_v34, %v4546_v43  ;;  %v5692_v32 = vld [vmem:[%s7341_s16 + $0x1] ss:$0 sm:$0xff] }
 0xeae   : > { %v4554_v61 = vpack.c.b16 %v4553_v58, %v4552_v38  ;;  %v5693_v38 = vld [vmem:[%s7342_s17 + $0x1] ss:$0 sm:$0xff] }
 0xeaf   : > { %v4559_v28 = vpack.c.b16 %v4558_v24, %v4557_v33  ;;  %v4563_v41 = vunpack.c.l.b16 %v4548_v39 }
 0xeb0   : > { %4555 = vrot.lane.b32.xlu0 %v4554_v61, %s7390_s1 }
 0xeb1   : > { %4560 = vrot.lane.b32.xlu2 %v4559_v28, %s7391_s9  ;;  %v4564_v10 = vpack.c.b16 %v4563_v41, %v4562_v6  ;;  %v5636_v28 = vld [vmem:[%s7345_s20 + $0x78] sm:$0xff]  ;;  %v5635_v6 = vld [vmem:[%s7345_s20 + $0x70] sm:$0xff]  ;;  %v5634_v41 = vld [vmem:[%s7345_s20 + $0x68] sm:$0xff]  ;;  %s5174_s9 = sshll.u32 %s7395_s2, 3 }
 0xeb2   : > { %4798 = vmatpush.bf16.msra.mxu1 %v5636_v28  ;;  %s811_s6 = scalar_lea.vmem %s7349_s24, %s5174_s9 }
 0xeb3   : > { %4565 = vrot.lane.b32.xlu1 %v4564_v10, %s7392_s3  ;;  %v5633_v10 = vld [vmem:[%s7345_s20 + $0x60] sm:$0xff] }
 0xeb6   : > { %4799 = vmatpush.bf16.msra.mxu1 %v5635_v6  ;;  %v5638_v6 = vld [vmem:[%s7382_s5 + $0x8] sm:$0xff] }
 0xeba   : > { %4800 = vmatpush.bf16.msra.mxu1 %v5634_v41 }
 0xebe   : > { %4801 = vmatpush.bf16.msra.mxu1 %v5633_v10 }
 0xec2   : > { %4802 = vmatpush.bf16.msra.mxu1 %v5632_v48 }
 0xf0b   : > { %v4561_v8 = vpop.permute.xlu2 %4560 }
 0xf22   : > { %v4556_v45 = vpop.permute.xlu0 %4555 }
 0xf23   : > { %v4569_v54 = vsel %vm2274_vm1, %v4551_v5, %v4556_v45 }
 0xf24   : > { %v4571_v55 = vsel %vm2389_vm3, %v4569_v54, %v4561_v8  ;;  %v5631_v8 = vld [vmem:[%s7345_s20 + $0x50] sm:$0xff] }
 0xf25   : > { %v4566_v63 = vpop.permute.xlu1 %4565  ;;  %4803 = vmatpush.bf16.msra.mxu1 %v5631_v8 }
 0xf26   : > { %v4573_v36 = vsel %vm2849_vm5, %v4571_v55, %v4566_v63  ;;  %v5630_v63 = vld [vmem:[%s7345_s20 + $0x48] sm:$0xff] }
 0xf27   : > { %5468 = vmatmul.msk.bf16.vlgmr.msrb.gmra.mxu2 %vm1363_vm8, %v4573_v36 }
 0xf29   : > { %4804 = vmatpush.bf16.msra.mxu1 %v5630_v63 }
 0xfaa   : > { %v4602_v57 = vpop.f32.mrf.mxu2 }
 0xfab   : > { %v4607_v0 = vadd.f32 %v4602_v57, %v6704_v47  ;;  %v5629_v57 = vld [vmem:[%s7345_s20 + $0x40] sm:$0xff] }
 0xfac   : > { %4805 = vmatpush.bf16.msra.mxu1 %v5629_v57 }
 0xfad   : > { %v7192_v59 = vadd.f32 %v5691_v19, %v4607_v0 }
 0xfaf   : > { %v4620_v13 = vsel %vm1363_vm8, %v7192_v59, 0.0 }
 0xfb0   : > { %4621 = vadd.xlane.f32.xlu0 %v4620_v13 }
 0xfb2   : > { %v4604_v4 = vpop.f32.mrf.mxu2 }
 0xfb3   : > { %v4608_v27 = vadd.f32 %v4604_v4, %v6709_v1 }
 0xfb5   : > { %v7197_v52 = vadd.f32 %v5691_v19, %v4608_v27 }
 0xfb7   : > { %v4623_v30 = vsel %vm1363_vm8, %v7197_v52, 0.0 }
 0xfb8   : > { %4624 = vadd.xlane.f32.xlu2 %v4623_v30 }
0x1023   : > { %v4622_v26 = vpop.xlane.xlu0 %4621 }
0x1024   : > { %v4626_v12 = vmul.f32 %v4622_v26, %v6155_v51 }
0x1026   : > { %v4628_v47 = vsub.f32 %v7192_v59, %v4626_v12 }
0x1028   : > { %v4630_v40 = vmul.f32 %v4628_v47, %v4628_v47 }
0x102a   : > { %v4632_v16 = vsel %vm1363_vm8, %v4630_v40, 0.0 }
0x102b   : > { %4633 = vadd.xlane.f32.xlu1 %v4632_v16  ;;  %v4625_v35 = vpop.xlane.xlu2 %4624 }
0x102c   : > { %v4627_v14 = vmul.f32 %v4625_v35, %v6155_v51 }
0x102e   : > { %v4629_v1 = vsub.f32 %v7197_v52, %v4627_v14 }
0x1030   : > { %v4631_v42 = vmul.f32 %v4629_v1, %v4629_v1 }
0x1032   : > { %v4635_v15 = vsel %vm1363_vm8, %v4631_v42, 0.0 }
0x1033   : > { %4636 = vadd.xlane.f32.xlu0 %v4635_v15 }
0x109e   : > { %v4634_v53 = vpop.xlane.xlu1 %4633 }
0x109f   : > { %v4638_v17 = vmul.f32 %v4634_v53, %v6155_v51 }
0x10a1   : > { %v4640_v2 = vadd.f32 1e-05, %v4638_v17 }
0x10a3   : > { %5783 = vrsqrt.f32 %v4640_v2  ;;  %vm4648_vm1 = vweird.f32 %v4640_v2 }
0x10a6   : > { %v4637_v11 = vpop.xlane.xlu0 %4636 }
0x10a7   : > { %v4639_v25 = vmul.f32 %v4637_v11, %v6155_v51 }
0x10a9   : > { %v5784_v20 = vpop.eup %5783  ;;  %v4641_v50 = vadd.f32 1e-05, %v4639_v25 }
0x10aa   : > { %v4643_v44 = vmul.f32 %v5784_v20, %v4640_v2  ;;  %vm4649_vm0 = vweird.f32 %v5784_v20 }
0x10ab   : > { %5785 = vrsqrt.f32 %v4641_v50  ;;  %vm4650_vm3 = vmor %vm4648_vm1, %vm4649_vm0  ;;  %vm4658_vm7 = vweird.f32 %v4641_v50  ;;  %vm5023_vm0 = vcmask 7168  }
0x10ac   : > { %v4644_v7 = vmul.f32 %v5784_v20, %v4643_v44 }
0x10ae   : > { %v4645_v37 = vmul.f32 0.5, %v4644_v7 }
0x10b0   : > { %v4646_v9 = vsub.f32 1.5, %v4645_v37 }
0x10b1   : > { %v5786_v31 = vpop.eup %5785 }
0x10b2   : > { %v4647_v23 = vmul.f32 %v5784_v20, %v4646_v9  ;;  %v4653_v56 = vmul.f32 %v5786_v31, %v4641_v50  ;;  %vm4659_vm5 = vweird.f32 %v5786_v31  ;;  %v5644_v9 = vld [vmem:[%s7382_s5 + $0x38] sm:$0xff] }
0x10b3   : > { %vm4660_vm9 = vmor %vm4658_vm7, %vm4659_vm5 }
0x10b4   : > { %v4654_v62 = vmul.f32 %v5786_v31, %v4653_v56  ;;  %v4651_v46 = vsel %vm4650_vm3, %v5784_v20, %v4647_v23 }
0x10b5   : > { %v4662_v21 = vmul.f32 %v4651_v46, %v4628_v47 }
0x10b6   : > { %v4655_v29 = vmul.f32 0.5, %v4654_v62 }
0x10b7   : > { %v4667_v58 = vmul.f32 %v5692_v32, %v4662_v21 }
0x10b8   : > { %v4656_v49 = vsub.f32 1.5, %v4655_v29 }
0x10b9   : > { %v4672_v24 = vadd.f32 %v5693_v38, %v4667_v58 }
0x10ba   : > { %v4657_v43 = vmul.f32 %v5786_v31, %v4656_v49  ;;  %v5641_v49 = vld [vmem:[%s7382_s5 + $0x20] sm:$0xff] }
0x10bc   : > { %v4661_v34 = vsel %vm4660_vm9, %v5786_v31, %v4657_v43  ;;  %v4959_v31 = vsel %vm1363_vm8, %v5644_v9, 0 }
0x10bd   : > { %v4663_v5 = vmul.f32 %v4661_v34, %v4629_v1  ;;  %4961 = vmatpush.bf16.xpose.msra.mxu2 %v4959_v31  ;;  %v4950_v34 = vsel %vm1363_vm8, %v5641_v49, 0 }
0x10bf   : > { %v4668_v33 = vmul.f32 %v5692_v32, %v4663_v5 }
0x10c1   : > { %v4673_v39 = vadd.f32 %v5693_v38, %v4668_v33 }
0x10c3   : > { %v4679_v61 = vpack.c.bf16 %v4673_v39, %v4672_v24  ;;  %v5640_v24 = vld [vmem:[%s7382_s5 + $0x18] sm:$0xff] }
0x10c4   : > { %v4947_v39 = vsel %vm1363_vm8, %v5640_v24, 0 }
0x10c5   : > { %5485 = vmatmul.msk.bf16.vlgmr.msrb.gmra.mxu3 %vm1363_vm8, %v4679_v61  ;;  %v5639_v61 = vld [vmem:[%s7382_s5 + $0x10] sm:$0xff] }
0x10c6   : > { %v4944_v28 = vsel %vm1363_vm8, %v5639_v61, 0 }
0x1148   : > { %v4709_v45 = vpop.f32.mrf.mxu3 }
0x1149   : > { %v4710_v54 = vadd.f32 %v5694_v3, %v4709_v45  ;;  %v5637_v45 = vld [vmem:[%s7382_s5] sm:$0xff] }
0x114a   : > { %v4938_v8 = vsel %vm1363_vm8, %v5637_v45, 0 }
0x114b   : > { %v4714_v55 = vmul.f32 %v4710_v54, %v4710_v54 }
0x114d   : > { %v4716_v36 = vmul.f32 %v4714_v55, %v4710_v54 }
0x114f   : > { %v4718_v19 = vmul.f32 0.044715, %v4716_v36 }
0x1150   : > { %v4711_v0 = vpop.f32.mrf.mxu3 }
0x1151   : > { %v4720_v13 = vadd.f32 %v4718_v19, %v4710_v54  ;;  %v4712_v4 = vadd.f32 %v5694_v3, %v4711_v0  ;;  %v4941_v3 = vsel %vm1363_vm8, %v5638_v6, 0 }
0x1153   : > { %v4722_v27 = vmul.f32 0.7978846, %v4720_v13  ;;  %v4715_v30 = vmul.f32 %v4712_v4, %v4712_v4 }
0x1155   : > { %v4717_v26 = vmul.f32 %v4715_v30, %v4712_v4  ;;  %5787 = vtanh.f32 %v4722_v27 }
0x1157   : > { %v4719_v12 = vmul.f32 0.044715, %v4717_v26 }
0x1159   : > { %v4721_v47 = vadd.f32 %v4719_v12, %v4712_v4 }
0x115b   : > { %v4723_v40 = vmul.f32 0.7978846, %v4721_v47  ;;  %v5788_v16 = vpop.eup %5787 }
0x115c   : > { %v4726_v35 = vadd.f32 1.0, %v5788_v16 }
0x115d   : > { %5789 = vtanh.f32 %v4723_v40 }
0x115e   : > { %v4728_v1 = vmul.f32 0.5, %v4726_v35 }
0x1160   : > { %v4730_v53 = vmul.f32 %v4728_v1, %v4710_v54  ;;  %v5698_v54 = vld [vmem:[%s804_s26] ss:$0 sm:$0xff]  ;;  %s815_s26 = scalar_lea.vmem %s7350_s25, %s5174_s9 }
0x1163   : > { %v5790_v14 = vpop.eup %5789 }
0x1164   : > { %v4727_v42 = vadd.f32 1.0, %v5790_v14 }
0x1166   : > { %v4729_v15 = vmul.f32 0.5, %v4727_v42  ;;  %v5697_v42 = vld [vmem:[%s7348_s23] ss:$0 sm:$0xff] }
0x1168   : > { %v4731_v17 = vmul.f32 %v4729_v15, %v4712_v4 }
0x116a   : > { %v4749_v2 = vpack.c.bf16 %v4731_v17, %v4730_v53 }
0x116c   : > { %4806 = vmatmul.bf16.vlgmr.msra.gmra.mxu1 %v4749_v2 }
0x11e9   : > { %v4807_v22 = vpop.f32.mrf.mxu1 }
0x11ea   : > { %v4812_v11 = vadd.f32 %v4807_v22, %v7192_v59  ;;  %v5643_v59 = vld [vmem:[%s7382_s5 + $0x30] sm:$0xff] }
0x11eb   : > { %v4956_v23 = vsel %vm1363_vm8, %v5643_v59, 0 }
0x11ec   : > { %v4819_v25 = vadd.f32 %v5695_v18, %v4812_v11  ;;  %4962 = vmatpush.bf16.xpose.msra.mxu2 %v4956_v23 }
0x11ee   : > { %v4823_v20 = vsel %vm1363_vm8, %v4819_v25, 0.0 }
0x11ef   : > { %4824 = vadd.xlane.f32.xlu2 %v4823_v20 }
0x11f1   : > { %v4809_v50 = vpop.f32.mrf.mxu1 }
0x11f2   : > { %v4813_v44 = vadd.f32 %v4809_v50, %v7197_v52  ;;  %v5642_v52 = vld [vmem:[%s7382_s5 + $0x28] sm:$0xff] }
0x11f3   : > { %v4953_v62 = vsel %vm1363_vm8, %v5642_v52, 0 }
0x11f4   : > { %v4820_v7 = vadd.f32 %v5695_v18, %v4813_v44  ;;  %4963 = vmatpush.bf16.xpose.msra.mxu2 %v4953_v62 }
0x11f6   : > { %v4826_v37 = vsel %vm1363_vm8, %v4820_v7, 0.0 }
0x11f7   : > { %4827 = vadd.xlane.f32.xlu0 %v4826_v37 }
0x11fc   : > { %4964 = vmatpush.bf16.xpose.msra.mxu2 %v4950_v34 }
0x1204   : > { %4965 = vmatpush.bf16.xpose.msra.mxu2 %v4947_v39 }
0x120c   : > { %4966 = vmatpush.bf16.xpose.msra.mxu2 %v4944_v28 }
0x1214   : > { %4967 = vmatpush.bf16.xpose.msra.mxu2 %v4941_v3 }
0x121c   : > { %4968 = vmatpush.bf16.xpose.msra.mxu2 %v4938_v8 }
0x1262   : > { %v4825_v56 = vpop.xlane.xlu2 %4824 }
0x1263   : > { %v4829_v46 = vmul.f32 %v4825_v56, %v6155_v51 }
0x1265   : > { %v4831_v29 = vsub.f32 %v4819_v25, %v4829_v46  ;;  %v5822_v46 = vmov 0.0  }
0x1267   : > { %v4833_v32 = vmul.f32 %v4831_v29, %v4831_v29 }
0x1269   : > { %v4835_v21 = vsel %vm1363_vm8, %v4833_v32, 0.0 }
0x126a   : > { %4836 = vadd.xlane.f32.xlu1 %v4835_v21  ;;  %v4828_v43 = vpop.xlane.xlu0 %4827 }
0x126b   : > { %v4830_v38 = vmul.f32 %v4828_v43, %v6155_v51 }
0x126d   : > { %v4832_v58 = vsub.f32 %v4820_v7, %v4830_v38 }
0x126f   : > { %v4834_v5 = vmul.f32 %v4832_v58, %v4832_v58 }
0x1271   : > { %v4838_v33 = vsel %vm1363_vm8, %v4834_v5, 0.0 }
0x1272   : > { %4839 = vadd.xlane.f32.xlu2 %v4838_v33 }
0x128a   : > { %5001 = vperm.xlu2 %5672, %v5698_v54  }
0x12dd   : > { %v4837_v41 = vpop.xlane.xlu1 %4836 }
0x12de   : > { %v4841_v10 = vmul.f32 %v4837_v41, %v6155_v51 }
0x12e0   : > { %v4843_v48 = vadd.f32 1e-05, %v4841_v10 }
0x12e2   : > { %5791 = vrsqrt.f32 %v4843_v48  ;;  %vm4851_vm11 = vweird.f32 %v4843_v48 }
0x12e5   : > { %v4840_v55 = vpop.xlane.xlu2 %4839 }
0x12e6   : > { %v4842_v63 = vmul.f32 %v4840_v55, %v6155_v51  ;;  %v5696_v51 = vld [vmem:[%s7347_s22] ss:$0 sm:$0xff] }
0x12e8   : > { %v5792_v36 = vpop.eup %5791  ;;  %v4844_v19 = vadd.f32 1e-05, %v4842_v63 }
0x12e9   : > { %v4846_v57 = vmul.f32 %v5792_v36, %v4843_v48  ;;  %vm4852_vm10 = vweird.f32 %v5792_v36 }
0x12ea   : > { %5793 = vrsqrt.f32 %v4844_v19  ;;  %vm4853_vm12 = vmor %vm4851_vm11, %vm4852_vm10  ;;  %vm4861_vm14 = vweird.f32 %v4844_v19 }
0x12eb   : > { %v4847_v0 = vmul.f32 %v5792_v36, %v4846_v57 }
0x12ed   : > { %v4848_v13 = vmul.f32 0.5, %v4847_v0  ;;  %v5002_v52 = vpop.permute.xlu2 %5001 }
0x12ee   : > { %vm5009_vm2 = vcmp.eq.s32.totalorder %v6087_v60, %v5002_v52  ;;  %vm5017_vm4 = vcmp.ne.s32.totalorder %v5002_v52, 4294967196 }
0x12ef   : > { %v4849_v4 = vsub.f32 1.5, %v4848_v13 }
0x12f0   : > { %v5794_v27 = vpop.eup %5793 }
0x12f1   : > { %v4850_v30 = vmul.f32 %v5792_v36, %v4849_v4  ;;  %v4856_v26 = vmul.f32 %v5794_v27, %v4844_v19  ;;  %vm4862_vm13 = vweird.f32 %v5794_v27 }
0x12f2   : > { %vm4863_vm15 = vmor %vm4861_vm14, %vm4862_vm13 }
0x12f3   : > { %v4857_v12 = vmul.f32 %v5794_v27, %v4856_v26  ;;  %v4854_v47 = vsel %vm4853_vm12, %v5792_v36, %v4850_v30 }
0x12f4   : > { %v4865_v35 = vmul.f32 %v4854_v47, %v4831_v29  ;;  %v5568_v29 = vsel %vm5017_vm4, 1.0, %v5822_v46 }
0x12f5   : > { %v4858_v40 = vmul.f32 0.5, %v4857_v12  ;;  %v5040_v32 = vsel %vm5023_vm0, %v5568_v29, 0.0 }
0x12f6   : > { %v4870_v15 = vmul.f32 %v5696_v51, %v4865_v35 }
0x12f7   : > { %v4859_v16 = vsub.f32 1.5, %v4858_v40 }
0x12f8   : > { %v4875_v2 = vadd.f32 %v5697_v42, %v4870_v15 }
0x12f9   : > { %v4860_v14 = vmul.f32 %v5794_v27, %v4859_v16 }
0x12fb   : > { %v4864_v1 = vsel %vm4863_vm15, %v5794_v27, %v4860_v14 }
0x12fc   : > { %v4866_v53 = vmul.f32 %v4864_v1, %v4832_v58 }
0x12fe   : > { %v4871_v17 = vmul.f32 %v5696_v51, %v4866_v53 }
0x1300   : > { %v4876_v18 = vadd.f32 %v5697_v42, %v4871_v17 }
0x1302   : > { %v4877_v22 = vpack.c.bf16 %v4876_v18, %v4875_v2 }
0x1304   : > { %5567 = vmatmul.msk.bf16.vlgmr.msra.gmra.mxu2 %vm1363_vm8, %v4877_v22 }
0x1387   : > { %v4970_v11 = vpop.f32.mrf.mxu2 }
0x1388   : > { %4976 = vmax.xlane.f32.xlu0 %v4970_v11  ;;  %v5011_v62 = vsel %vm5009_vm2, %v4970_v11, 0.0 }
0x138f   : > { %v4972_v25 = vpop.f32.mrf.mxu2 }
0x1390   : > { %4978 = vmax.xlane.f32.xlu1 %v4972_v25 }
0x139c   : > { %5007 = vperm.xlu0 %5671, %v5698_v54  }
0x13fb   : > { %v4977_v20 = vpop.xlane.xlu0 %4976 }
0x13fc   : > { %v4980_v50 = vsub.f32 %v4970_v11, %v4977_v20 }
0x13fe   : > { %v4982_v44 = vmul.f32 1.442695, %v4980_v50 }
0x1400   : > { %5795 = vpow2.f32 %v4982_v44 }
0x1403   : > { %v4979_v7 = vpop.xlane.xlu1 %4978 }
0x1404   : > { %v4981_v37 = vsub.f32 %v4972_v25, %v4979_v7 }
0x1406   : > { %v5796_v9 = vpop.eup %5795  ;;  %v4984_v31 = vmul.f32 1.442695, %v4981_v37 }
0x1407   : > { %4986 = vadd.xlane.f32.xlu1 %v5796_v9 }
0x1408   : > { %5797 = vpow2.f32 %v4984_v31 }
0x140e   : > { %v5798_v59 = vpop.eup %5797  ;;  %v5008_v23 = vpop.permute.xlu0 %5007 }
0x140f   : > { %4988 = vadd.xlane.f32.xlu1 %v5798_v59  ;;  %vm5010_vm8 = vcmp.eq.s32.totalorder %v6087_v60, %v5008_v23  ;;  %vm5018_vm6 = vcmp.ne.s32.totalorder %v5008_v23, 4294967196 }
0x1410   : > { %v5012_v56 = vsel %vm5010_vm8, %v4972_v25, 0.0  ;;  %v5569_v49 = vsel %vm5018_vm6, 1.0, %v5822_v46 }
0x1411   : > { %5015 = vadd.xlane.f32.xlu0 %v5012_v56  ;;  %v5041_v21 = vsel %vm5023_vm0, %v5569_v49, 0.0 }
0x1412   : > { %v5042_v43 = vadd.f32 %v5041_v21, %v5040_v32 }
0x1417   : > { %5013 = vadd.xlane.f32.xlu1 %v5011_v62 }
0x141f   : > { %5043 = vadd.xlane.f32.xlu1 %v5042_v43 }
0x147a   : > { %v4987_v34 = vpop.xlane.xlu1 %4986 }
0x147b   : > { %5799 = vlog2.f32 %v4987_v34 }
0x1481   : > { %v5800_v38 = vpop.eup %5799 }
0x1482   : > { %v4989_v60 = vpop.xlane.xlu1 %4988  ;;  %v4991_v58 = vmul.f32 0.6931472, %v5800_v38 }
0x1483   : > { %5801 = vlog2.f32 %v4989_v60 }
0x1484   : > { %v4994_v33 = vadd.f32 %v4991_v58, %v4977_v20  ;;  %v5016_v6 = vpop.xlane.xlu0 %5015 }
0x1489   : > { %v5802_v5 = vpop.eup %5801 }
0x148a   : > { %v4993_v24 = vmul.f32 0.6931472, %v5802_v5  ;;  %v5014_v39 = vpop.xlane.xlu1 %5013 }
0x148b   : > { %v5019_v61 = vsub.f32 %v4994_v33, %v5014_v39 }
0x148c   : > { %v4995_v28 = vadd.f32 %v4993_v24, %v4979_v7 }
0x148d   : > { %v5021_v10 = vsel %vm5017_vm4, %v5019_v61, 0.0 }
0x148e   : > { %v5020_v41 = vsub.f32 %v4995_v28, %v5016_v6  ;;  %v5024_v48 = vsel %vm5023_vm0, %v5021_v10, 0.0 }
0x1490   : > { %v5022_v3 = vsel %vm5018_vm6, %v5020_v41, 0.0 }
0x1491   : > { %v5025_v45 = vsel %vm5023_vm0, %v5022_v3, 0.0 }
0x1492   : > { %v5026_v8 = vadd.f32 %v5025_v45, %v5024_v48  ;;  %v5044_v54 = vpop.xlane.xlu1 %5043 }
0x1493   : > { %v5045_v55 = vrot.slane %v5044_v54, 4 }
0x1494   : > { %5027 = vadd.xlane.f32.xlu2 %v5026_v8 }
0x1495   : > { %v5046_v63 = vadd.f32 %v5045_v55, %v5044_v54 }
0x1497   : > { %v5047_v36 = vrot.slane %v5046_v63, 2 }
0x1499   : > { %v5048_v13 = vadd.f32 %v5047_v36, %v5046_v63 }
0x149b   : > { %v5049_v30 = vrot.slane %v5048_v13, 1 }
0x149d   : > { %v5050_v47 = vadd.f32 %v5049_v30, %v5048_v13 }
0x1507   : > { %v5028_v19 = vpop.xlane.xlu2 %5027 }
0x1508   : > { %v5029_v57 = vrot.slane %v5028_v19, 4 }
0x150a   : > { %v5030_v0 = vadd.f32 %v5029_v57, %v5028_v19 }
0x150c   : > { %v5031_v4 = vrot.slane %v5030_v0, 2 }
0x150e   : > { %v5032_v27 = vadd.f32 %v5031_v4, %v5030_v0 }
0x1510   : > { %v5033_v26 = vrot.slane %v5032_v27, 1 }
0x1512   : > { %v5034_v12 = vadd.f32 %v5033_v26, %v5032_v27 }
0x1514   : > { %5646 = vpush %v5034_v12 }
0x1515   : > { %5648 = vpush %v5050_v47 }
0x1545   : > { %s5647_s4 = spop %5646 }
0x1546   : > { %v5052_v40 = vstv %s5647_s4  ;;  %s5649_s28 = spop %5648 }
0x1547   : > { %5053 = vst [vmem:[%s811_s6] sm:$0xff] %v5052_v40  ;;  %v5054_v16 = vstv %s5649_s28 }
0x1548   : > { %5055 = vst [vmem:[%s815_s26] sm:$0xff] %v5054_v16 }
0x1549 PF: > { %s36_s29 = sadd.s32 1, %s5809_s29  }
0x154a   : > { %p33_p4 = scmp.ge.s32.totalorder %s36_s29, 4  }
0x154c   :  { %35 = sbr.rel (!%p33_p4) target bundleno = 11 (0xb), region = 187 }

</bundles_post_ra>
